<compile_context>
chip_gen: v5e
topology: v5e:2x2
jax: 0.10.0
libtpu: 0.0.40
codegen_flags: <defaults>
</compile_context>

<pallas_src>
import functools

import jax
import jax.numpy as jnp
from jax.experimental import pallas as pl
from jax.experimental.pallas import tpu as pltpu

_LANE = 128


def _round_up(x, m):
    return (x + m - 1) // m * m


# ------------------------------- Pallas kernel ------------------------------ #

def _zero_pad_hw(a):
    """Zero-pad a (H, W, C) VMEM value by 1 on each spatial side."""
    h, w, c = a.shape
    zr = jnp.zeros((1, w, c), a.dtype)
    a = jnp.concatenate([zr, a, zr], axis=0)          # (H+2, W,   C)
    zc = jnp.zeros((h + 2, 1, c), a.dtype)
    return jnp.concatenate([zc, a, zc], axis=1)       # (H+2, W+2, C)


def _conv3x3_taps(xpad, w_ref, h, w, acc0):
    """Implicit GEMM: 9 shifted (H*W, Cin) @ (Cin, Cout) dots accumulated onto acc0."""
    cin = xpad.shape[-1]
    acc = acc0
    for t in range(9):            # unrolled at trace time (scheduler sees whole chain)
        dy, dx = divmod(t, 3)
        win = xpad[dy:dy + h, dx:dx + w, :].reshape(h * w, cin)
        acc = acc + jnp.dot(win, w_ref[t], preferred_element_type=jnp.float32)
    return acc


def _basic_block_kernel(*refs, H, W, use_ds):
    if use_ds:
        x_ref, w1_ref, b1_ref, w2_ref, b2_ref, wd_ref, bd_ref, o_ref = refs
    else:
        x_ref, w1_ref, b1_ref, w2_ref, b2_ref, o_ref = refs

    cin = x_ref.shape[-1]
    cout = o_ref.shape[-1]

    x = x_ref[0]                                   # (H, W, Cin_p) bf16
    xm = x.reshape(H * W, cin)

    # layer1: Conv3x3 (pad=1) + bias + ReLU  (bias folded into accumulator init)
    b1 = jnp.broadcast_to(b1_ref[...], (H * W, cout))
    a1 = _conv3x3_taps(_zero_pad_hw(x), w1_ref, H, W, b1)
    h1 = jnp.maximum(a1, 0.0).astype(x.dtype)      # bf16 for the second MXU pass

    # identity path (optional 1x1 downsample conv), computed in-kernel
    if use_ds:
        ident = (jnp.dot(xm, wd_ref[...], preferred_element_type=jnp.float32)
                 + bd_ref[...])
    else:
        ident = xm.astype(jnp.float32)             # Cin_p == Cout_p here

    # layer2: Conv3x3 (pad=1) + bias, with the residual folded into the accumulator
    acc0 = ident + b2_ref[...]
    out = _conv3x3_taps(_zero_pad_hw(h1.reshape(H, W, cout)), w2_ref, H, W, acc0)
    o_ref[0] = out.reshape(H, W, cout).astype(o_ref.dtype)


# ------------------------------ pallas_call wrapper ------------------------- #

def _basic_block_call(x_nhwc, w1, b1, w2, b2, wd, bd):
    n, h, w, cp_in = x_nhwc.shape
    cp_out = w1.shape[-1]
    use_ds = wd is not None

    kern = functools.partial(_basic_block_kernel, H=h, W=w, use_ds=use_ds)

    args = [x_nhwc, w1, b1, w2, b2]
    in_specs = [
        pl.BlockSpec((1, h, w, cp_in), lambda b: (b, 0, 0, 0)),   # x: one image / step
        pl.BlockSpec((9, cp_in, cp_out), lambda b: (0, 0, 0)),    # w1 (VMEM-resident)
        pl.BlockSpec((1, cp_out), lambda b: (0, 0)),              # b1
        pl.BlockSpec((9, cp_out, cp_out), lambda b: (0, 0, 0)),   # w2 (VMEM-resident)
        pl.BlockSpec((1, cp_out), lambda b: (0, 0)),              # b2
    ]
    if use_ds:
        args += [wd, bd]
        in_specs += [
            pl.BlockSpec((cp_in, cp_out), lambda b: (0, 0)),      # wd (1x1 conv)
            pl.BlockSpec((1, cp_out), lambda b: (0, 0)),          # bd
        ]

    return pl.pallas_call(
        kern,
        out_shape=jax.ShapeDtypeStruct((n, h, w, cp_out), jnp.float32),
        grid=(n,),
        in_specs=in_specs,
        out_specs=pl.BlockSpec((1, h, w, cp_out), lambda b: (b, 0, 0, 0)),
        compiler_params=pltpu.CompilerParams(dimension_semantics=("parallel",)),
    )(*args)


# ------------------------------ params & module ----------------------------- #

def _conv_params(kw, kb, c_in, c_out, ksize):
    """PyTorch Conv2d default init (kaiming-uniform-ish), deterministic."""
    fan_in = c_in * ksize * ksize
    bound = 1.0 / (fan_in ** 0.5)
    w = jax.random.uniform(kw, (c_out, c_in, ksize, ksize), jnp.float32, -bound, bound)
    b = jax.random.uniform(kb, (c_out,), jnp.float32, -bound, bound)
    return w, b


def _tap_matrices(w_oihw, cp_in, cp_out):
    """(Cout, Cin, 3, 3) -> (9, Cin_p, Cout_p) bf16, tap index t = dy*3 + dx."""
    cout, cin, kh, kw = w_oihw.shape
    w = jnp.transpose(w_oihw, (2, 3, 1, 0)).reshape(kh * kw, cin, cout)
    w = jnp.pad(w, ((0, 0), (0, cp_in - cin), (0, cp_out - cout)))
    return w.astype(jnp.bfloat16)


def _pad_bias(b, cp_out):
    return jnp.pad(b, (0, cp_out - b.shape[0])).reshape(1, cp_out).astype(jnp.float32)


class BasicBlockPallas:
    """Pallas port of BasicBlock: identity(+ optional 1x1 ds conv) + conv3x3->ReLU->conv3x3."""

    def __init__(self, key, c_in, c_out, use_downsample):
        k = jax.random.split(key, 6)
        self.w1, self.b1 = _conv_params(k[0], k[1], c_in, c_out, 3)   # layer1: Conv3x3 + ReLU
        self.w2, self.b2 = _conv_params(k[2], k[3], c_out, c_out, 3)  # layer2: Conv3x3
        self.use_downsample = use_downsample
        if use_downsample:
            self.wd, self.bd = _conv_params(k[4], k[5], c_in, c_out, 1)  # ds_conv: Conv1x1
        else:
            assert c_in == c_out

        self.c_in, self.c_out = c_in, c_out
        self.cp_in = _round_up(c_in, _LANE)
        self.cp_out = _round_up(c_out, _LANE)

        # Pre-packed, lane-dense, bf16 kernel operands.
        self._w1g = _tap_matrices(self.w1, self.cp_in, self.cp_out)
        self._b1g = _pad_bias(self.b1, self.cp_out)
        self._w2g = _tap_matrices(self.w2, self.cp_out, self.cp_out)
        self._b2g = _pad_bias(self.b2, self.cp_out)
        if use_downsample:
            wd = jnp.transpose(self.wd[:, :, 0, 0], (1, 0))           # (Cin, Cout)
            wd = jnp.pad(wd, ((0, self.cp_in - c_in), (0, self.cp_out - c_out)))
            self._wdg = wd.astype(jnp.bfloat16)
            self._bdg = _pad_bias(self.bd, self.cp_out)
        else:
            self._wdg = self._bdg = None

    def __call__(self, x_nchw):
        n, c, h, w = x_nchw.shape
        assert c == self.c_in and w % 8 == 0
        # TODO(synk): for large H*W add a spatial grid axis with halo'd blocks, and for
        # production channel counts (C>=256) add a tap/K grid axis with a VMEM f32
        # accumulator so the resident weight slab fits v7x's 64 MiB VMEM budget.
        x = jnp.transpose(x_nchw, (0, 2, 3, 1))                        # NCHW -> NHWC
        x = jnp.pad(x, ((0, 0), (0, 0), (0, 0), (0, self.cp_in - c)))  # lane-dense channels
        x = x.astype(jnp.bfloat16)                                     # bf16 MXU operands
        out = _basic_block_call(x, self._w1g, self._b1g, self._w2g, self._b2g,
                                self._wdg, self._bdg)
        out = out[..., :self.c_out]
        return jnp.transpose(out, (0, 3, 1, 2))                        # NHWC -> NCHW


# ------------------------------ reference (verification only) --------------- #

def _ref_forward(block, x_nchw):
    def conv(x, wgt, b, pad):
        y = jax.lax.conv_general_dilated(
            x, wgt, (1, 1), [(pad, pad), (pad, pad)],
            dimension_numbers=("NCHW", "OIHW", "NCHW"))
        return y + b[None, :, None, None]

    identity = x_nchw
    if block.use_downsample:
        identity = conv(x_nchw, block.wd, block.bd, 0)
    out = jax.nn.relu(conv(x_nchw, block.w1, block.b1, 1))
    out = conv(out, block.w2, block.b2, 1)
    return identity + out


# ----------------------------------- main ----------------------------------- #

if __name__ == "__main__":
    key = jax.random.PRNGKey(0)
    kx, kb1, kb2 = jax.random.split(key, 3)
    x = jax.random.normal(kx, (2, 4, 16, 16), jnp.float32)  # NCHW, like PyTorch

    # BasicBlock with identity skip (ds_conv=None), 4 -> 4 channels.
    blk = BasicBlockPallas(kb1, 4, 4, use_downsample=False)
    out = jax.block_until_ready(blk(x))
    assert out.shape == (2, 4, 16, 16)
    # bf16 MXU operands (f32 accumulation) -> slightly looser tolerance than pure f32.
    assert jnp.allclose(out, _ref_forward(blk, x), atol=2e-2, rtol=2e-2)

    # BasicBlock with a 1x1 downsample conv on the skip path, 4 -> 8 channels.
    blk_ds = BasicBlockPallas(kb2, 4, 8, use_downsample=True)
    out_ds = jax.block_until_ready(blk_ds(x))
    assert out_ds.shape == (2, 8, 16, 16)
    assert jnp.allclose(out_ds, _ref_forward(blk_ds, x), atol=2e-2, rtol=2e-2)

    print("KERNEL_OK")
</pallas_src>

<mosaic_0001>
module attributes {stable_mosaic.version = 11 : i64} {
  func.func @_basic_block_kernel(%arg0: i32, %arg1: memref<1x16x16x128xbf16, #tpu.memory_space<vmem>>, %arg2: memref<9x128x128xbf16, #tpu.memory_space<vmem>>, %arg3: memref<1x128xf32, #tpu.memory_space<vmem>>, %arg4: memref<9x128x128xbf16, #tpu.memory_space<vmem>>, %arg5: memref<1x128xf32, #tpu.memory_space<vmem>>, %arg6: memref<1x16x16x128xf32, #tpu.memory_space<vmem>>) attributes {dimension_semantics = [#tpu.dimension_semantics<parallel>], iteration_bounds = array<i64: 2>, scalar_prefetch = 0 : i64, scratch_operands = 0 : i64, tpu.core_type = #tpu.core_type<tc>, window_params = [{transform_indices = @transform_0, window_bounds = array<i64: 1, 16, 16, 128>}, {pipeline_mode = #tpu.pipeline_mode<synchronous>, transform_indices = @transform_1, window_bounds = array<i64: 9, 128, 128>}, {pipeline_mode = #tpu.pipeline_mode<synchronous>, transform_indices = @transform_2, window_bounds = array<i64: 1, 128>}, {pipeline_mode = #tpu.pipeline_mode<synchronous>, transform_indices = @transform_3, window_bounds = array<i64: 9, 128, 128>}, {pipeline_mode = #tpu.pipeline_mode<synchronous>, transform_indices = @transform_4, window_bounds = array<i64: 1, 128>}, {transform_indices = @transform_5, window_bounds = array<i64: 1, 16, 16, 128>}]} {
    %c0 = arith.constant 0 : index
    %c0_0 = arith.constant 0 : index
    %c0_1 = arith.constant 0 : index
    %c0_2 = arith.constant 0 : index
    %0 = vector.load %arg1[%c0, %c0_0, %c0_1, %c0_2] : memref<1x16x16x128xbf16, #tpu.memory_space<vmem>>, vector<1x16x16x128xbf16>
    %1 = vector.shape_cast %0 : vector<1x16x16x128xbf16> to vector<16x16x128xbf16>
    %2 = vector.shape_cast %1 : vector<16x16x128xbf16> to vector<256x128xbf16>
    %c0_3 = arith.constant 0 : index
    %c0_4 = arith.constant 0 : index
    %3 = vector.load %arg3[%c0_3, %c0_4] : memref<1x128xf32, #tpu.memory_space<vmem>>, vector<1x128xf32>
    %4 = vector.shape_cast %3 : vector<1x128xf32> to vector<1x128xf32>
    %5 = vector.broadcast %4 : vector<1x128xf32> to vector<256x128xf32>
    %cst = arith.constant 0.000000e+00 : bf16
    %6 = vector.broadcast %cst : bf16 to vector<1x16x128xbf16>
    %7 = tpu.concatenate %6, %1, %6 in 0 : vector<1x16x128xbf16>, vector<16x16x128xbf16>, vector<1x16x128xbf16> -> vector<18x16x128xbf16>
    %cst_5 = arith.constant 0.000000e+00 : bf16
    %8 = vector.broadcast %cst_5 : bf16 to vector<18x1x128xbf16>
    %9 = tpu.concatenate %8, %7, %8 in 1 : vector<18x1x128xbf16>, vector<18x16x128xbf16>, vector<18x1x128xbf16> -> vector<18x18x128xbf16>
    %10 = vector.extract_strided_slice %9 {offsets = [0, 0, 0], sizes = [16, 16, 128], strides = [1, 1, 1]} : vector<18x18x128xbf16> to vector<16x16x128xbf16>
    %11 = vector.shape_cast %10 : vector<16x16x128xbf16> to vector<256x128xbf16>
    %c0_6 = arith.constant 0 : index
    %c0_7 = arith.constant 0 : index
    %c0_8 = arith.constant 0 : index
    %12 = vector.load %arg2[%c0_6, %c0_7, %c0_8] : memref<9x128x128xbf16, #tpu.memory_space<vmem>>, vector<1x128x128xbf16>
    %13 = vector.shape_cast %12 : vector<1x128x128xbf16> to vector<128x128xbf16>
    %cst_9 = arith.constant dense<0.000000e+00> : vector<256x128xf32>
    %14 = tpu.matmul %11, %13, %cst_9 {dimension_numbers = #tpu.dot_dimension_numbers<[1], [0], [0], [1], [0, 0, 1, 1], [], []>} : vector<256x128xbf16>, vector<128x128xbf16>, vector<256x128xf32> -> vector<256x128xf32>
    %15 = arith.addf %5, %14 : vector<256x128xf32>
    %16 = vector.extract_strided_slice %9 {offsets = [0, 1, 0], sizes = [16, 16, 128], strides = [1, 1, 1]} : vector<18x18x128xbf16> to vector<16x16x128xbf16>
    %17 = vector.shape_cast %16 : vector<16x16x128xbf16> to vector<256x128xbf16>
    %c1 = arith.constant 1 : index
    %c0_10 = arith.constant 0 : index
    %c0_11 = arith.constant 0 : index
    %18 = vector.load %arg2[%c1, %c0_10, %c0_11] : memref<9x128x128xbf16, #tpu.memory_space<vmem>>, vector<1x128x128xbf16>
    %19 = vector.shape_cast %18 : vector<1x128x128xbf16> to vector<128x128xbf16>
    %cst_12 = arith.constant dense<0.000000e+00> : vector<256x128xf32>
    %20 = tpu.matmul %17, %19, %cst_12 {dimension_numbers = #tpu.dot_dimension_numbers<[1], [0], [0], [1], [0, 0, 1, 1], [], []>} : vector<256x128xbf16>, vector<128x128xbf16>, vector<256x128xf32> -> vector<256x128xf32>
    %21 = arith.addf %15, %20 : vector<256x128xf32>
    %22 = vector.extract_strided_slice %9 {offsets = [0, 2, 0], sizes = [16, 16, 128], strides = [1, 1, 1]} : vector<18x18x128xbf16> to vector<16x16x128xbf16>
    %23 = vector.shape_cast %22 : vector<16x16x128xbf16> to vector<256x128xbf16>
    %c2 = arith.constant 2 : index
    %c0_13 = arith.constant 0 : index
    %c0_14 = arith.constant 0 : index
    %24 = vector.load %arg2[%c2, %c0_13, %c0_14] : memref<9x128x128xbf16, #tpu.memory_space<vmem>>, vector<1x128x128xbf16>
    %25 = vector.shape_cast %24 : vector<1x128x128xbf16> to vector<128x128xbf16>
    %cst_15 = arith.constant dense<0.000000e+00> : vector<256x128xf32>
    %26 = tpu.matmul %23, %25, %cst_15 {dimension_numbers = #tpu.dot_dimension_numbers<[1], [0], [0], [1], [0, 0, 1, 1], [], []>} : vector<256x128xbf16>, vector<128x128xbf16>, vector<256x128xf32> -> vector<256x128xf32>
    %27 = arith.addf %21, %26 : vector<256x128xf32>
    %28 = vector.extract_strided_slice %9 {offsets = [1, 0, 0], sizes = [16, 16, 128], strides = [1, 1, 1]} : vector<18x18x128xbf16> to vector<16x16x128xbf16>
    %29 = vector.shape_cast %28 : vector<16x16x128xbf16> to vector<256x128xbf16>
    %c3 = arith.constant 3 : index
    %c0_16 = arith.constant 0 : index
    %c0_17 = arith.constant 0 : index
    %30 = vector.load %arg2[%c3, %c0_16, %c0_17] : memref<9x128x128xbf16, #tpu.memory_space<vmem>>, vector<1x128x128xbf16>
    %31 = vector.shape_cast %30 : vector<1x128x128xbf16> to vector<128x128xbf16>
    %cst_18 = arith.constant dense<0.000000e+00> : vector<256x128xf32>
    %32 = tpu.matmul %29, %31, %cst_18 {dimension_numbers = #tpu.dot_dimension_numbers<[1], [0], [0], [1], [0, 0, 1, 1], [], []>} : vector<256x128xbf16>, vector<128x128xbf16>, vector<256x128xf32> -> vector<256x128xf32>
    %33 = arith.addf %27, %32 : vector<256x128xf32>
    %34 = vector.extract_strided_slice %9 {offsets = [1, 1, 0], sizes = [16, 16, 128], strides = [1, 1, 1]} : vector<18x18x128xbf16> to vector<16x16x128xbf16>
    %35 = vector.shape_cast %34 : vector<16x16x128xbf16> to vector<256x128xbf16>
    %c4 = arith.constant 4 : index
    %c0_19 = arith.constant 0 : index
    %c0_20 = arith.constant 0 : index
    %36 = vector.load %arg2[%c4, %c0_19, %c0_20] : memref<9x128x128xbf16, #tpu.memory_space<vmem>>, vector<1x128x128xbf16>
    %37 = vector.shape_cast %36 : vector<1x128x128xbf16> to vector<128x128xbf16>
    %cst_21 = arith.constant dense<0.000000e+00> : vector<256x128xf32>
    %38 = tpu.matmul %35, %37, %cst_21 {dimension_numbers = #tpu.dot_dimension_numbers<[1], [0], [0], [1], [0, 0, 1, 1], [], []>} : vector<256x128xbf16>, vector<128x128xbf16>, vector<256x128xf32> -> vector<256x128xf32>
    %39 = arith.addf %33, %38 : vector<256x128xf32>
    %40 = vector.extract_strided_slice %9 {offsets = [1, 2, 0], sizes = [16, 16, 128], strides = [1, 1, 1]} : vector<18x18x128xbf16> to vector<16x16x128xbf16>
    %41 = vector.shape_cast %40 : vector<16x16x128xbf16> to vector<256x128xbf16>
    %c5 = arith.constant 5 : index
    %c0_22 = arith.constant 0 : index
    %c0_23 = arith.constant 0 : index
    %42 = vector.load %arg2[%c5, %c0_22, %c0_23] : memref<9x128x128xbf16, #tpu.memory_space<vmem>>, vector<1x128x128xbf16>
    %43 = vector.shape_cast %42 : vector<1x128x128xbf16> to vector<128x128xbf16>
    %cst_24 = arith.constant dense<0.000000e+00> : vector<256x128xf32>
    %44 = tpu.matmul %41, %43, %cst_24 {dimension_numbers = #tpu.dot_dimension_numbers<[1], [0], [0], [1], [0, 0, 1, 1], [], []>} : vector<256x128xbf16>, vector<128x128xbf16>, vector<256x128xf32> -> vector<256x128xf32>
    %45 = arith.addf %39, %44 : vector<256x128xf32>
    %46 = vector.extract_strided_slice %9 {offsets = [2, 0, 0], sizes = [16, 16, 128], strides = [1, 1, 1]} : vector<18x18x128xbf16> to vector<16x16x128xbf16>
    %47 = vector.shape_cast %46 : vector<16x16x128xbf16> to vector<256x128xbf16>
    %c6 = arith.constant 6 : index
    %c0_25 = arith.constant 0 : index
    %c0_26 = arith.constant 0 : index
    %48 = vector.load %arg2[%c6, %c0_25, %c0_26] : memref<9x128x128xbf16, #tpu.memory_space<vmem>>, vector<1x128x128xbf16>
    %49 = vector.shape_cast %48 : vector<1x128x128xbf16> to vector<128x128xbf16>
    %cst_27 = arith.constant dense<0.000000e+00> : vector<256x128xf32>
    %50 = tpu.matmul %47, %49, %cst_27 {dimension_numbers = #tpu.dot_dimension_numbers<[1], [0], [0], [1], [0, 0, 1, 1], [], []>} : vector<256x128xbf16>, vector<128x128xbf16>, vector<256x128xf32> -> vector<256x128xf32>
    %51 = arith.addf %45, %50 : vector<256x128xf32>
    %52 = vector.extract_strided_slice %9 {offsets = [2, 1, 0], sizes = [16, 16, 128], strides = [1, 1, 1]} : vector<18x18x128xbf16> to vector<16x16x128xbf16>
    %53 = vector.shape_cast %52 : vector<16x16x128xbf16> to vector<256x128xbf16>
    %c7 = arith.constant 7 : index
    %c0_28 = arith.constant 0 : index
    %c0_29 = arith.constant 0 : index
    %54 = vector.load %arg2[%c7, %c0_28, %c0_29] : memref<9x128x128xbf16, #tpu.memory_space<vmem>>, vector<1x128x128xbf16>
    %55 = vector.shape_cast %54 : vector<1x128x128xbf16> to vector<128x128xbf16>
    %cst_30 = arith.constant dense<0.000000e+00> : vector<256x128xf32>
    %56 = tpu.matmul %53, %55, %cst_30 {dimension_numbers = #tpu.dot_dimension_numbers<[1], [0], [0], [1], [0, 0, 1, 1], [], []>} : vector<256x128xbf16>, vector<128x128xbf16>, vector<256x128xf32> -> vector<256x128xf32>
    %57 = arith.addf %51, %56 : vector<256x128xf32>
    %58 = vector.extract_strided_slice %9 {offsets = [2, 2, 0], sizes = [16, 16, 128], strides = [1, 1, 1]} : vector<18x18x128xbf16> to vector<16x16x128xbf16>
    %59 = vector.shape_cast %58 : vector<16x16x128xbf16> to vector<256x128xbf16>
    %c8 = arith.constant 8 : index
    %c0_31 = arith.constant 0 : index
    %c0_32 = arith.constant 0 : index
    %60 = vector.load %arg2[%c8, %c0_31, %c0_32] : memref<9x128x128xbf16, #tpu.memory_space<vmem>>, vector<1x128x128xbf16>
    %61 = vector.shape_cast %60 : vector<1x128x128xbf16> to vector<128x128xbf16>
    %cst_33 = arith.constant dense<0.000000e+00> : vector<256x128xf32>
    %62 = tpu.matmul %59, %61, %cst_33 {dimension_numbers = #tpu.dot_dimension_numbers<[1], [0], [0], [1], [0, 0, 1, 1], [], []>} : vector<256x128xbf16>, vector<128x128xbf16>, vector<256x128xf32> -> vector<256x128xf32>
    %63 = arith.addf %57, %62 : vector<256x128xf32>
    %cst_34 = arith.constant 0.000000e+00 : f32
    %64 = vector.broadcast %cst_34 : f32 to vector<256x128xf32>
    %65 = arith.maximumf %63, %64 : vector<256x128xf32>
    %66 = arith.truncf %65 : vector<256x128xf32> to vector<256x128xbf16>
    %67 = arith.extf %2 : vector<256x128xbf16> to vector<256x128xf32>
    %c0_35 = arith.constant 0 : index
    %c0_36 = arith.constant 0 : index
    %68 = vector.load %arg5[%c0_35, %c0_36] : memref<1x128xf32, #tpu.memory_space<vmem>>, vector<1x128xf32>
    %69 = vector.broadcast %68 : vector<1x128xf32> to vector<256x128xf32>
    %70 = arith.addf %67, %69 : vector<256x128xf32>
    %71 = vector.shape_cast %66 : vector<256x128xbf16> to vector<16x16x128xbf16>
    %cst_37 = arith.constant 0.000000e+00 : bf16
    %72 = vector.broadcast %cst_37 : bf16 to vector<1x16x128xbf16>
    %73 = tpu.concatenate %72, %71, %72 in 0 : vector<1x16x128xbf16>, vector<16x16x128xbf16>, vector<1x16x128xbf16> -> vector<18x16x128xbf16>
    %cst_38 = arith.constant 0.000000e+00 : bf16
    %74 = vector.broadcast %cst_38 : bf16 to vector<18x1x128xbf16>
    %75 = tpu.concatenate %74, %73, %74 in 1 : vector<18x1x128xbf16>, vector<18x16x128xbf16>, vector<18x1x128xbf16> -> vector<18x18x128xbf16>
    %76 = vector.extract_strided_slice %75 {offsets = [0, 0, 0], sizes = [16, 16, 128], strides = [1, 1, 1]} : vector<18x18x128xbf16> to vector<16x16x128xbf16>
    %77 = vector.shape_cast %76 : vector<16x16x128xbf16> to vector<256x128xbf16>
    %c0_39 = arith.constant 0 : index
    %c0_40 = arith.constant 0 : index
    %c0_41 = arith.constant 0 : index
    %78 = vector.load %arg4[%c0_39, %c0_40, %c0_41] : memref<9x128x128xbf16, #tpu.memory_space<vmem>>, vector<1x128x128xbf16>
    %79 = vector.shape_cast %78 : vector<1x128x128xbf16> to vector<128x128xbf16>
    %cst_42 = arith.constant dense<0.000000e+00> : vector<256x128xf32>
    %80 = tpu.matmul %77, %79, %cst_42 {dimension_numbers = #tpu.dot_dimension_numbers<[1], [0], [0], [1], [0, 0, 1, 1], [], []>} : vector<256x128xbf16>, vector<128x128xbf16>, vector<256x128xf32> -> vector<256x128xf32>
    %81 = arith.addf %70, %80 : vector<256x128xf32>
    %82 = vector.extract_strided_slice %75 {offsets = [0, 1, 0], sizes = [16, 16, 128], strides = [1, 1, 1]} : vector<18x18x128xbf16> to vector<16x16x128xbf16>
    %83 = vector.shape_cast %82 : vector<16x16x128xbf16> to vector<256x128xbf16>
    %c1_43 = arith.constant 1 : index
    %c0_44 = arith.constant 0 : index
    %c0_45 = arith.constant 0 : index
    %84 = vector.load %arg4[%c1_43, %c0_44, %c0_45] : memref<9x128x128xbf16, #tpu.memory_space<vmem>>, vector<1x128x128xbf16>
    %85 = vector.shape_cast %84 : vector<1x128x128xbf16> to vector<128x128xbf16>
    %cst_46 = arith.constant dense<0.000000e+00> : vector<256x128xf32>
    %86 = tpu.matmul %83, %85, %cst_46 {dimension_numbers = #tpu.dot_dimension_numbers<[1], [0], [0], [1], [0, 0, 1, 1], [], []>} : vector<256x128xbf16>, vector<128x128xbf16>, vector<256x128xf32> -> vector<256x128xf32>
    %87 = arith.addf %81, %86 : vector<256x128xf32>
    %88 = vector.extract_strided_slice %75 {offsets = [0, 2, 0], sizes = [16, 16, 128], strides = [1, 1, 1]} : vector<18x18x128xbf16> to vector<16x16x128xbf16>
    %89 = vector.shape_cast %88 : vector<16x16x128xbf16> to vector<256x128xbf16>
    %c2_47 = arith.constant 2 : index
    %c0_48 = arith.constant 0 : index
    %c0_49 = arith.constant 0 : index
    %90 = vector.load %arg4[%c2_47, %c0_48, %c0_49] : memref<9x128x128xbf16, #tpu.memory_space<vmem>>, vector<1x128x128xbf16>
    %91 = vector.shape_cast %90 : vector<1x128x128xbf16> to vector<128x128xbf16>
    %cst_50 = arith.constant dense<0.000000e+00> : vector<256x128xf32>
    %92 = tpu.matmul %89, %91, %cst_50 {dimension_numbers = #tpu.dot_dimension_numbers<[1], [0], [0], [1], [0, 0, 1, 1], [], []>} : vector<256x128xbf16>, vector<128x128xbf16>, vector<256x128xf32> -> vector<256x128xf32>
    %93 = arith.addf %87, %92 : vector<256x128xf32>
    %94 = vector.extract_strided_slice %75 {offsets = [1, 0, 0], sizes = [16, 16, 128], strides = [1, 1, 1]} : vector<18x18x128xbf16> to vector<16x16x128xbf16>
    %95 = vector.shape_cast %94 : vector<16x16x128xbf16> to vector<256x128xbf16>
    %c3_51 = arith.constant 3 : index
    %c0_52 = arith.constant 0 : index
    %c0_53 = arith.constant 0 : index
    %96 = vector.load %arg4[%c3_51, %c0_52, %c0_53] : memref<9x128x128xbf16, #tpu.memory_space<vmem>>, vector<1x128x128xbf16>
    %97 = vector.shape_cast %96 : vector<1x128x128xbf16> to vector<128x128xbf16>
    %cst_54 = arith.constant dense<0.000000e+00> : vector<256x128xf32>
    %98 = tpu.matmul %95, %97, %cst_54 {dimension_numbers = #tpu.dot_dimension_numbers<[1], [0], [0], [1], [0, 0, 1, 1], [], []>} : vector<256x128xbf16>, vector<128x128xbf16>, vector<256x128xf32> -> vector<256x128xf32>
    %99 = arith.addf %93, %98 : vector<256x128xf32>
    %100 = vector.extract_strided_slice %75 {offsets = [1, 1, 0], sizes = [16, 16, 128], strides = [1, 1, 1]} : vector<18x18x128xbf16> to vector<16x16x128xbf16>
    %101 = vector.shape_cast %100 : vector<16x16x128xbf16> to vector<256x128xbf16>
    %c4_55 = arith.constant 4 : index
    %c0_56 = arith.constant 0 : index
    %c0_57 = arith.constant 0 : index
    %102 = vector.load %arg4[%c4_55, %c0_56, %c0_57] : memref<9x128x128xbf16, #tpu.memory_space<vmem>>, vector<1x128x128xbf16>
    %103 = vector.shape_cast %102 : vector<1x128x128xbf16> to vector<128x128xbf16>
    %cst_58 = arith.constant dense<0.000000e+00> : vector<256x128xf32>
    %104 = tpu.matmul %101, %103, %cst_58 {dimension_numbers = #tpu.dot_dimension_numbers<[1], [0], [0], [1], [0, 0, 1, 1], [], []>} : vector<256x128xbf16>, vector<128x128xbf16>, vector<256x128xf32> -> vector<256x128xf32>
    %105 = arith.addf %99, %104 : vector<256x128xf32>
    %106 = vector.extract_strided_slice %75 {offsets = [1, 2, 0], sizes = [16, 16, 128], strides = [1, 1, 1]} : vector<18x18x128xbf16> to vector<16x16x128xbf16>
    %107 = vector.shape_cast %106 : vector<16x16x128xbf16> to vector<256x128xbf16>
    %c5_59 = arith.constant 5 : index
    %c0_60 = arith.constant 0 : index
    %c0_61 = arith.constant 0 : index
    %108 = vector.load %arg4[%c5_59, %c0_60, %c0_61] : memref<9x128x128xbf16, #tpu.memory_space<vmem>>, vector<1x128x128xbf16>
    %109 = vector.shape_cast %108 : vector<1x128x128xbf16> to vector<128x128xbf16>
    %cst_62 = arith.constant dense<0.000000e+00> : vector<256x128xf32>
    %110 = tpu.matmul %107, %109, %cst_62 {dimension_numbers = #tpu.dot_dimension_numbers<[1], [0], [0], [1], [0, 0, 1, 1], [], []>} : vector<256x128xbf16>, vector<128x128xbf16>, vector<256x128xf32> -> vector<256x128xf32>
    %111 = arith.addf %105, %110 : vector<256x128xf32>
    %112 = vector.extract_strided_slice %75 {offsets = [2, 0, 0], sizes = [16, 16, 128], strides = [1, 1, 1]} : vector<18x18x128xbf16> to vector<16x16x128xbf16>
    %113 = vector.shape_cast %112 : vector<16x16x128xbf16> to vector<256x128xbf16>
    %c6_63 = arith.constant 6 : index
    %c0_64 = arith.constant 0 : index
    %c0_65 = arith.constant 0 : index
    %114 = vector.load %arg4[%c6_63, %c0_64, %c0_65] : memref<9x128x128xbf16, #tpu.memory_space<vmem>>, vector<1x128x128xbf16>
    %115 = vector.shape_cast %114 : vector<1x128x128xbf16> to vector<128x128xbf16>
    %cst_66 = arith.constant dense<0.000000e+00> : vector<256x128xf32>
    %116 = tpu.matmul %113, %115, %cst_66 {dimension_numbers = #tpu.dot_dimension_numbers<[1], [0], [0], [1], [0, 0, 1, 1], [], []>} : vector<256x128xbf16>, vector<128x128xbf16>, vector<256x128xf32> -> vector<256x128xf32>
    %117 = arith.addf %111, %116 : vector<256x128xf32>
    %118 = vector.extract_strided_slice %75 {offsets = [2, 1, 0], sizes = [16, 16, 128], strides = [1, 1, 1]} : vector<18x18x128xbf16> to vector<16x16x128xbf16>
    %119 = vector.shape_cast %118 : vector<16x16x128xbf16> to vector<256x128xbf16>
    %c7_67 = arith.constant 7 : index
    %c0_68 = arith.constant 0 : index
    %c0_69 = arith.constant 0 : index
    %120 = vector.load %arg4[%c7_67, %c0_68, %c0_69] : memref<9x128x128xbf16, #tpu.memory_space<vmem>>, vector<1x128x128xbf16>
    %121 = vector.shape_cast %120 : vector<1x128x128xbf16> to vector<128x128xbf16>
    %cst_70 = arith.constant dense<0.000000e+00> : vector<256x128xf32>
    %122 = tpu.matmul %119, %121, %cst_70 {dimension_numbers = #tpu.dot_dimension_numbers<[1], [0], [0], [1], [0, 0, 1, 1], [], []>} : vector<256x128xbf16>, vector<128x128xbf16>, vector<256x128xf32> -> vector<256x128xf32>
    %123 = arith.addf %117, %122 : vector<256x128xf32>
    %124 = vector.extract_strided_slice %75 {offsets = [2, 2, 0], sizes = [16, 16, 128], strides = [1, 1, 1]} : vector<18x18x128xbf16> to vector<16x16x128xbf16>
    %125 = vector.shape_cast %124 : vector<16x16x128xbf16> to vector<256x128xbf16>
    %c8_71 = arith.constant 8 : index
    %c0_72 = arith.constant 0 : index
    %c0_73 = arith.constant 0 : index
    %126 = vector.load %arg4[%c8_71, %c0_72, %c0_73] : memref<9x128x128xbf16, #tpu.memory_space<vmem>>, vector<1x128x128xbf16>
    %127 = vector.shape_cast %126 : vector<1x128x128xbf16> to vector<128x128xbf16>
    %cst_74 = arith.constant dense<0.000000e+00> : vector<256x128xf32>
    %128 = tpu.matmul %125, %127, %cst_74 {dimension_numbers = #tpu.dot_dimension_numbers<[1], [0], [0], [1], [0, 0, 1, 1], [], []>} : vector<256x128xbf16>, vector<128x128xbf16>, vector<256x128xf32> -> vector<256x128xf32>
    %129 = arith.addf %123, %128 : vector<256x128xf32>
    %130 = vector.shape_cast %129 : vector<256x128xf32> to vector<16x16x128xf32>
    %c0_75 = arith.constant 0 : index
    %c0_76 = arith.constant 0 : index
    %c0_77 = arith.constant 0 : index
    %c0_78 = arith.constant 0 : index
    %131 = vector.load %arg6[%c0_75, %c0_76, %c0_77, %c0_78] : memref<1x16x16x128xf32, #tpu.memory_space<vmem>>, vector<1x16x16x128xf32>
    %132 = vector.shape_cast %131 : vector<1x16x16x128xf32> to vector<16x16x128xf32>
    %133 = vector.shape_cast %130 : vector<16x16x128xf32> to vector<1x16x16x128xf32>
    tpu.vector_store %arg6[%c0_75, %c0_76, %c0_77, %c0_78], %133 {strides = array<i32>} : memref<1x16x16x128xf32, #tpu.memory_space<vmem>>, vector<1x16x16x128xf32>,
    return
  }
  func.func @transform_0(%arg0: i32) -> (i32, i32, i32, i32) {
    %c0_i32 = arith.constant 0 : i32
    %c0_i32_0 = arith.constant 0 : i32
    %c0_i32_1 = arith.constant 0 : i32
    %c0_i32_2 = arith.constant 0 : i32
    return %arg0, %c0_i32, %c0_i32_0, %c0_i32_1 : i32, i32, i32, i32
  }
  func.func @transform_1(%arg0: i32) -> (i32, i32, i32) {
    %c0_i32 = arith.constant 0 : i32
    %c0_i32_0 = arith.constant 0 : i32
    %c0_i32_1 = arith.constant 0 : i32
    %c0_i32_2 = arith.constant 0 : i32
    return %c0_i32, %c0_i32_0, %c0_i32_1 : i32, i32, i32
  }
  func.func @transform_2(%arg0: i32) -> (i32, i32) {
    %c0_i32 = arith.constant 0 : i32
    %c0_i32_0 = arith.constant 0 : i32
    %c0_i32_1 = arith.constant 0 : i32
    return %c0_i32, %c0_i32_0 : i32, i32
  }
  func.func @transform_3(%arg0: i32) -> (i32, i32, i32) {
    %c0_i32 = arith.constant 0 : i32
    %c0_i32_0 = arith.constant 0 : i32
    %c0_i32_1 = arith.constant 0 : i32
    %c0_i32_2 = arith.constant 0 : i32
    return %c0_i32, %c0_i32_0, %c0_i32_1 : i32, i32, i32
  }
  func.func @transform_4(%arg0: i32) -> (i32, i32) {
    %c0_i32 = arith.constant 0 : i32
    %c0_i32_0 = arith.constant 0 : i32
    %c0_i32_1 = arith.constant 0 : i32
    return %c0_i32, %c0_i32_0 : i32, i32
  }
  func.func @transform_5(%arg0: i32) -> (i32, i32, i32, i32) {
    %c0_i32 = arith.constant 0 : i32
    %c0_i32_0 = arith.constant 0 : i32
    %c0_i32_1 = arith.constant 0 : i32
    %c0_i32_2 = arith.constant 0 : i32
    return %arg0, %c0_i32, %c0_i32_0, %c0_i32_1 : i32, i32, i32, i32
  }
}

</mosaic_0001>

<bundles_post_ra>
// kernel: tpu_custom_call.1
= control target key start
LH: loop header
LB: loop body
LE: loop exit
PB: predicated region body
PF: predicated region fallthrough
CT: control target
= control target key end

     0   :  { %10 = vsyncpa [#allocation3], 0  ;;  %s7949_s0 = inlined_call_operand.hbm [shape: bf16[2,16,16,128], index: 0, kind: input, shape index: {}]   ;;  %s7950_s1 = inlined_call_operand.hbm [shape: bf16[9,128,128], index: 1, kind: input, shape index: {}]   ;;  %s7951_s2 = inlined_call_operand.vmem [shape: f32[1,128], index: 2, kind: input, shape index: {}]   ;;  %s7952_s3 = inlined_call_operand.hbm [shape: bf16[9,128,128], index: 3, kind: input, shape index: {}]   ;;  %s7953_s4 = inlined_call_operand.vmem [shape: f32[1,128], index: 4, kind: input, shape index: {}]   ;;  %s7954_s5 = inlined_call_operand.hbm [shape: f32[2,16,16,128], index: 5, kind: output, shape index: {}]  }
   0x1   :  { %12 = vsyncpa [#allocation3 + $0x1], 0 }
   0x2   :  { %13 = vsyncpa [#allocation6], 0 }
   0x3   :  { %14 = vsyncpa [#allocation4], 0 }
   0x4   :  { %16 = vsyncpa [#allocation4 + $0x1], 0  ;;  %s6198_s18 = smov 0   ;;  %s6200_s19 = smov 0  }
   0x5   :  { %s6202_s20 = smov 0   ;;  %s6204_s21 = smov 0  }
   0x6 LB: > { %s6219_s22 = sadd.s32 4294967295, %s6159_s21   ;;  %s5088_s23 = sadd.s32 4294967294, %s6159_s21   ;;  %s6159_s21 = sphi %s6204_s21, %s8216_s21   ;;  %s6155_s20 = sphi %s6202_s20, %s8215_s20   ;;  %s6151_s19 = sphi %s6200_s19, %s8214_s19   ;;  %s6147_s18 = sphi %s6198_s18, %s8213_s18  }
   0x7   : > { %p42_p0 = scmp.ne.s32.totalorder %s6151_s19, %s6147_s18  ;;  %p43_p1 = scmp.eq.s32.totalorder %s6219_s22, 0 }
   0x8   : > { %p150_p2 = scmp.eq.s32.totalorder %s6219_s22, 1  ;;  %p156_p3 = scmp.eq.s32.totalorder %s5088_s23, 1 }
   0x9   : > { %p6228_p4 = por %p43_p1, %p42_p0  ;;  %p5089_p5 = scmp.ge.s32.totalorder %s6159_s21, 1 }
   0xa   : > { %p6233_p6 = por %p156_p3, %p42_p0  ;;  %p163_p7 = scmp.lt.s32.totalorder %s6159_s21, 3 }
   0xb   : > { %s174_s28 = sshll.u32 %s7950_s1, 4  ;;  %s6161_s30 = smov [#allocation5]   ;;  %s175_s28 = int_to_ptr.hbm [resolvable:$true] %s174_s28 }
   0xc   : > { %p6241_p8 = pnand %p5089_p5, %p163_p7  ;;  %s176_s6 = sshll.u32 %s6161_s30, 4  ;;  %s177_s6 = int_to_ptr.vmem [resolvable:$true] %s176_s6 }
   0xd   : > { %s191_s9 = sshll.u32 %s7952_s3, 4  ;;  %s7955_s10 = smov 64   ;;  %s192_s9 = int_to_ptr.hbm [resolvable:$true] %s191_s9 }
   0xe   : > { %p5936_p9 = pneg %p6241_p8  ;;  %s6163_s11 = smov 4  }
   0xf   : > { %s6164_s12 = smov [#allocation7]   ;;  %s6260_s14 = sadd.s32 1, %s6159_s21  }
  0x10   : > { %p5937_p10 = pnand %p5936_p9, %p43_p1  ;;  %s193_s13 = sshll.u32 %s6164_s12, 4  ;;  %s194_s13 = int_to_ptr.vmem [resolvable:$true] %s193_s13 }
  0x11   : > { %s29_s15 = sadd.s32 1, %s6155_s20  ;;  %s26_s16 = ssub.s32 %s6159_s21, %s6260_s14 }
  0x12   : > { %5939 = dma.hbm_to_vmem [thread:$0]  (!%p5937_p10), %s175_s28, 9216, %s177_s6, [#allocation6], %s7955_s10, %s7955_s10, %s6163_s11  }
  0x13   : > { %5942 = dma.hbm_to_vmem [thread:$0]  (!%p5937_p10), %s192_s9, 9216, %s194_s13, [#allocation6], %s7955_s10, %s7955_s10, %s6163_s11  }
  0x14   : > { %p36_p12 = scmp.ne.s32.totalorder %s6155_s20, %s6151_s19  ;;  %p27_p13 = scmp.eq.s32.totalorder %s26_s16, 0 }
  0x15   : > { %p37_p0 = scmp.eq.s32.totalorder %s6159_s21, 0  ;;  %p5953_p5 = scmp.lt.s32.totalorder %s6159_s21, 2 }
  0x16   : > { %p6270_p3 = por %p150_p2, %p36_p12  ;;  %s210_s26 = sand.u32 1, %s6155_s20  }
  0x17   : > { %s6276_s23 = scalar_select %p27_p13, %s6155_s20, %s29_s15  }
  0x18   : > { %p38_p7 = por %p37_p0, %p36_p12  ;;  %s5093_s27 = sshll.u32 %s210_s26, 7 }
  0x19   : > { %s5746_s28 = sshll.u32 %s6159_s21, 7  ;;  %s214_s8 = scalar_lea.vmem [#allocation2], %s5093_s27 }
  0x1a   : > { %s219_s7 = scalar_lea.hbm %s7949_s0, %s5746_s28  ;;  %s222_s9 = sshll.u32 %s214_s8, 4  ;;  %s223_s9 = int_to_ptr.vmem [resolvable:$true] %s222_s9 }
  0x1b   : > { %s220_s12 = sshll.u32 %s219_s7, 4  ;;  %p6283_p2 = pnand %p5953_p5, %p38_p7  ;;  %s221_s12 = int_to_ptr.hbm [resolvable:$true] %s220_s12 }
  0x1c   : > { %s211_s15 = scalar_lea.sflag [#allocation3], %s210_s26  ;;  %s6059_s16 = sshra.s32 %s221_s12, 4  ;;  %s6060_s16 = int_to_ptr.hbm [resolvable:$true] %s6059_s16 }
  0x1d   : > { %s6061_s10 = scalar_lea.hbm %s6060_s16, 128  ;;  %p6063_p10 = pneg %p6283_p2 }
  0x1e   : > { %p6062_p9 = scmp.ne.s32.totalorder %s6060_s16, %s6061_s10  ;;  %s6066_s30 = scalar_lea.hbm %s7949_s0, 256 }
  0x1f   : > { %p6067_p0 = scmp.lt.s32.totalorder %s6060_s16, %s7949_s0  ;;  %p6068_p5 = scmp.lt.s32.totalorder %s6066_s30, %s6061_s10 }
  0x20   : > { %p6064_p12 = pnand %p6063_p10, %p6062_p9 }
  0x21   : > { %p6069_p7 = por %p6068_p5, %p6067_p0 }
  0x22   : > { %p6065_p13 = pneg %p6064_p12 }
  0x24   : > { %p6070_p11 = pnand %p6069_p7, %p6065_p13 }
  0x26   : > { %6073 = shalt.err (!%p6070_p11)
}
  0x27   : > { %s8031_s26 = smov 64   ;;  %234 = sbr.rel (%p6241_p8) target bundleno = 1503 (0x5df), region = 40 }
  0x28   : > { %5946 = dma.hbm_to_vmem [thread:$0]  (!%p6283_p2), %s221_s12, 2048, %s223_s9, %s211_s15, %s8031_s26, %s8031_s26, %s6163_s11  }
  0x2c   : > { %s6303_s8 = sand.u32 1, %s6151_s19  }
  0x2d   : > { %s5097_s16 = sshll.u32 %s6303_s8, 7  ;;  %s237_s10 = scalar_lea.sflag [#allocation3], %s6303_s8 }
  0x2e   : > { %s6307_s28 = scalar_lea.vmem [#allocation2], %s5097_s16 }
  0x2f   : > { %6134 = dma.done.wait (%p6228_p4), %s237_s10, 2048  }
  0x30   : > { %6136 = vsyncadd (%p6228_p4), %s237_s10, 4294965248 }
  0x31   : > { %6138 = dma.done.wait (%p43_p1), [#allocation6], 18432  }
  0x32   : > { %6140 = vsyncadd (%p43_p1), [#allocation6], 4294948864  ;;  %v5770_v0 = vld [vmem:[#allocation5 + $0x38] sm:$0xff]  ;;  %v5769_v2 = vld [vmem:[#allocation5 + $0x30] sm:$0xff]  ;;  %vm548_vm0 = vcmask 1040384   ;;  %v6165_v13 = vmov 0  }
  0x33   : > { %v5778_v1 = vld [vmem:[#allocation5 + $0x78] sm:$0xff]  ;;  %649 = vmatpush.bf16.msra.mxu0 %v5770_v0  ;;  %5908 = vmatpush.bf16.msra.mxu2 %v5770_v0  ;;  %v5777_v3 = vld [vmem:[#allocation5 + $0x70] sm:$0xff]  ;;  %v5768_v5 = vld [vmem:[#allocation5 + $0x28] sm:$0xff]  ;;  %vm549_vm1 = vsmask.f32 256  ;;  %v398_v14 = vrot.slane %v6165_v13, 7 }
  0x34   : > { %5916 = vmatpush.bf16.msra.mxu3 %v5778_v1  ;;  %1044 = vmatpush.bf16.msra.mxu1 %v5778_v1  ;;  %v5754_v4 = vld [vmem:[%s6307_s28 + $0x38] sm:$0xff]  ;;  %v5776_v6 = vld [vmem:[#allocation5 + $0x68] sm:$0xff]  ;;  %v5767_v10 = vld [vmem:[#allocation5 + $0x20] sm:$0xff]  ;;  %vm770_vm3 = vsmask.f32 7424  ;;  %vm1197_vm4 = vcmask 1046528  }
  0x35   : > { %v452_v7 = vshrl.u32 %v5754_v4, 16  ;;  %v455_v8 = vshll.u32 %v5754_v4, 16  ;;  %v5775_v11 = vld [vmem:[#allocation5 + $0x60] sm:$0xff]  ;;  %vm6318_vm2 = vmand %vm548_vm0, %vm549_vm1  ;;  %v5766_v16 = vld [vmem:[#allocation5 + $0x18] sm:$0xff]  ;;  %s5100_s15 = sshll.u32 %s6303_s8, 8  ;;  %s5907_s30 = sshll.u32 %s6219_s22, 8 }
  0x36   : > { %v5774_v17 = vld [vmem:[#allocation5 + $0x58] sm:$0xff]  ;;  %v5755_v19 = vld [vmem:[%s6307_s28 + $0x40] sm:$0xff]  ;;  %v6329_v20 = vsel %vm6318_vm2, 0, %v398_v14  ;;  %v5765_v22 = vld [vmem:[#allocation5 + $0x10] sm:$0xff]  ;;  %v6340_v28 = vsel %vm6318_vm2, %v398_v14, 0  ;;  %s7842_s27 = scalar_lea.vmem [#allocation8], %s5100_s15  ;;  %s4992_s26 = scalar_lea.hbm %s7954_s5, %s5907_s30 }
  0x37   : > { %650 = vmatpush.bf16.msra.mxu0 %v5769_v2  ;;  %5909 = vmatpush.bf16.msra.mxu2 %v5769_v2  ;;  %v454_v9 = vrot.slane %v452_v7, 7  ;;  %8035 = vst [vmem:[#allocation13_spill] sm:$0xff] %v6329_v20  ;;  %v5747_v21 = vld [vmem:[%s6307_s28] sm:$0xff]  ;;  %v5773_v23 = vld [vmem:[#allocation5 + $0x50] sm:$0xff]  ;;  %v774_v26 = vshll.u32 %v6329_v20, 16  ;;  %v459_v27 = vshrl.u32 %v5755_v19, 16 }
  0x38   : > { %5917 = vmatpush.bf16.msra.mxu3 %v5777_v3  ;;  %1045 = vmatpush.bf16.msra.mxu1 %v5777_v3  ;;  %v403_v29 = vshrl.u32 %v5747_v21, 16  ;;  %v5764_v30 = vld [vmem:[#allocation5 + $0x8] sm:$0xff]  ;;  %v772_v35 = vshrl.u32 %v6329_v20, 16  ;;  %v779_v37 = vshll.u32 %v6340_v28, 16  ;;  %v462_v39 = vshll.u32 %v5755_v19, 16  ;;  %v5763_v42 = vld [vmem:[#allocation5] sm:$0xff] }
  0x39   : > { %v457_v12 = vor.u32 %v455_v8, %v454_v9  ;;  %v6335_v25 = vsel %vm6318_vm2, %v454_v9, 0  ;;  %v5772_v31 = vld [vmem:[#allocation5 + $0x48] sm:$0xff]  ;;  %v776_v36 = vrot.slane %v774_v26, 1  ;;  %v461_v38 = vrot.slane %v459_v27, 7  ;;  %v5771_v43 = vld [vmem:[#allocation5 + $0x40] sm:$0xff]  ;;  %v5786_v46 = vld [vmem:[#allocation5 + $0xb8] sm:$0xff] }
  0x3a   : > { %v875_v34 = vshll.u32 %v6335_v25, 16  ;;  %v405_v40 = vrot.slane %v403_v29, 7  ;;  %v406_v41 = vshll.u32 %v5747_v21, 16  ;;  %v5794_v47 = vld [vmem:[#allocation5 + $0xf8] sm:$0xff]  ;;  %v781_v49 = vrot.slane %v779_v37, 1  ;;  %v5785_v54 = vld [vmem:[#allocation5 + $0xb0] sm:$0xff] }
  0x3b   : > { %651 = vmatpush.bf16.msra.mxu0 %v5768_v5  ;;  %5910 = vmatpush.bf16.msra.mxu2 %v5768_v5  ;;  %v6324_v18 = vsel %vm6318_vm2, 0, %v457_v12  ;;  %v777_v48 = vor.u32 %v776_v36, %v772_v35  ;;  %v464_v50 = vor.u32 %v462_v39, %v461_v38  ;;  %v5802_v52 = vld [vmem:[#allocation5 + $0x138] sm:$0xff]  ;;  %v5793_v57 = vld [vmem:[#allocation5 + $0xf0] sm:$0xff]  ;;  %v5756_v58 = vld [vmem:[%s6307_s28 + $0x48] sm:$0xff]  ;;  %v6369_v0 = vsel %vm6318_vm2, %v461_v38, 0  ;;  %s4993_s16 = sshll.u32 %s7842_s27, 4  ;;  %s4994_s16 = int_to_ptr.vmem [resolvable:$true] %s4993_s16 }
  0x3c   : > { %5918 = vmatpush.bf16.msra.mxu3 %v5776_v6  ;;  %1046 = vmatpush.bf16.msra.mxu1 %v5776_v6  ;;  %8034 = vst [vmem:[#allocation12_spill] sm:$0xff] %v6324_v18  ;;  %v870_v24 = vshll.u32 %v6324_v18, 16  ;;  %v868_v32 = vshrl.u32 %v6324_v18, 16  ;;  %v877_v45 = vrot.slane %v875_v34, 1  ;;  %v408_v51 = vor.u32 %v406_v41, %v405_v40  ;;  %v5748_v60 = vld [vmem:[%s6307_s28 + $0x8] sm:$0xff]  ;;  %v5801_v61 = vld [vmem:[#allocation5 + $0x130] sm:$0xff] }
  0x3d   : > { %v6350_v55 = vsel %vm770_vm3, %v777_v48, %v781_v49  ;;  %v6354_v56 = vsel %vm6318_vm2, 0, %v464_v50  ;;  %v5784_v63 = vld [vmem:[#allocation5 + $0xa8] sm:$0xff]  ;;  %v466_v2 = vshrl.u32 %v5756_v58, 16  ;;  %v6374_v4 = vsel %vm6318_vm2, %v405_v40, 0  ;;  %v5783_v34 = vld [vmem:[#allocation5 + $0xa0] sm:$0xff]  ;;  %s4995_s10 = sshll.u32 %s4992_s26, 4  ;;  %s4996_s10 = int_to_ptr.hbm [resolvable:$true] %s4995_s10 }
  0x3e   : > { %v872_v33 = vrot.slane %v870_v24, 1  ;;  %8037 = vst [vmem:[#allocation15_spill] sm:$0xff] %v6350_v55  ;;  %v6361_v59 = vsel %vm6318_vm2, 0, %v408_v51  ;;  %v882_v62 = vshll.u32 %v6354_v56, 16  ;;  %v5792_v3 = vld [vmem:[#allocation5 + $0xe8] sm:$0xff]  ;;  %v410_v5 = vshrl.u32 %v5748_v60, 16 }
  0x3f   : > { %652 = vmatpush.bf16.msra.mxu0 %v5767_v10  ;;  %5911 = vmatpush.bf16.msra.mxu2 %v5767_v10  ;;  %8038 = vst [vmem:[#allocation16_spill] sm:$0xff] %v6354_v56  ;;  %v786_v1 = vshll.u32 %v6361_v59, 16  ;;  %v5800_v6 = vld [vmem:[#allocation5 + $0x128] sm:$0xff]  ;;  %v880_v7 = vshrl.u32 %v6354_v56, 16  ;;  %v887_v9 = vshll.u32 %v6369_v0, 16  ;;  %v784_v10 = vshrl.u32 %v6361_v59, 16 }
  0x40   : > { %5919 = vmatpush.bf16.msra.mxu3 %v5775_v11  ;;  %1047 = vmatpush.bf16.msra.mxu1 %v5775_v11  ;;  %v873_v44 = vor.u32 %v872_v33, %v868_v32  ;;  %v884_v8 = vrot.slane %v882_v62, 1  ;;  %v791_v12 = vshll.u32 %v6374_v4, 16  ;;  %v468_v13 = vrot.slane %v466_v2, 7  ;;  %v5749_v33 = vld [vmem:[%s6307_s28 + $0x10] sm:$0xff]  ;;  %v5791_v35 = vld [vmem:[#allocation5 + $0xe0] sm:$0xff]  ;;  %s4981_s22 = scalar_lea.sflag [#allocation4], %s6303_s8 }
  0x41   : > { %v788_v11 = vrot.slane %v786_v1, 1  ;;  %v469_v14 = vshll.u32 %v5756_v58, 16  ;;  %v889_v21 = vrot.slane %v887_v9, 1  ;;  %v5799_v37 = vld [vmem:[#allocation5 + $0x120] sm:$0xff]  ;;  %s6109_s9 = scalar_lea.hbm %s7954_s5, 512 }
  0x42   : > { %v6347_v53 = vsel %vm770_vm3, %v873_v44, %v877_v45  ;;  %v885_v19 = vor.u32 %v884_v8, %v880_v7  ;;  %v6403_v38 = vsel %vm6318_vm2, %v468_v13, 0  ;;  %v5782_v7 = vld [vmem:[#allocation5 + $0x98] sm:$0xff] }
  0x43   : > { %653 = vmatpush.bf16.msra.mxu0 %v5766_v16  ;;  %5912 = vmatpush.bf16.msra.mxu2 %v5766_v16  ;;  %8036 = vst [vmem:[#allocation14_spill] sm:$0xff] %v6347_v53  ;;  %v412_v16 = vrot.slane %v410_v5, 7  ;;  %v471_v24 = vor.u32 %v469_v14, %v468_v13  ;;  %v899_v45 = vshll.u32 %v6403_v38, 16  ;;  %v5790_v8 = vld [vmem:[#allocation5 + $0xd8] sm:$0xff] }
  0x44   : > { %5920 = vmatpush.bf16.msra.mxu3 %v5774_v17  ;;  %1048 = vmatpush.bf16.msra.mxu1 %v5774_v17  ;;  %v413_v17 = vshll.u32 %v5748_v60, 16  ;;  %v6381_v27 = vsel %vm770_vm3, %v885_v19, %v889_v21 }
  0x45   : > { %8039 = vst [vmem:[#allocation17_spill] sm:$0xff] %v6381_v27  ;;  %v6408_v41 = vsel %vm6318_vm2, %v412_v16, 0 }
  0x46   : > { %v415_v26 = vor.u32 %v413_v17, %v412_v16  ;;  %v803_v48 = vshll.u32 %v6408_v41, 16 }
  0x47   : > { %654 = vmatpush.bf16.msra.mxu0 %v5765_v22  ;;  %5913 = vmatpush.bf16.msra.mxu2 %v5765_v22  ;;  %v789_v22 = vor.u32 %v788_v11, %v784_v10  ;;  %v5798_v10 = vld [vmem:[#allocation5 + $0x118] sm:$0xff] }
  0x48   : > { %5921 = vmatpush.bf16.msra.mxu3 %v5773_v23  ;;  %1049 = vmatpush.bf16.msra.mxu1 %v5773_v23  ;;  %v793_v23 = vrot.slane %v791_v12, 1  ;;  %v6395_v32 = vsel %vm6318_vm2, 0, %v415_v26  ;;  %v805_v60 = vrot.slane %v803_v48, 1  ;;  %v5751_v48 = vld [vmem:[%s6307_s28 + $0x20] sm:$0xff] }
  0x49   : > { %v798_v39 = vshll.u32 %v6395_v32, 16 }
  0x4a   : > { %v6384_v29 = vsel %vm770_vm3, %v789_v22, %v793_v23 }
  0x4b   : > { %655 = vmatpush.bf16.msra.mxu0 %v5764_v30  ;;  %5914 = vmatpush.bf16.msra.mxu2 %v5764_v30  ;;  %v6388_v30 = vsel %vm6318_vm2, 0, %v471_v24 }
  0x4c   : > { %5922 = vmatpush.bf16.msra.mxu3 %v5772_v31  ;;  %1050 = vmatpush.bf16.msra.mxu1 %v5772_v31  ;;  %v5757_v31 = vld [vmem:[%s6307_s28 + $0x50] sm:$0xff]  ;;  %v894_v36 = vshll.u32 %v6388_v30, 16 }
  0x4d   : > { %v473_v40 = vshrl.u32 %v5757_v31, 16  ;;  %v476_v50 = vshll.u32 %v5757_v31, 16 }
  0x4e   : > { %v896_v44 = vrot.slane %v894_v36, 1 }
  0x4f   : > { %656 = vmatpush.bf16.msra.mxu0 %v5763_v42  ;;  %5915 = vmatpush.bf16.msra.mxu2 %v5763_v42  ;;  %v417_v42 = vshrl.u32 %v5749_v33, 16  ;;  %v475_v49 = vrot.slane %v473_v40, 7 }
  0x50   : > { %5923 = vmatpush.bf16.msra.mxu3 %v5771_v43  ;;  %1051 = vmatpush.bf16.msra.mxu1 %v5771_v43  ;;  %v892_v43 = vshrl.u32 %v6388_v30, 16 }
  0x51   : > { %v419_v51 = vrot.slane %v417_v42, 7  ;;  %v6437_v11 = vsel %vm6318_vm2, %v475_v49, 0 }
  0x52   : > { %657 = vmatmul.bf16.vlgmr.msra.gmra.mxu0 %v6329_v20  ;;  %697 = vmatmul.bf16.vlgmr.msra.gmra.mxu2 %v6324_v18  ;;  %v911_v21 = vshll.u32 %v6437_v11, 16 }
  0x53   : > { %1327 = vmatpush.bf16.msrb.mxu2 %v5786_v46  ;;  %1092 = vmatmul.bf16.vlgmr.msra.gmra.mxu3 %v6347_v53  ;;  %v796_v46 = vshrl.u32 %v6395_v32, 16  ;;  %v6442_v14 = vsel %vm6318_vm2, %v419_v51, 0 }
  0x54   : > { %1513 = vmatpush.bf16.msrb.mxu3 %v5794_v47  ;;  %1712 = vmatpush.bf16.msrb.mxu0 %v5802_v52  ;;  %v800_v47 = vrot.slane %v798_v39, 1  ;;  %v420_v52 = vshll.u32 %v5749_v33, 16  ;;  %v815_v24 = vshll.u32 %v6442_v14, 16  ;;  %v913_v36 = vrot.slane %v911_v21, 1 }
  0x55   : > { %1052 = vmatmul.bf16.vlgmr.msra.gmra.mxu1 %v6350_v55  ;;  %v5806_v55 = vld [vmem:[#allocation5 + $0x158] sm:$0xff] }
  0x56   : > { %v801_v58 = vor.u32 %v800_v47, %v796_v46  ;;  %v422_v62 = vor.u32 %v420_v52, %v419_v51  ;;  %v817_v39 = vrot.slane %v815_v24, 1  ;;  %v5759_v46 = vld [vmem:[%s6307_s28 + $0x60] sm:$0xff]  ;;  %v5797_v52 = vld [vmem:[#allocation5 + $0x110] sm:$0xff] }
  0x57   : > { %1328 = vmatpush.bf16.msrb.mxu2 %v5785_v54  ;;  %v897_v54 = vor.u32 %v896_v44, %v892_v43 }
  0x58   : > { %1514 = vmatpush.bf16.msrb.mxu3 %v5793_v57  ;;  %1713 = vmatpush.bf16.msrb.mxu0 %v5801_v61  ;;  %v901_v57 = vrot.slane %v899_v45, 1  ;;  %v478_v61 = vor.u32 %v476_v50, %v475_v49  ;;  %v6418_v1 = vsel %vm770_vm3, %v801_v58, %v805_v60  ;;  %v6429_v5 = vsel %vm6318_vm2, 0, %v422_v62  ;;  %v5781_v49 = vld [vmem:[#allocation5 + $0x90] sm:$0xff] }
  0x59   : > { %v810_v12 = vshll.u32 %v6429_v5, 16  ;;  %v808_v22 = vshrl.u32 %v6429_v5, 16  ;;  %v5789_v50 = vld [vmem:[#allocation5 + $0xd0] sm:$0xff]  ;;  %v487_v58 = vshrl.u32 %v5759_v46, 16 }
  0x5a   : > { %v6422_v2 = vsel %vm6318_vm2, 0, %v478_v61  ;;  %v431_v61 = vshrl.u32 %v5751_v48, 16 }
  0x5b   : > { %1329 = vmatpush.bf16.msrb.mxu2 %v5784_v63  ;;  %v6415_v63 = vsel %vm770_vm3, %v897_v54, %v901_v57  ;;  %v906_v9 = vshll.u32 %v6422_v2, 16  ;;  %v904_v17 = vshrl.u32 %v6422_v2, 16  ;;  %v812_v23 = vrot.slane %v810_v12, 1 }
  0x5c   : > { %1515 = vmatpush.bf16.msrb.mxu3 %v5792_v3  ;;  %1714 = vmatpush.bf16.msrb.mxu0 %v5800_v6  ;;  %v5758_v3 = vld [vmem:[%s6307_s28 + $0x58] sm:$0xff]  ;;  %v490_v12 = vshll.u32 %v5759_v46, 16 }
  0x5d   : > { %v5750_v6 = vld [vmem:[%s6307_s28 + $0x18] sm:$0xff]  ;;  %v480_v13 = vshrl.u32 %v5758_v3, 16  ;;  %v908_v19 = vrot.slane %v906_v9, 1  ;;  %v483_v31 = vshll.u32 %v5758_v3, 16 }
  0x5e   : > { %v424_v16 = vshrl.u32 %v5750_v6, 16  ;;  %v5810_v46 = vld [vmem:[#allocation5 + $0x178] sm:$0xff] }
  0x5f   : > { %1330 = vmatpush.bf16.msrb.mxu2 %v5783_v34  ;;  %v482_v26 = vrot.slane %v480_v13, 7  ;;  %v427_v34 = vshll.u32 %v5750_v6, 16  ;;  %v433_v13 = vrot.slane %v431_v61, 7  ;;  %1904 = vmatpush.bf16.msrb.mxu1 %v5810_v46 }
  0x60   : > { %1516 = vmatpush.bf16.msrb.mxu3 %v5791_v35  ;;  %1715 = vmatpush.bf16.msrb.mxu0 %v5799_v37  ;;  %v426_v33 = vrot.slane %v424_v16, 7  ;;  %v909_v35 = vor.u32 %v908_v19, %v904_v17  ;;  %v813_v37 = vor.u32 %v812_v23, %v808_v22  ;;  %v434_v16 = vshll.u32 %v5751_v48, 16 }
  0x61   : > { %v485_v40 = vor.u32 %v483_v31, %v482_v26  ;;  %v6471_v54 = vsel %vm6318_vm2, %v482_v26, 0 }
  0x62   : > { %662 = vmatmul.bf16.gmra.mxu0 %v6361_v59  ;;  %702 = vmatmul.bf16.gmra.mxu2 %v6354_v56  ;;  %v429_v42 = vor.u32 %v427_v34, %v426_v33  ;;  %v6449_v43 = vsel %vm770_vm3, %v909_v35, %v913_v36  ;;  %v6452_v44 = vsel %vm770_vm3, %v813_v37, %v817_v39  ;;  %v6476_v60 = vsel %vm6318_vm2, %v426_v33, 0  ;;  %v5760_v34 = vld [vmem:[%s6307_s28 + $0x68] sm:$0xff] }
  0x63   : > { %1097 = vmatmul.bf16.gmra.mxu3 %v6381_v27  ;;  %1331 = vmatpush.bf16.msrb.mxu2 %v5782_v7  ;;  %8040 = vst [vmem:[#allocation18_spill] sm:$0xff] %v6452_v44  ;;  %v6456_v45 = vsel %vm6318_vm2, 0, %v485_v40  ;;  %v923_v6 = vshll.u32 %v6471_v54, 16  ;;  %v827_v9 = vshll.u32 %v6476_v60, 16  ;;  %v436_v24 = vor.u32 %v434_v16, %v433_v13  ;;  %v5752_v36 = vld [vmem:[%s6307_s28 + $0x28] sm:$0xff] }
  0x64   : > { %1517 = vmatpush.bf16.msrb.mxu3 %v5790_v8  ;;  %1716 = vmatpush.bf16.msrb.mxu0 %v5798_v10  ;;  %v6463_v47 = vsel %vm6318_vm2, 0, %v429_v42  ;;  %v918_v51 = vshll.u32 %v6456_v45, 16  ;;  %v916_v62 = vshrl.u32 %v6456_v45, 16  ;;  %v489_v10 = vrot.slane %v487_v58, 7  ;;  %v5780_v37 = vld [vmem:[#allocation5 + $0x88] sm:$0xff] }
  0x65   : > { %1057 = vmatmul.bf16.gmra.mxu1 %v6384_v29  ;;  %8041 = vst [vmem:[#allocation19_spill] sm:$0xff] %v6463_v47  ;;  %v822_v57 = vshll.u32 %v6463_v47, 16  ;;  %v820_v7 = vshrl.u32 %v6463_v47, 16  ;;  %v925_v19 = vrot.slane %v923_v6, 1  ;;  %v829_v22 = vrot.slane %v827_v9, 1  ;;  %v5788_v39 = vld [vmem:[#allocation5 + $0xc8] sm:$0xff] }
  0x66   : > { %v920_v3 = vrot.slane %v918_v51, 1  ;;  %v492_v23 = vor.u32 %v490_v12, %v489_v10  ;;  %v6497_v35 = vsel %vm6318_vm2, 0, %v436_v24  ;;  %v5796_v42 = vld [vmem:[#allocation5 + $0x108] sm:$0xff]  ;;  %v6505_v48 = vsel %vm6318_vm2, %v489_v10, 0 }
  0x67   : > { %1332 = vmatpush.bf16.msrb.mxu2 %v5781_v49  ;;  %v824_v8 = vrot.slane %v822_v57, 1  ;;  %8043 = vst [vmem:[#allocation21_spill] sm:$0xff] %v6497_v35  ;;  %v834_v49 = vshll.u32 %v6497_v35, 16  ;;  %v6510_v51 = vsel %vm6318_vm2, %v433_v13, 0  ;;  %v935_v61 = vshll.u32 %v6505_v48, 16 }
  0x68   : > { %1518 = vmatpush.bf16.msrb.mxu3 %v5789_v50  ;;  %1717 = vmatpush.bf16.msrb.mxu0 %v5797_v52  ;;  %v921_v17 = vor.u32 %v920_v3, %v916_v62  ;;  %v6490_v33 = vsel %vm6318_vm2, 0, %v492_v23  ;;  %v494_v50 = vshrl.u32 %v5760_v34, 16  ;;  %v438_v52 = vshrl.u32 %v5752_v36, 16 }
  0x69   : > { %v825_v21 = vor.u32 %v824_v8, %v820_v7  ;;  %v930_v40 = vshll.u32 %v6490_v33, 16  ;;  %v928_v57 = vshrl.u32 %v6490_v33, 16  ;;  %v832_v62 = vshrl.u32 %v6497_v35, 16 }
  0x6a   : > { %v6483_v26 = vsel %vm770_vm3, %v921_v17, %v925_v19  ;;  %v836_v3 = vrot.slane %v834_v49, 1  ;;  %v839_v6 = vshll.u32 %v6510_v51, 16  ;;  %v496_v7 = vrot.slane %v494_v50, 7  ;;  %v5795_v49 = vld [vmem:[#allocation5 + $0x100] sm:$0xff] }
  0x6b   : > { %v6486_v31 = vsel %vm770_vm3, %v825_v21, %v829_v22  ;;  %1333 = vmatpush.bf16.msrb.mxu2 %v5780_v37  ;;  %v932_v58 = vrot.slane %v930_v40, 1  ;;  %v497_v8 = vshll.u32 %v5760_v34, 16  ;;  %v440_v9 = vrot.slane %v438_v52, 7  ;;  %v5761_v34 = vld [vmem:[%s6307_s28 + $0x70] sm:$0xff]  ;;  %v5779_v40 = vld [vmem:[#allocation5 + $0x80] sm:$0xff] }
  0x6c   : > { %8042 = vst [vmem:[#allocation20_spill] sm:$0xff] %v6486_v31  ;;  %1519 = vmatpush.bf16.msrb.mxu3 %v5788_v39  ;;  %1718 = vmatpush.bf16.msrb.mxu0 %v5796_v42  ;;  %v441_v10 = vshll.u32 %v5752_v36, 16  ;;  %v937_v13 = vrot.slane %v935_v61, 1  ;;  %v837_v16 = vor.u32 %v836_v3, %v832_v62  ;;  %v841_v17 = vrot.slane %v839_v6, 1  ;;  %v5753_v37 = vld [vmem:[%s6307_s28 + $0x30] sm:$0xff]  ;;  %v5787_v42 = vld [vmem:[#allocation5 + $0xc0] sm:$0xff] }
  0x6d   : > { %v933_v12 = vor.u32 %v932_v58, %v928_v57  ;;  %v499_v19 = vor.u32 %v497_v8, %v496_v7  ;;  %v5809_v39 = vld [vmem:[#allocation5 + $0x170] sm:$0xff]  ;;  %v6539_v50 = vsel %vm6318_vm2, %v496_v7, 0  ;;  %v501_v57 = vshrl.u32 %v5761_v34, 16  ;;  %v5808_v58 = vld [vmem:[#allocation5 + $0x168] sm:$0xff] }
  0x6e   : > { %v443_v21 = vor.u32 %v441_v10, %v440_v9  ;;  %v6520_v23 = vsel %vm770_vm3, %v837_v16, %v841_v17  ;;  %8046 = vst [vmem:[#allocation24_spill] sm:$0xff] %v6539_v50  ;;  %1905 = vmatpush.bf16.msrb.mxu1 %v5809_v39  ;;  %v6544_v61 = vsel %vm6318_vm2, %v440_v9, 0  ;;  %v445_v62 = vshrl.u32 %v5753_v37, 16  ;;  %v5807_v17 = vld [vmem:[#allocation5 + $0x160] sm:$0xff] }
  0x6f   : > { %v6517_v22 = vsel %vm770_vm3, %v933_v12, %v937_v13  ;;  %8044 = vst [vmem:[#allocation22_spill] sm:$0xff] %v6520_v23  ;;  %v6524_v24 = vsel %vm6318_vm2, 0, %v499_v19  ;;  %1334 = vmatpush.bf16.msrb.mxu2 %v5779_v40  ;;  %v947_v8 = vshll.u32 %v6539_v50, 16  ;;  %v851_v12 = vshll.u32 %v6544_v61, 16 }
  0x70   : > { %v6531_v36 = vsel %vm6318_vm2, 0, %v443_v21  ;;  %v942_v46 = vshll.u32 %v6524_v24, 16  ;;  %1520 = vmatpush.bf16.msrb.mxu3 %v5787_v42  ;;  %1719 = vmatpush.bf16.msrb.mxu0 %v5795_v49  ;;  %v940_v3 = vshrl.u32 %v6524_v24, 16  ;;  %v503_v13 = vrot.slane %v501_v57, 7  ;;  %v5805_v57 = vld [vmem:[#allocation5 + $0x150] sm:$0xff] }
  0x71   : > { %8045 = vst [vmem:[#allocation23_spill] sm:$0xff] %v6531_v36  ;;  %v846_v52 = vshll.u32 %v6531_v36, 16  ;;  %v844_v7 = vshrl.u32 %v6531_v36, 16  ;;  %v504_v16 = vshll.u32 %v5761_v34, 16  ;;  %v447_v19 = vrot.slane %v445_v62, 7  ;;  %v5826_v62 = vld [vmem:[#allocation5 + $0x1f8] sm:$0xff] }
  0x72   : > { %667 = vmatmul.bf16.gmra.mxu0 %v6395_v32  ;;  %707 = vmatmul.bf16.gmra.mxu2 %v6388_v30  ;;  %v944_v6 = vrot.slane %v942_v46, 1  ;;  %v448_v9 = vshll.u32 %v5753_v37, 16  ;;  %v949_v39 = vrot.slane %v947_v8, 1  ;;  %v853_v42 = vrot.slane %v851_v12, 1 }
  0x73   : > { %1102 = vmatmul.bf16.gmra.mxu3 %v6415_v63  ;;  %v848_v10 = vrot.slane %v846_v52, 1  ;;  %1906 = vmatpush.bf16.msrb.mxu1 %v5808_v58  ;;  %v506_v49 = vor.u32 %v504_v16, %v503_v13  ;;  %v5818_v58 = vld [vmem:[#allocation5 + $0x1b8] sm:$0xff]  ;;  %v6576_v8 = vsel %vm6318_vm2, %v447_v19, 0 }
  0x74   : > { %v945_v21 = vor.u32 %v944_v6, %v940_v3  ;;  %v450_v46 = vor.u32 %v448_v9, %v447_v19  ;;  %2090 = vmatpush.bf16.msra.mxu2 %v5818_v58  ;;  %2276 = vmatpush.bf16.msra.mxu3 %v5826_v62  ;;  %v1198_v58 = vrot.slane %v6329_v20, 1  ;;  %v1199_v62 = vrot.slane %v6340_v28, 1 }
  0x75   : > { %1062 = vmatmul.bf16.gmra.mxu1 %v6418_v1  ;;  %v849_v40 = vor.u32 %v848_v10, %v844_v7  ;;  %v6558_v34 = vsel %vm6318_vm2, 0, %v506_v49  ;;  %v5804_v7 = vld [vmem:[#allocation5 + $0x148] sm:$0xff] }
  0x76   : > { %v6551_v50 = vsel %vm770_vm3, %v945_v21, %v949_v39  ;;  %v6564_v37 = vsel %vm6318_vm2, 0, %v450_v46  ;;  %v954_v3 = vshll.u32 %v6558_v34, 16  ;;  %v952_v10 = vshrl.u32 %v6558_v34, 16  ;;  %v5803_v21 = vld [vmem:[#allocation5 + $0x140] sm:$0xff]  ;;  %v5834_v39 = vld [vmem:[#allocation5 + $0x238] sm:$0xff] }
  0x77   : > { %1907 = vmatpush.bf16.msrb.mxu1 %v5807_v17  ;;  %v6554_v52 = vsel %vm770_vm3, %v849_v40, %v853_v42  ;;  %8048 = vst [vmem:[#allocation26_spill] sm:$0xff] %v6564_v37  ;;  %v858_v6 = vshll.u32 %v6564_v37, 16  ;;  %v856_v17 = vshrl.u32 %v6564_v37, 16  ;;  %2462 = vmatpush.bf16.msra.mxu0 %v5834_v39 }
  0x78   : > { %8047 = vst [vmem:[#allocation25_spill] sm:$0xff] %v6554_v52  ;;  %v956_v12 = vrot.slane %v954_v3, 1  ;;  %v1201_v3 = vrot.slane %v6361_v59, 1 }
  0x79   : > { %v860_v9 = vrot.slane %v858_v6, 1  ;;  %v1202_v6 = vrot.slane %v6374_v4, 1  ;;  %v5817_v4 = vld [vmem:[#allocation5 + $0x1b0] sm:$0xff] }
  0x7a   : > { %v957_v40 = vor.u32 %v956_v12, %v952_v10  ;;  %v6602_v12 = vsel %vm1197_vm4, %v1198_v58, %v1199_v62  ;;  %2091 = vmatpush.bf16.msra.mxu2 %v5817_v4  ;;  %v5833_v62 = vld [vmem:[#allocation5 + $0x230] sm:$0xff] }
  0x7b   : > { %1908 = vmatpush.bf16.msrb.mxu1 %v5806_v55  ;;  %v6571_v55 = vsel %vm6318_vm2, %v503_v13, 0  ;;  %v863_v13 = vshll.u32 %v6576_v8, 16  ;;  %v861_v19 = vor.u32 %v860_v9, %v856_v17  ;;  %8051 = vst [vmem:[#allocation29_spill] sm:$0xff] %v6602_v12  ;;  %v1203_v9 = vsel %vm1197_vm4, %v1201_v3, %v1202_v6  ;;  %2463 = vmatpush.bf16.msra.mxu0 %v5833_v62 }
  0x7c   : > { %v959_v16 = vshll.u32 %v6571_v55, 16  ;;  %v1204_v3 = vrot.slane %v6395_v32, 1  ;;  %v1205_v6 = vrot.slane %v6408_v41, 1 }
  0x7d   : > { %v865_v49 = vrot.slane %v863_v13, 1  ;;  %v5825_v13 = vld [vmem:[#allocation5 + $0x1f0] sm:$0xff] }
  0x7e   : > { %v961_v42 = vrot.slane %v959_v16, 1  ;;  %2277 = vmatpush.bf16.msra.mxu3 %v5825_v13 }
  0x7f   : > { %1909 = vmatpush.bf16.msrb.mxu1 %v5805_v57  ;;  %v6586_v57 = vsel %vm770_vm3, %v861_v19, %v865_v49 }
  0x80   : > { %v6583_v46 = vsel %vm770_vm3, %v957_v40, %v961_v42  ;;  %8050 = vst [vmem:[#allocation28_spill] sm:$0xff] %v6586_v57 }
  0x81   : > { %8049 = vst [vmem:[#allocation27_spill] sm:$0xff] %v6583_v46 }
  0x82   : > { %672 = vmatmul.bf16.gmra.mxu0 %v6429_v5  ;;  %712 = vmatmul.bf16.gmra.mxu2 %v6422_v2 }
  0x83   : > { %1107 = vmatmul.bf16.gmra.mxu3 %v6449_v43  ;;  %1910 = vmatpush.bf16.msrb.mxu1 %v5804_v7  ;;  %v6599_v7 = vld [vmem:[%s7951_s2] ss:$0 sm:$0xff] }
  0x85   : > { %1067 = vmatmul.bf16.gmra.mxu1 %v6452_v44 }
  0x87   : > { %1911 = vmatpush.bf16.msrb.mxu1 %v5803_v21 }
  0x92   : > { %677 = vmatmul.bf16.gmra.mxu0 %v6463_v47  ;;  %717 = vmatmul.bf16.gmra.mxu2 %v6456_v45 }
  0x93   : > { %1112 = vmatmul.bf16.gmra.mxu3 %v6483_v26 }
  0x95   : > { %1072 = vmatmul.bf16.gmra.mxu1 %v6486_v31 }
  0xa2   : > { %682 = vmatmul.bf16.gmra.mxu0 %v6497_v35  ;;  %722 = vmatmul.bf16.gmra.mxu2 %v6490_v33 }
  0xa3   : > { %1117 = vmatmul.bf16.gmra.mxu3 %v6517_v22 }
  0xa5   : > { %1077 = vmatmul.bf16.gmra.mxu1 %v6520_v23 }
  0xb2   : > { %687 = vmatmul.bf16.gmra.mxu0 %v6531_v36  ;;  %727 = vmatmul.bf16.gmra.mxu2 %v6524_v24 }
  0xb3   : > { %1122 = vmatmul.bf16.gmra.mxu3 %v6551_v50 }
  0xb5   : > { %1082 = vmatmul.bf16.gmra.mxu1 %v6554_v52 }
  0xc2   : > { %692 = vmatmul.bf16.gmra.mxu0 %v6564_v37  ;;  %732 = vmatmul.bf16.gmra.mxu2 %v6558_v34 }
  0xc3   : > { %1127 = vmatmul.bf16.gmra.mxu3 %v6583_v46 }
  0xc5   : > { %1087 = vmatmul.bf16.gmra.mxu1 %v6586_v57 }
  0xcf   : > { %v658_v10 = vpop.f32.mrf.mxu0 }
  0xd0   : > { %v738_v16 = vadd.f32 %v6599_v7, %v658_v10 }
  0xd2   : > { %v1053_v17 = vpop.f32.mrf.mxu1  ;;  %1335 = vmatmul.bf16.vlgmr.msrb.gmra.mxu2 %v6602_v12  ;;  %1720 = vmatmul.bf16.vlgmr.msrb.gmra.mxu0 %v6384_v29 }
  0xd3   : > { %v6608_v28 = vadd.f32 %v1053_v17, %v738_v16  ;;  %1521 = vmatmul.bf16.vlgmr.msrb.gmra.mxu3 %v6361_v59 }
  0xd5   : > { %1912 = vmatmul.bf16.vlgmr.msrb.gmra.mxu1 %v1203_v9  ;;  %v698_v21 = vpop.f32.mrf.mxu2 }
  0xd6   : > { %v754_v39 = vadd.f32 %v6599_v7, %v698_v21  ;;  %v1093_v40 = vpop.f32.mrf.mxu3 }
  0xd7   : > { %v660_v42 = vpop.f32.mrf.mxu0 }
  0xd8   : > { %v6612_v19 = vadd.f32 %v1093_v40, %v754_v39  ;;  %v739_v49 = vadd.f32 %v6599_v7, %v660_v42  ;;  %v6624_v39 = vsel %vm1197_vm4, %v1204_v3, %v1205_v6 }
  0xda   : > { %v1055_v58 = vpop.f32.mrf.mxu1 }
  0xdb   : > { %v6615_v29 = vadd.f32 %v1055_v58, %v739_v49 }
  0xdd   : > { %v700_v59 = vpop.f32.mrf.mxu2 }
  0xde   : > { %v755_v10 = vadd.f32 %v6599_v7, %v700_v59  ;;  %v1095_v16 = vpop.f32.mrf.mxu3 }
  0xdf   : > { %v663_v17 = vpop.f32.mrf.mxu0 }
  0xe0   : > { %v6620_v4 = vadd.f32 %v1095_v16, %v755_v10  ;;  %v740_v13 = vadd.f32 %v6599_v7, %v663_v17  ;;  %v1207_v10 = vrot.slane %v6429_v5, 1  ;;  %v1208_v16 = vrot.slane %v6442_v14, 1  ;;  %v5816_v14 = vld [vmem:[#allocation5 + $0x1a8] sm:$0xff] }
  0xe1   : > { %2092 = vmatpush.bf16.msra.mxu2 %v5816_v14 }
  0xe2   : > { %v1058_v21 = vpop.f32.mrf.mxu1  ;;  %1340 = vmatmul.bf16.gmra.mxu2 %v1203_v9  ;;  %1725 = vmatmul.bf16.gmra.mxu0 %v6418_v1 }
  0xe3   : > { %v6627_v40 = vadd.f32 %v1058_v21, %v740_v13  ;;  %1526 = vmatmul.bf16.gmra.mxu3 %v6395_v32 }
  0xe5   : > { %1917 = vmatmul.bf16.gmra.mxu1 %v6624_v39  ;;  %v703_v41 = vpop.f32.mrf.mxu2 }
  0xe6   : > { %v756_v42 = vadd.f32 %v6599_v7, %v703_v41  ;;  %v1098_v49 = vpop.f32.mrf.mxu3 }
  0xe7   : > { %v665_v58 = vpop.f32.mrf.mxu0 }
  0xe8   : > { %v6632_v62 = vadd.f32 %v1098_v49, %v756_v42  ;;  %v741_v59 = vadd.f32 %v6599_v7, %v665_v58  ;;  %v6644_v49 = vsel %vm1197_vm4, %v1207_v10, %v1208_v16 }
  0xea   : > { %8052 = vst [vmem:[#allocation30_spill] sm:$0xff] %v6632_v62  ;;  %v1060_v3 = vpop.f32.mrf.mxu1  ;;  %v1211_v62 = vrot.slane %v6476_v60, 1 }
  0xeb   : > { %v6635_v6 = vadd.f32 %v1060_v3, %v741_v59  ;;  %v5824_v59 = vld [vmem:[#allocation5 + $0x1e8] sm:$0xff] }
  0xec   : > { %2278 = vmatpush.bf16.msra.mxu3 %v5824_v59 }
  0xed   : > { %v705_v9 = vpop.f32.mrf.mxu2 }
  0xee   : > { %v757_v17 = vadd.f32 %v6599_v7, %v705_v9  ;;  %v1100_v13 = vpop.f32.mrf.mxu3 }
  0xef   : > { %v668_v21 = vpop.f32.mrf.mxu0 }
  0xf0   : > { %v6640_v12 = vadd.f32 %v1100_v13, %v757_v17  ;;  %v742_v41 = vadd.f32 %v6599_v7, %v668_v21 }
  0xf2   : > { %8053 = vst [vmem:[#allocation31_spill] sm:$0xff] %v6640_v12  ;;  %v1063_v42 = vpop.f32.mrf.mxu1  ;;  %1345 = vmatmul.bf16.gmra.mxu2 %v6624_v39  ;;  %1730 = vmatmul.bf16.gmra.mxu0 %v6452_v44  ;;  %v1210_v12 = vrot.slane %v6463_v47, 1 }
  0xf3   : > { %v6648_v58 = vadd.f32 %v1063_v42, %v742_v41  ;;  %1531 = vmatmul.bf16.gmra.mxu3 %v6429_v5  ;;  %v5832_v42 = vld [vmem:[#allocation5 + $0x228] sm:$0xff] }
  0xf4   : > { %2464 = vmatpush.bf16.msra.mxu0 %v5832_v42 }
  0xf5   : > { %1922 = vmatmul.bf16.gmra.mxu1 %v6644_v49  ;;  %v708_v3 = vpop.f32.mrf.mxu2 }
  0xf6   : > { %v758_v9 = vadd.f32 %v6599_v7, %v708_v3  ;;  %v1103_v17 = vpop.f32.mrf.mxu3 }
  0xf7   : > { %v670_v10 = vpop.f32.mrf.mxu0 }
  0xf8   : > { %v6653_v16 = vadd.f32 %v1103_v17, %v758_v9  ;;  %v743_v13 = vadd.f32 %v6599_v7, %v670_v10  ;;  %v6665_v10 = vsel %vm1197_vm4, %v1210_v12, %v1211_v62 }
  0xfa   : > { %8054 = vst [vmem:[#allocation32_spill] sm:$0xff] %v6653_v16  ;;  %v1065_v21 = vpop.f32.mrf.mxu1 }
  0xfb   : > { %v6656_v41 = vadd.f32 %v1065_v21, %v743_v13 }
  0xfd   : > { %v710_v20 = vpop.f32.mrf.mxu2 }
  0xfe   : > { %v759_v14 = vadd.f32 %v6599_v7, %v710_v20  ;;  %v1105_v59 = vpop.f32.mrf.mxu3 }
  0xff   : > { %v673_v3 = vpop.f32.mrf.mxu0 }
 0x100   : > { %v6661_v44 = vadd.f32 %v1105_v59, %v759_v14  ;;  %v744_v9 = vadd.f32 %v6599_v7, %v673_v3 }
 0x102   : > { %8055 = vst [vmem:[#allocation33_spill] sm:$0xff] %v6661_v44  ;;  %v1068_v17 = vpop.f32.mrf.mxu1  ;;  %1350 = vmatmul.bf16.gmra.mxu2 %v6644_v49  ;;  %1735 = vmatmul.bf16.gmra.mxu0 %v6486_v31 }
 0x103   : > { %v6669_v13 = vadd.f32 %v1068_v17, %v744_v9  ;;  %1536 = vmatmul.bf16.gmra.mxu3 %v6463_v47  ;;  %v1213_v9 = vrot.slane %v6497_v35, 1  ;;  %v1214_v17 = vrot.slane %v6510_v51, 1  ;;  %v5815_v51 = vld [vmem:[#allocation5 + $0x1a0] sm:$0xff] }
 0x104   : > { %2093 = vmatpush.bf16.msra.mxu2 %v5815_v51 }
 0x105   : > { %1927 = vmatmul.bf16.gmra.mxu1 %v6665_v10  ;;  %v713_v20 = vpop.f32.mrf.mxu2 }
 0x106   : > { %v760_v60 = vadd.f32 %v6599_v7, %v713_v20  ;;  %v1108_v21 = vpop.f32.mrf.mxu3 }
 0x107   : > { %v675_v42 = vpop.f32.mrf.mxu0 }
 0x108   : > { %v6674_v14 = vadd.f32 %v1108_v21, %v760_v60  ;;  %v745_v12 = vadd.f32 %v6599_v7, %v675_v42  ;;  %v6686_v21 = vsel %vm1197_vm4, %v1213_v9, %v1214_v17 }
 0x10a   : > { %8056 = vst [vmem:[#allocation34_spill] sm:$0xff] %v6674_v14  ;;  %v1070_v62 = vpop.f32.mrf.mxu1  ;;  %v1216_v14 = vrot.slane %v6531_v36, 1 }
 0x10b   : > { %v6677_v59 = vadd.f32 %v1070_v62, %v745_v12  ;;  %v5823_v12 = vld [vmem:[#allocation5 + $0x1e0] sm:$0xff] }
 0x10c   : > { %2279 = vmatpush.bf16.msra.mxu3 %v5823_v12 }
 0x10d   : > { %v715_v3 = vpop.f32.mrf.mxu2 }
 0x10e   : > { %v761_v44 = vadd.f32 %v6599_v7, %v715_v3  ;;  %v1110_v16 = vpop.f32.mrf.mxu3 }
 0x10f   : > { %v678_v31 = vpop.f32.mrf.mxu0 }
 0x110   : > { %v6682_v47 = vadd.f32 %v1110_v16, %v761_v44  ;;  %v746_v20 = vadd.f32 %v6599_v7, %v678_v31 }
 0x112   : > { %8057 = vst [vmem:[#allocation35_spill] sm:$0xff] %v6682_v47  ;;  %v1073_v60 = vpop.f32.mrf.mxu1  ;;  %1355 = vmatmul.bf16.gmra.mxu2 %v6665_v10  ;;  %1740 = vmatmul.bf16.gmra.mxu0 %v6520_v23  ;;  %v1217_v23 = vrot.slane %v6544_v61, 1 }
 0x113   : > { %v6690_v42 = vadd.f32 %v1073_v60, %v746_v20  ;;  %1541 = vmatmul.bf16.gmra.mxu3 %v6497_v35  ;;  %v5831_v60 = vld [vmem:[#allocation5 + $0x220] sm:$0xff] }
 0x114   : > { %2465 = vmatpush.bf16.msra.mxu0 %v5831_v60 }
 0x115   : > { %1932 = vmatmul.bf16.gmra.mxu1 %v6686_v21  ;;  %v718_v44 = vpop.f32.mrf.mxu2 }
 0x116   : > { %v762_v31 = vadd.f32 %v6599_v7, %v718_v44  ;;  %v1113_v16 = vpop.f32.mrf.mxu3 }
 0x117   : > { %v680_v62 = vpop.f32.mrf.mxu0 }
 0x118   : > { %v6695_v3 = vadd.f32 %v1113_v16, %v762_v31  ;;  %v747_v9 = vadd.f32 %v6599_v7, %v680_v62  ;;  %v6707_v62 = vsel %vm1197_vm4, %v1216_v14, %v1217_v23 }
 0x11a   : > { %8058 = vst [vmem:[#allocation36_spill] sm:$0xff] %v6695_v3  ;;  %v1075_v17 = vpop.f32.mrf.mxu1 }
 0x11b   : > { %v6698_v20 = vadd.f32 %v1075_v17, %v747_v9 }
 0x11d   : > { %v720_v47 = vpop.f32.mrf.mxu2 }
 0x11e   : > { %v763_v51 = vadd.f32 %v6599_v7, %v720_v47  ;;  %v1115_v12 = vpop.f32.mrf.mxu3 }
 0x11f   : > { %v683_v44 = vpop.f32.mrf.mxu0 }
 0x120   : > { %v6703_v35 = vadd.f32 %v1115_v12, %v763_v51  ;;  %v748_v31 = vadd.f32 %v6599_v7, %v683_v44 }
 0x122   : > { %8059 = vst [vmem:[#allocation37_spill] sm:$0xff] %v6703_v35  ;;  %v1078_v16 = vpop.f32.mrf.mxu1  ;;  %1360 = vmatmul.bf16.gmra.mxu2 %v6686_v21  ;;  %1745 = vmatmul.bf16.gmra.mxu0 %v6554_v52 }
 0x123   : > { %v6711_v9 = vadd.f32 %v1078_v16, %v748_v31  ;;  %1546 = vmatmul.bf16.gmra.mxu3 %v6531_v36  ;;  %v1219_v31 = vrot.slane %v6564_v37, 1  ;;  %v1220_v16 = vrot.slane %v6576_v8, 1  ;;  %v5814_v8 = vld [vmem:[#allocation5 + $0x198] sm:$0xff] }
 0x124   : > { %2094 = vmatpush.bf16.msra.mxu2 %v5814_v8 }
 0x125   : > { %1937 = vmatmul.bf16.gmra.mxu1 %v6707_v62  ;;  %v723_v47 = vpop.f32.mrf.mxu2 }
 0x126   : > { %v764_v61 = vadd.f32 %v6599_v7, %v723_v47  ;;  %v1118_v17 = vpop.f32.mrf.mxu3 }
 0x127   : > { %v685_v60 = vpop.f32.mrf.mxu0 }
 0x128   : > { %v6716_v51 = vadd.f32 %v1118_v17, %v764_v61  ;;  %v749_v23 = vadd.f32 %v6599_v7, %v685_v60  ;;  %v6728_v17 = vsel %vm1197_vm4, %v1219_v31, %v1220_v16 }
 0x12a   : > { %8060 = vst [vmem:[#allocation38_spill] sm:$0xff] %v6716_v51  ;;  %v1080_v14 = vpop.f32.mrf.mxu1  ;;  %v1222_v51 = vrot.slane %v6324_v18, 1 }
 0x12b   : > { %v6719_v12 = vadd.f32 %v1080_v14, %v749_v23  ;;  %v5822_v23 = vld [vmem:[#allocation5 + $0x1d8] sm:$0xff] }
 0x12c   : > { %2280 = vmatpush.bf16.msra.mxu3 %v5822_v23 }
 0x12d   : > { %v725_v44 = vpop.f32.mrf.mxu2 }
 0x12e   : > { %v765_v35 = vadd.f32 %v6599_v7, %v725_v44  ;;  %v1120_v3 = vpop.f32.mrf.mxu3 }
 0x12f   : > { %v688_v52 = vpop.f32.mrf.mxu0 }
 0x130   : > { %v6724_v36 = vadd.f32 %v1120_v3, %v765_v35  ;;  %v750_v47 = vadd.f32 %v6599_v7, %v688_v52 }
 0x132   : > { %8061 = vst [vmem:[#allocation39_spill] sm:$0xff] %v6724_v36  ;;  %v1083_v61 = vpop.f32.mrf.mxu1  ;;  %1365 = vmatmul.bf16.gmra.mxu2 %v6707_v62  ;;  %1750 = vmatmul.bf16.gmra.mxu0 %v6586_v57  ;;  %v1223_v57 = vrot.slane %v6335_v25, 1  ;;  %v5842_v25 = vld [vmem:[#allocation7 + $0x38] sm:$0xff] }
 0x133   : > { %v6732_v60 = vadd.f32 %v1083_v61, %v750_v47  ;;  %1551 = vmatmul.bf16.gmra.mxu3 %v6564_v37  ;;  %v5830_v61 = vld [vmem:[#allocation5 + $0x218] sm:$0xff]  ;;  %3035 = vmatpush.bf16.msra.mxu1 %v5842_v25 }
 0x134   : > { %2466 = vmatpush.bf16.msra.mxu0 %v5830_v61 }
 0x135   : > { %1942 = vmatmul.bf16.gmra.mxu1 %v6728_v17  ;;  %v728_v35 = vpop.f32.mrf.mxu2 }
 0x136   : > { %v766_v52 = vadd.f32 %v6599_v7, %v728_v35  ;;  %v1123_v3 = vpop.f32.mrf.mxu3 }
 0x137   : > { %v690_v14 = vpop.f32.mrf.mxu0 }
 0x138   : > { %v6737_v44 = vadd.f32 %v1123_v3, %v766_v52  ;;  %v751_v31 = vadd.f32 %v6599_v7, %v690_v14  ;;  %v6749_v14 = vsel %vm1197_vm4, %v1222_v51, %v1223_v57 }
 0x139   : > { %8064 = vst [vmem:[#allocation42_spill] sm:$0xff] %v6749_v14 }
 0x13a   : > { %8062 = vst [vmem:[#allocation40_spill] sm:$0xff] %v6737_v44  ;;  %v1085_v16 = vpop.f32.mrf.mxu1 }
 0x13b   : > { %v6740_v47 = vadd.f32 %v1085_v16, %v751_v31 }
 0x13d   : > { %v730_v36 = vpop.f32.mrf.mxu2 }
 0x13e   : > { %v767_v8 = vadd.f32 %v6599_v7, %v730_v36  ;;  %v1125_v23 = vpop.f32.mrf.mxu3 }
 0x13f   : > { %v693_v35 = vpop.f32.mrf.mxu0 }
 0x140   : > { %v6745_v37 = vadd.f32 %v1125_v23, %v767_v8  ;;  %v752_v52 = vadd.f32 %v6599_v7, %v693_v35 }
 0x142   : > { %8063 = vst [vmem:[#allocation41_spill] sm:$0xff] %v6745_v37  ;;  %v1088_v3 = vpop.f32.mrf.mxu1  ;;  %1370 = vmatmul.bf16.gmra.mxu2 %v6728_v17  ;;  %1755 = vmatmul.bf16.gmra.mxu0 %v6347_v53  ;;  %v1226_v37 = vrot.slane %v6369_v0, 1  ;;  %v5821_v0 = vld [vmem:[#allocation5 + $0x1d0] sm:$0xff] }
 0x143   : > { %v6753_v31 = vadd.f32 %v1088_v3, %v752_v52  ;;  %1556 = vmatmul.bf16.gmra.mxu3 %v6324_v18  ;;  %v1225_v3 = vrot.slane %v6354_v56, 1 }
 0x144   : > { %2281 = vmatpush.bf16.msra.mxu3 %v5821_v0 }
 0x145   : > { %1947 = vmatmul.bf16.gmra.mxu1 %v6749_v14  ;;  %v733_v36 = vpop.f32.mrf.mxu2 }
 0x146   : > { %v768_v16 = vadd.f32 %v6599_v7, %v733_v36  ;;  %v1128_v61 = vpop.f32.mrf.mxu3 }
 0x147   : > { %v695_v8 = vpop.f32.mrf.mxu0 }
 0x148   : > { %v6758_v23 = vadd.f32 %v1128_v61, %v768_v16  ;;  %v753_v57 = vadd.f32 %v6599_v7, %v695_v8  ;;  %v6769_v16 = vsel %vm1197_vm4, %v1225_v3, %v1226_v37  ;;  %v5813_v61 = vld [vmem:[#allocation5 + $0x190] sm:$0xff] }
 0x149   : > { %2095 = vmatpush.bf16.msra.mxu2 %v5813_v61  ;;  %v5829_v3 = vld [vmem:[#allocation5 + $0x210] sm:$0xff] }
 0x14a   : > { %8065 = vst [vmem:[#allocation43_spill] sm:$0xff] %v6758_v23  ;;  %v1090_v51 = vpop.f32.mrf.mxu1  ;;  %v1228_v23 = vrot.slane %v6388_v30, 1  ;;  %2467 = vmatpush.bf16.msra.mxu0 %v5829_v3 }
 0x14b   : > { %v6761_v35 = vadd.f32 %v1090_v51, %v753_v57 }
 0x14d   : > { %v735_v52 = vpop.f32.mrf.mxu2 }
 0x14e   : > { %v769_v44 = vadd.f32 %v6599_v7, %v735_v52  ;;  %v1130_v53 = vpop.f32.mrf.mxu3 }
 0x14f   : > { %v1721_v18 = vpop.f32.mrf.mxu0 }
 0x150   : > { %v6766_v36 = vadd.f32 %v1130_v53, %v769_v44 }
 0x152   : > { %8066 = vst [vmem:[#allocation44_spill] sm:$0xff] %v6766_v36  ;;  %v1913_v25 = vpop.f32.mrf.mxu1  ;;  %1375 = vmatmul.bf16.gmra.mxu2 %v6749_v14  ;;  %1760 = vmatmul.bf16.gmra.mxu0 %v6381_v27  ;;  %v1229_v27 = vrot.slane %v6403_v38, 1  ;;  %v5841_v38 = vld [vmem:[#allocation7 + $0x30] sm:$0xff] }
 0x153   : > { %1561 = vmatmul.bf16.gmra.mxu3 %v6354_v56  ;;  %3036 = vmatpush.bf16.msra.mxu1 %v5841_v38 }
 0x154   : > { %v6782_v0 = vsel %vm1197_vm4, %v1228_v23, %v1229_v27 }
 0x155   : > { %1952 = vmatmul.bf16.gmra.mxu1 %v6769_v16  ;;  %v1336_v8 = vpop.f32.mrf.mxu2 }
 0x156   : > { %v1416_v7 = vadd.f32 %v1336_v8, %v6608_v28  ;;  %v1522_v53 = vpop.f32.mrf.mxu3 }
 0x157   : > { %v1723_v44 = vpop.f32.mrf.mxu0 }
 0x158   : > { %v1602_v57 = vadd.f32 %v1522_v53, %v1416_v7 }
 0x15a   : > { %v1915_v37 = vpop.f32.mrf.mxu1  ;;  %v1801_v51 = vadd.f32 %v1721_v18, %v1602_v57 }
 0x15c   : > { %v6776_v52 = vadd.f32 %v1913_v25, %v1801_v51 }
 0x15d   : > { %v1338_v36 = vpop.f32.mrf.mxu2 }
 0x15e   : > { %v1417_v56 = vadd.f32 %v1338_v36, %v6615_v29  ;;  %v1524_v14 = vpop.f32.mrf.mxu3 }
 0x15f   : > { %v1726_v61 = vpop.f32.mrf.mxu0 }
 0x160   : > { %v1603_v28 = vadd.f32 %v1524_v14, %v1417_v56 }
 0x162   : > { %v1918_v8 = vpop.f32.mrf.mxu1  ;;  %1380 = vmatmul.bf16.gmra.mxu2 %v6769_v16  ;;  %1765 = vmatmul.bf16.gmra.mxu0 %v6415_v63  ;;  %v1802_v18 = vadd.f32 %v1723_v44, %v1603_v28  ;;  %v1231_v44 = vrot.slane %v6422_v2, 1 }
 0x163   : > { %1566 = vmatmul.bf16.gmra.mxu3 %v6388_v30 }
 0x164   : > { %v6787_v25 = vadd.f32 %v1915_v37, %v1802_v18  ;;  %v1232_v37 = vrot.slane %v6437_v11, 1  ;;  %v5820_v11 = vld [vmem:[#allocation5 + $0x1c8] sm:$0xff] }
 0x165   : > { %1957 = vmatmul.bf16.gmra.mxu1 %v6782_v0  ;;  %v1341_v29 = vpop.f32.mrf.mxu2  ;;  %2282 = vmatpush.bf16.msra.mxu3 %v5820_v11 }
 0x166   : > { %8067 = vst [vmem:[#allocation45_spill] sm:$0xff] %v6787_v25  ;;  %v1418_v36 = vadd.f32 %v1341_v29, %v6627_v40  ;;  %v1527_v56 = vpop.f32.mrf.mxu3  ;;  %v6797_v40 = vsel %vm1197_vm4, %v1231_v44, %v1232_v37 }
 0x167   : > { %v1728_v14 = vpop.f32.mrf.mxu0 }
 0x168   : > { %v1604_v27 = vadd.f32 %v1527_v56, %v1418_v36 }
 0x16a   : > { %v1920_v23 = vpop.f32.mrf.mxu1  ;;  %v1803_v7 = vadd.f32 %v1726_v61, %v1604_v27 }
 0x16c   : > { %v6791_v53 = vadd.f32 %v1918_v8, %v1803_v7  ;;  %v5812_v8 = vld [vmem:[#allocation5 + $0x188] sm:$0xff] }
 0x16d   : > { %v1343_v57 = vpop.f32.mrf.mxu2  ;;  %2096 = vmatpush.bf16.msra.mxu2 %v5812_v8 }
 0x16e   : > { %v1419_v51 = vadd.f32 %v1343_v57, %v6635_v6  ;;  %v1529_v3 = vpop.f32.mrf.mxu3 }
 0x16f   : > { %v1731_v28 = vpop.f32.mrf.mxu0 }
 0x170   : > { %v1605_v18 = vadd.f32 %v1529_v3, %v1419_v51  ;;  %v1235_v51 = vrot.slane %v6471_v54, 1  ;;  %v5840_v54 = vld [vmem:[#allocation7 + $0x28] sm:$0xff] }
 0x171   : > { %3037 = vmatpush.bf16.msra.mxu1 %v5840_v54 }
 0x172   : > { %v1923_v25 = vpop.f32.mrf.mxu1  ;;  %1385 = vmatmul.bf16.gmra.mxu2 %v6782_v0  ;;  %1770 = vmatmul.bf16.gmra.mxu0 %v6449_v43  ;;  %v1804_v61 = vadd.f32 %v1728_v14, %v1605_v18  ;;  %v5828_v14 = vld [vmem:[#allocation5 + $0x208] sm:$0xff] }
 0x173   : > { %1571 = vmatmul.bf16.gmra.mxu3 %v6422_v2  ;;  %2468 = vmatpush.bf16.msra.mxu0 %v5828_v14 }
 0x174   : > { %v6802_v38 = vadd.f32 %v1920_v23, %v1804_v61  ;;  %v1234_v23 = vrot.slane %v6456_v45, 1 }
 0x175   : > { %1962 = vmatmul.bf16.gmra.mxu1 %v6797_v40  ;;  %v1346_v6 = vpop.f32.mrf.mxu2 }
 0x176   : > { %v1420_v29 = vadd.f32 %v1346_v6, %v6648_v58  ;;  %v1532_v36 = vpop.f32.mrf.mxu3  ;;  %v6812_v11 = vsel %vm1197_vm4, %v1234_v23, %v1235_v51 }
 0x177   : > { %v1733_v56 = vpop.f32.mrf.mxu0 }
 0x178   : > { %v1606_v27 = vadd.f32 %v1532_v36, %v1420_v29 }
 0x17a   : > { %v1925_v7 = vpop.f32.mrf.mxu1  ;;  %v1805_v57 = vadd.f32 %v1731_v28, %v1606_v27 }
 0x17c   : > { %v6806_v44 = vadd.f32 %v1923_v25, %v1805_v57 }
 0x17d   : > { %v1348_v37 = vpop.f32.mrf.mxu2 }
 0x17e   : > { %v1421_v3 = vadd.f32 %v1348_v37, %v6656_v41  ;;  %v1534_v18 = vpop.f32.mrf.mxu3 }
 0x17f   : > { %v1736_v61 = vpop.f32.mrf.mxu0 }
 0x180   : > { %v1607_v58 = vadd.f32 %v1534_v18, %v1421_v3 }
 0x182   : > { %v1928_v8 = vpop.f32.mrf.mxu1  ;;  %1390 = vmatmul.bf16.gmra.mxu2 %v6797_v40  ;;  %1775 = vmatmul.bf16.gmra.mxu0 %v6483_v26  ;;  %v1806_v25 = vadd.f32 %v1733_v56, %v1607_v58  ;;  %v1237_v56 = vrot.slane %v6490_v33, 1 }
 0x183   : > { %1576 = vmatmul.bf16.gmra.mxu3 %v6456_v45 }
 0x184   : > { %v6817_v28 = vadd.f32 %v1925_v7, %v1806_v25  ;;  %v1238_v7 = vrot.slane %v6505_v48, 1  ;;  %v5819_v48 = vld [vmem:[#allocation5 + $0x1c0] sm:$0xff] }
 0x185   : > { %1967 = vmatmul.bf16.gmra.mxu1 %v6812_v11  ;;  %v1351_v41 = vpop.f32.mrf.mxu2  ;;  %2283 = vmatpush.bf16.msra.mxu3 %v5819_v48  ;;  %v5762_v48 = vld [vmem:[%s6307_s28 + $0x78] sm:$0xff] }
 0x186   : > { %v1422_v6 = vadd.f32 %v1351_v41, %v6669_v13  ;;  %v1537_v29 = vpop.f32.mrf.mxu3  ;;  %v6827_v13 = vsel %vm1197_vm4, %v1237_v56, %v1238_v7  ;;  %v5827_v56 = vld [vmem:[#allocation5 + $0x200] sm:$0xff]  ;;  %v1240_v7 = vrot.slane %v6524_v24, 1 }
 0x187   : > { %v1738_v36 = vpop.f32.mrf.mxu0  ;;  %2469 = vmatpush.bf16.msra.mxu0 %v5827_v56 }
 0x188   : > { %v1608_v27 = vadd.f32 %v1537_v29, %v1422_v6 }
 0x18a   : > { %v1930_v57 = vpop.f32.mrf.mxu1  ;;  %v1807_v14 = vadd.f32 %v1736_v61, %v1608_v27 }
 0x18c   : > { %v6821_v37 = vadd.f32 %v1928_v8, %v1807_v14  ;;  %v5811_v8 = vld [vmem:[#allocation5 + $0x180] sm:$0xff] }
 0x18d   : > { %v1353_v23 = vpop.f32.mrf.mxu2  ;;  %2097 = vmatpush.bf16.msra.mxu2 %v5811_v8 }
 0x18e   : > { %v1423_v51 = vadd.f32 %v1353_v23, %v6677_v59  ;;  %v1539_v3 = vpop.f32.mrf.mxu3 }
 0x18f   : > { %v1741_v18 = vpop.f32.mrf.mxu0 }
 0x190   : > { %v1609_v58 = vadd.f32 %v1539_v3, %v1423_v51  ;;  %v8070_v51 = vld [vmem:[#allocation24_spill] sm:$0xff] }
 0x191   : > { %v1241_v3 = vrot.slane %v8070_v51, 1  ;;  %v511_v51 = vshll.u32 %v5762_v48, 16 }
 0x192   : > { %v1933_v25 = vpop.f32.mrf.mxu1  ;;  %1395 = vmatmul.bf16.gmra.mxu2 %v6812_v11  ;;  %1780 = vmatmul.bf16.gmra.mxu0 %v6517_v22  ;;  %v1808_v61 = vadd.f32 %v1738_v36, %v1609_v58 }
 0x193   : > { %1581 = vmatmul.bf16.gmra.mxu3 %v6490_v33 }
 0x194   : > { %v6832_v54 = vadd.f32 %v1930_v57, %v1808_v61 }
 0x195   : > { %1972 = vmatmul.bf16.gmra.mxu1 %v6827_v13  ;;  %v1356_v59 = vpop.f32.mrf.mxu2 }
 0x196   : > { %v1424_v41 = vadd.f32 %v1356_v59, %v6690_v42  ;;  %v1542_v6 = vpop.f32.mrf.mxu3 }
 0x197   : > { %v1743_v29 = vpop.f32.mrf.mxu0 }
 0x198   : > { %v1610_v27 = vadd.f32 %v1542_v6, %v1424_v41  ;;  %v6845_v41 = vsel %vm1197_vm4, %v1240_v7, %v1241_v3 }
 0x19a   : > { %v6836_v14 = vpop.f32.mrf.mxu1  ;;  %v1809_v36 = vadd.f32 %v1741_v18, %v1610_v27 }
 0x19b   : > { %8068 = vst [vmem:[#allocation46_spill] sm:$0xff] %v6836_v14  ;;  %v1243_v14 = vrot.slane %v6558_v34, 1 }
 0x19c   : > { %v6838_v23 = vadd.f32 %v1933_v25, %v1809_v36  ;;  %v5839_v25 = vld [vmem:[#allocation7 + $0x20] sm:$0xff] }
 0x19d   : > { %v1358_v57 = vpop.f32.mrf.mxu2  ;;  %3038 = vmatpush.bf16.msra.mxu1 %v5839_v25 }
 0x19e   : > { %8069 = vst [vmem:[#allocation47_spill] sm:$0xff] %v6838_v23  ;;  %v1425_v58 = vadd.f32 %v1358_v57, %v6698_v20  ;;  %v1544_v61 = vpop.f32.mrf.mxu3  ;;  %v508_v20 = vshrl.u32 %v5762_v48, 16 }
 0x19f   : > { %v1746_v42 = vpop.f32.mrf.mxu0 }
 0x1a0   : > { %v1611_v8 = vadd.f32 %v1544_v61, %v1425_v58  ;;  %v510_v7 = vrot.slane %v508_v20, 7 }
 0x1a2   : > { %v1938_v59 = vpop.f32.mrf.mxu1  ;;  %1400 = vmatmul.bf16.gmra.mxu2 %v6827_v13  ;;  %1785 = vmatmul.bf16.gmra.mxu0 %v6551_v50  ;;  %v6849_v18 = vadd.f32 %v1743_v29, %v1611_v8  ;;  %v513_v61 = vor.u32 %v511_v51, %v510_v7 }
 0x1a3   : > { %1586 = vmatmul.bf16.gmra.mxu3 %v6524_v24 }
 0x1a4   : > { %8071 = vst [vmem:[#allocation24_spill] sm:$0xff] %v6849_v18  ;;  %v1244_v18 = vrot.slane %v6571_v55, 1  ;;  %v6863_v20 = vsel %vm6318_vm2, 0, %v513_v61 }
 0x1a5   : > { %1977 = vmatmul.bf16.gmra.mxu1 %v6845_v41  ;;  %v1361_v6 = vpop.f32.mrf.mxu2  ;;  %v1637_v55 = vshll.u32 %v6863_v20, 16 }
 0x1a6   : > { %v1426_v27 = vadd.f32 %v1361_v6, %v6711_v9  ;;  %v1547_v36 = vpop.f32.mrf.mxu3 }
 0x1a7   : > { %v1748_v56 = vpop.f32.mrf.mxu0 }
 0x1a8   : > { %v1612_v57 = vadd.f32 %v1547_v36, %v1426_v27  ;;  %v1635_v36 = vshrl.u32 %v6863_v20, 16 }
 0x1aa   : > { %v6854_v3 = vpop.f32.mrf.mxu1  ;;  %v1811_v58 = vadd.f32 %v1746_v42, %v1612_v57  ;;  %v6866_v42 = vsel %vm1197_vm4, %v1243_v14, %v1244_v18  ;;  %v1639_v57 = vrot.slane %v1637_v55, 1 }
 0x1ab   : > { %8072 = vst [vmem:[#allocation48_spill] sm:$0xff] %v6854_v3 }
 0x1ac   : > { %v6856_v29 = vadd.f32 %v1938_v59, %v1811_v58 }
 0x1ad   : > { %v1363_v8 = vpop.f32.mrf.mxu2 }
 0x1ae   : > { %8073 = vst [vmem:[#allocation49_spill] sm:$0xff] %v6856_v29  ;;  %v1427_v23 = vadd.f32 %v1363_v8, %v6719_v12  ;;  %v1549_v9 = vpop.f32.mrf.mxu3  ;;  %v584_v12 = vsel %vm6318_vm2, %v510_v7, 0  ;;  %v1640_v8 = vor.u32 %v1639_v57, %v1635_v36  ;;  %v1835_v7 = vrot.slane %v6863_v20, 1 }
 0x1af   : > { %v1751_v6 = vpop.f32.mrf.mxu0  ;;  %v1642_v51 = vshll.u32 %v584_v12, 16 }
 0x1b0   : > { %v1613_v25 = vadd.f32 %v1549_v9, %v1427_v23 }
 0x1b1   : > { %v1644_v9 = vrot.slane %v1642_v51, 1 }
 0x1b2   : > { %v1943_v48 = vpop.f32.mrf.mxu1  ;;  %1405 = vmatmul.bf16.gmra.mxu2 %v6845_v41  ;;  %1790 = vmatmul.bf16.gmra.mxu0 %v6583_v46  ;;  %v6870_v59 = vadd.f32 %v1748_v56, %v1613_v25 }
 0x1b3   : > { %1591 = vmatmul.bf16.gmra.mxu3 %v6558_v34  ;;  %v6886_v46 = vsel %vm770_vm3, %v1640_v8, %v1644_v9 }
 0x1b4   : > { %8074 = vst [vmem:[#allocation50_spill] sm:$0xff] %v6870_v59  ;;  %v1836_v59 = vrot.slane %v584_v12, 1 }
 0x1b5   : > { %1982 = vmatmul.bf16.gmra.mxu1 %v6866_v42  ;;  %v1366_v23 = vpop.f32.mrf.mxu2 }
 0x1b6   : > { %v1428_v27 = vadd.f32 %v1366_v23, %v6732_v60  ;;  %v1552_v14 = vpop.f32.mrf.mxu3 }
 0x1b7   : > { %v1753_v18 = vpop.f32.mrf.mxu0 }
 0x1b8   : > { %v1614_v56 = vadd.f32 %v1552_v14, %v1428_v27  ;;  %v6889_v14 = vsel %vm1197_vm4, %v1835_v7, %v1836_v59 }
 0x1ba   : > { %v6879_v58 = vpop.f32.mrf.mxu1  ;;  %v1813_v61 = vadd.f32 %v1751_v6, %v1614_v56 }
 0x1bc   : > { %v6881_v25 = vadd.f32 %v1943_v48, %v1813_v61 }
 0x1bd   : > { %v1368_v3 = vpop.f32.mrf.mxu2 }
 0x1be   : > { %v1429_v60 = vadd.f32 %v1368_v3, %v6740_v47  ;;  %v1554_v23 = vpop.f32.mrf.mxu3  ;;  %v5838_v47 = vld [vmem:[#allocation7 + $0x18] sm:$0xff] }
 0x1bf   : > { %v1756_v29 = vpop.f32.mrf.mxu0  ;;  %3039 = vmatpush.bf16.msra.mxu1 %v5838_v47 }
 0x1c0   : > { %v1615_v55 = vadd.f32 %v1554_v23, %v1429_v60 }
 0x1c2   : > { %v1948_v27 = vpop.f32.mrf.mxu1  ;;  %1410 = vmatmul.bf16.gmra.mxu2 %v6866_v42  ;;  %1795 = vmatmul.bf16.gmra.mxu0 %v6886_v46  ;;  %v6893_v6 = vadd.f32 %v1753_v18, %v1615_v55 }
 0x1c3   : > { %1596 = vmatmul.bf16.gmra.mxu3 %v6863_v20 }
 0x1c5   : > { %1987 = vmatmul.bf16.gmra.mxu1 %v6889_v14  ;;  %v1371_v3 = vpop.f32.mrf.mxu2 }
 0x1c6   : > { %v1430_v48 = vadd.f32 %v1371_v3, %v6753_v31  ;;  %v1557_v12 = vpop.f32.mrf.mxu3 }
 0x1c7   : > { %v1758_v36 = vpop.f32.mrf.mxu0 }
 0x1c8   : > { %v1616_v57 = vadd.f32 %v1557_v12, %v1430_v48 }
 0x1ca   : > { %v6898_v59 = vpop.f32.mrf.mxu1  ;;  %v1815_v51 = vadd.f32 %v1756_v29, %v1616_v57 }
 0x1cc   : > { %v6900_v56 = vadd.f32 %v1948_v27, %v1815_v51 }
 0x1cd   : > { %v1373_v61 = vpop.f32.mrf.mxu2 }
 0x1ce   : > { %v1431_v18 = vadd.f32 %v1373_v61, %v6761_v35  ;;  %v1559_v8 = vpop.f32.mrf.mxu3  ;;  %v5837_v61 = vld [vmem:[#allocation7 + $0x10] sm:$0xff] }
 0x1cf   : > { %v1761_v9 = vpop.f32.mrf.mxu0  ;;  %3040 = vmatpush.bf16.msra.mxu1 %v5837_v61 }
 0x1d0   : > { %v1617_v7 = vadd.f32 %v1559_v8, %v1431_v18  ;;  %v8076_v8 = vld [vmem:[#allocation30_spill] sm:$0xff] }
 0x1d2   : > { %v1953_v60 = vpop.f32.mrf.mxu1  ;;  %2098 = vmatmul.bf16.vlgmr.msra.gmra.mxu2 %v6395_v32  ;;  %2470 = vmatmul.bf16.vlgmr.msra.gmra.mxu0 %v6624_v39  ;;  %v6905_v31 = vadd.f32 %v1758_v36, %v1617_v7 }
 0x1d3   : > { %2284 = vmatmul.bf16.vlgmr.msra.gmra.mxu3 %v6418_v1 }
 0x1d5   : > { %v1376_v23 = vpop.f32.mrf.mxu2 }
 0x1d6   : > { %v1432_v29 = vadd.f32 %v1376_v23, %v6612_v19  ;;  %v1562_v55 = vpop.f32.mrf.mxu3  ;;  %v8075_v19 = vld [vmem:[#allocation18_spill] sm:$0xff] }
 0x1d7   : > { %v1763_v27 = vpop.f32.mrf.mxu0 }
 0x1d8   : > { %v1618_v47 = vadd.f32 %v1562_v55, %v1432_v29 }
 0x1da   : > { %v6909_v3 = vpop.f32.mrf.mxu1  ;;  %v1817_v35 = vadd.f32 %v1761_v9, %v1618_v47  ;;  %v8077_v47 = vld [vmem:[#allocation31_spill] sm:$0xff] }
 0x1dc   : > { %v6911_v48 = vadd.f32 %v1953_v60, %v1817_v35 }
 0x1dd   : > { %v1378_v12 = vpop.f32.mrf.mxu2 }
 0x1de   : > { %v1433_v32 = vadd.f32 %v1378_v12, %v6620_v4  ;;  %v1564_v57 = vpop.f32.mrf.mxu3 }
 0x1df   : > { %v1766_v39 = vpop.f32.mrf.mxu0 }
 0x1e0   : > { %v1619_v36 = vadd.f32 %v1564_v57, %v1433_v32  ;;  %v8078_v57 = vld [vmem:[#allocation19_spill] sm:$0xff] }
 0x1e2   : > { %v1958_v51 = vpop.f32.mrf.mxu1  ;;  %2103 = vmatmul.bf16.gmra.mxu2 %v6429_v5  ;;  %2475 = vmatmul.bf16.gmra.mxu0 %v6644_v49  ;;  %v6916_v1 = vadd.f32 %v1763_v27, %v1619_v36 }
 0x1e3   : > { %2289 = vmatmul.bf16.gmra.mxu3 %v8075_v19  ;;  %v8079_v19 = vld [vmem:[#allocation20_spill] sm:$0xff] }
 0x1e5   : > { %v1381_v18 = vpop.f32.mrf.mxu2 }
 0x1e6   : > { %v1434_v9 = vadd.f32 %v1381_v18, %v8076_v8  ;;  %v1567_v7 = vpop.f32.mrf.mxu3  ;;  %v8080_v18 = vld [vmem:[#allocation32_spill] sm:$0xff] }
 0x1e7   : > { %v1768_v60 = vpop.f32.mrf.mxu0 }
 0x1e8   : > { %v1620_v4 = vadd.f32 %v1567_v7, %v1434_v9 }
 0x1ea   : > { %v6920_v23 = vpop.f32.mrf.mxu1  ;;  %v1819_v29 = vadd.f32 %v1766_v39, %v1620_v4 }
 0x1ec   : > { %v6922_v55 = vadd.f32 %v1958_v51, %v1819_v29 }
 0x1ed   : > { %v1383_v5 = vpop.f32.mrf.mxu2 }
 0x1ee   : > { %v1435_v49 = vadd.f32 %v1383_v5, %v8077_v47  ;;  %v1569_v27 = vpop.f32.mrf.mxu3  ;;  %v8082_v47 = vld [vmem:[#allocation33_spill] sm:$0xff] }
 0x1ef   : > { %v1771_v35 = vpop.f32.mrf.mxu0 }
 0x1f0   : > { %v1621_v12 = vadd.f32 %v1569_v27, %v1435_v49 }
 0x1f2   : > { %v1963_v32 = vpop.f32.mrf.mxu1  ;;  %2108 = vmatmul.bf16.gmra.mxu2 %v8078_v57  ;;  %2480 = vmatmul.bf16.gmra.mxu0 %v6665_v10  ;;  %v6927_v36 = vadd.f32 %v1768_v60, %v1621_v12  ;;  %v8083_v57 = vld [vmem:[#allocation21_spill] sm:$0xff] }
 0x1f3   : > { %2294 = vmatmul.bf16.gmra.mxu3 %v8079_v19 }
 0x1f5   : > { %v1386_v61 = vpop.f32.mrf.mxu2 }
 0x1f6   : > { %v1436_v39 = vadd.f32 %v1386_v61, %v8080_v18  ;;  %v1572_v51 = vpop.f32.mrf.mxu3  ;;  %v8085_v61 = vld [vmem:[#allocation22_spill] sm:$0xff]  ;;  %v5836_v18 = vld [vmem:[#allocation7 + $0x8] sm:$0xff] }
 0x1f7   : > { %v1773_v8 = vpop.f32.mrf.mxu0  ;;  %3041 = vmatpush.bf16.msra.mxu1 %v5836_v18  ;;  %v8091_v18 = vld [vmem:[#allocation25_spill] sm:$0xff] }
 0x1f8   : > { %v1622_v9 = vadd.f32 %v1572_v51, %v1436_v39 }
 0x1fa   : > { %v6931_v7 = vpop.f32.mrf.mxu1  ;;  %v1821_v4 = vadd.f32 %v1771_v35, %v1622_v9  ;;  %v8086_v35 = vld [vmem:[#allocation34_spill] sm:$0xff] }
 0x1fb   : > { %8081 = vst [vmem:[#allocation18_spill] sm:$0xff] %v6931_v7 }
 0x1fc   : > { %v6933_v29 = vadd.f32 %v1963_v32, %v1821_v4 }
 0x1fd   : > { %v1388_v5 = vpop.f32.mrf.mxu2 }
 0x1fe   : > { %v1437_v49 = vadd.f32 %v1388_v5, %v8082_v47  ;;  %v1574_v27 = vpop.f32.mrf.mxu3 }
 0x1ff   : > { %v1776_v10 = vpop.f32.mrf.mxu0 }
 0x200   : > { %v1623_v60 = vadd.f32 %v1574_v27, %v1437_v49 }
 0x202   : > { %v1968_v12 = vpop.f32.mrf.mxu1  ;;  %2113 = vmatmul.bf16.gmra.mxu2 %v8083_v57  ;;  %2485 = vmatmul.bf16.gmra.mxu0 %v6686_v21  ;;  %v6938_v19 = vadd.f32 %v1773_v8, %v1623_v60  ;;  %v8088_v57 = vld [vmem:[#allocation35_spill] sm:$0xff] }
 0x203   : > { %2299 = vmatmul.bf16.gmra.mxu3 %v8085_v61 }
 0x204   : > { %8084 = vst [vmem:[#allocation30_spill] sm:$0xff] %v6938_v19  ;;  %v8089_v19 = vld [vmem:[#allocation23_spill] sm:$0xff] }
 0x205   : > { %v1391_v39 = vpop.f32.mrf.mxu2 }
 0x206   : > { %v1438_v32 = vadd.f32 %v1391_v39, %v8086_v35  ;;  %v1577_v51 = vpop.f32.mrf.mxu3 }
 0x207   : > { %v1778_v9 = vpop.f32.mrf.mxu0 }
 0x208   : > { %v1624_v4 = vadd.f32 %v1577_v51, %v1438_v32  ;;  %v8092_v32 = vld [vmem:[#allocation36_spill] sm:$0xff] }
 0x20a   : > { %v6942_v5 = vpop.f32.mrf.mxu1  ;;  %v1823_v47 = vadd.f32 %v1776_v10, %v1624_v4 }
 0x20b   : > { %8087 = vst [vmem:[#allocation31_spill] sm:$0xff] %v6942_v5 }
 0x20c   : > { %v6944_v49 = vadd.f32 %v1968_v12, %v1823_v47 }
 0x20d   : > { %v1393_v27 = vpop.f32.mrf.mxu2 }
 0x20e   : > { %v1439_v21 = vadd.f32 %v1393_v27, %v8088_v57  ;;  %v1579_v8 = vpop.f32.mrf.mxu3 }
 0x20f   : > { %v1781_v60 = vpop.f32.mrf.mxu0 }
 0x210   : > { %v1625_v7 = vadd.f32 %v1579_v8, %v1439_v21  ;;  %v8095_v8 = vld [vmem:[#allocation37_spill] sm:$0xff] }
 0x212   : > { %v1973_v61 = vpop.f32.mrf.mxu1  ;;  %2118 = vmatmul.bf16.gmra.mxu2 %v8089_v19  ;;  %2490 = vmatmul.bf16.gmra.mxu0 %v6707_v62  ;;  %v6949_v39 = vadd.f32 %v1778_v9, %v1625_v7 }
 0x213   : > { %2304 = vmatmul.bf16.gmra.mxu3 %v8091_v18 }
 0x214   : > { %8090 = vst [vmem:[#allocation19_spill] sm:$0xff] %v6949_v39  ;;  %v8096_v39 = vld [vmem:[#allocation26_spill] sm:$0xff] }
 0x215   : > { %v1396_v35 = vpop.f32.mrf.mxu2 }
 0x216   : > { %v1440_v10 = vadd.f32 %v1396_v35, %v8092_v32  ;;  %v1582_v12 = vpop.f32.mrf.mxu3  ;;  %v8098_v35 = vld [vmem:[#allocation28_spill] sm:$0xff] }
 0x217   : > { %v1783_v51 = vpop.f32.mrf.mxu0  ;;  %v5835_v32 = vld [vmem:[#allocation7] sm:$0xff] }
 0x218   : > { %v1626_v4 = vadd.f32 %v1582_v12, %v1440_v10  ;;  %3042 = vmatpush.bf16.msra.mxu1 %v5835_v32 }
 0x21a   : > { %v6953_v47 = vpop.f32.mrf.mxu1  ;;  %v1825_v27 = vadd.f32 %v1781_v60, %v1626_v4  ;;  %v8099_v60 = vld [vmem:[#allocation38_spill] sm:$0xff] }
 0x21b   : > { %8093 = vst [vmem:[#allocation20_spill] sm:$0xff] %v6953_v47 }
 0x21c   : > { %v6955_v57 = vadd.f32 %v1973_v61, %v1825_v27 }
 0x21d   : > { %v1398_v21 = vpop.f32.mrf.mxu2 }
 0x21e   : > { %8094 = vst [vmem:[#allocation32_spill] sm:$0xff] %v6955_v57  ;;  %v1441_v19 = vadd.f32 %v1398_v21, %v8095_v8  ;;  %v1584_v5 = vpop.f32.mrf.mxu3  ;;  %v8100_v21 = vld [vmem:[#allocation13_spill] sm:$0xff] }
 0x21f   : > { %v1786_v62 = vpop.f32.mrf.mxu0  ;;  %3043 = vmatmul.bf16.vlgmr.msra.gmra.mxu1 %v8100_v21 }
 0x220   : > { %v1627_v7 = vadd.f32 %v1584_v5, %v1441_v19 }
 0x222   : > { %v1978_v9 = vpop.f32.mrf.mxu1  ;;  %2123 = vmatmul.bf16.gmra.mxu2 %v8096_v39  ;;  %2495 = vmatmul.bf16.gmra.mxu0 %v6728_v17  ;;  %v6960_v18 = vadd.f32 %v1783_v51, %v1627_v7  ;;  %v8103_v51 = vld [vmem:[#allocation39_spill] sm:$0xff] }
 0x223   : > { %2309 = vmatmul.bf16.gmra.mxu3 %v8098_v35 }
 0x224   : > { %8097 = vst [vmem:[#allocation33_spill] sm:$0xff] %v6960_v18  ;;  %v8104_v18 = vld [vmem:[#allocation12_spill] sm:$0xff] }
 0x225   : > { %v1401_v10 = vpop.f32.mrf.mxu2 }
 0x226   : > { %v1442_v61 = vadd.f32 %v1401_v10, %v8099_v60  ;;  %v1587_v12 = vpop.f32.mrf.mxu3  ;;  %v8105_v10 = vld [vmem:[#allocation42_spill] sm:$0xff] }
 0x227   : > { %v1788_v4 = vpop.f32.mrf.mxu0  ;;  %v8107_v60 = vld [vmem:[#allocation14_spill] sm:$0xff] }
 0x228   : > { %v1628_v27 = vadd.f32 %v1587_v12, %v1442_v61  ;;  %v8108_v12 = vld [vmem:[#allocation40_spill] sm:$0xff] }
 0x22a   : > { %v1827_v5 = vadd.f32 %v1786_v62, %v1628_v27  ;;  %v6965_v8 = vpop.f32.mrf.mxu1 }
 0x22b   : > { %8101 = vst [vmem:[#allocation21_spill] sm:$0xff] %v6965_v8 }
 0x22c   : > { %v6967_v39 = vadd.f32 %v1978_v9, %v1827_v5 }
 0x22d   : > { %v1403_v17 = vpop.f32.mrf.mxu2 }
 0x22e   : > { %8102 = vst [vmem:[#allocation22_spill] sm:$0xff] %v6967_v39  ;;  %v1443_v19 = vadd.f32 %v1403_v17, %v8103_v51  ;;  %v1589_v7 = vpop.f32.mrf.mxu3 }
 0x22f   : > { %v1791_v35 = vpop.f32.mrf.mxu0 }
 0x230   : > { %v1629_v47 = vadd.f32 %v1589_v7, %v1443_v19  ;;  %v8109_v19 = vld [vmem:[#allocation41_spill] sm:$0xff] }
 0x232   : > { %2128 = vmatmul.bf16.gmra.mxu2 %v8104_v18  ;;  %2500 = vmatmul.bf16.gmra.mxu0 %v8105_v10  ;;  %v6972_v32 = vadd.f32 %v1788_v4, %v1629_v47  ;;  %v1983_v62 = vpop.f32.mrf.mxu1  ;;  %v5850_v4 = vld [vmem:[#allocation7 + $0x78] sm:$0xff] }
 0x233   : > { %2314 = vmatmul.bf16.gmra.mxu3 %v8107_v60  ;;  %v5858_v60 = vld [vmem:[#allocation7 + $0xb8] sm:$0xff]  ;;  %3416 = vmatpush.bf16.msrb.mxu2 %v5850_v4 }
 0x234   : > { %8106 = vst [vmem:[#allocation34_spill] sm:$0xff] %v6972_v32  ;;  %v8111_v32 = vld [vmem:[#allocation16_spill] sm:$0xff]  ;;  %3692 = vmatpush.bf16.msrb.mxu3 %v5858_v60 }
 0x235   : > { %v1406_v61 = vpop.f32.mrf.mxu2 }
 0x236   : > { %v1444_v27 = vadd.f32 %v1406_v61, %v8108_v12  ;;  %v1592_v9 = vpop.f32.mrf.mxu3  ;;  %v8112_v12 = vld [vmem:[#allocation17_spill] sm:$0xff] }
 0x237   : > { %v1793_v5 = vpop.f32.mrf.mxu0 }
 0x238   : > { %v1630_v8 = vadd.f32 %v1592_v9, %v1444_v27 }
 0x23a   : > { %v1829_v39 = vadd.f32 %v1791_v35, %v1630_v8  ;;  %v6979_v10 = vpop.f32.mrf.mxu1 }
 0x23b   : > { %8110 = vst [vmem:[#allocation35_spill] sm:$0xff] %v6979_v10 }
 0x23c   : > { %v6976_v17 = vadd.f32 %v1983_v62, %v1829_v39  ;;  %v8113_v39 = vld [vmem:[#allocation43_spill] sm:$0xff] }
 0x23d   : > { %v1408_v51 = vpop.f32.mrf.mxu2 }
 0x23e   : > { %v1445_v7 = vadd.f32 %v1408_v51, %v8109_v19  ;;  %v1594_v18 = vpop.f32.mrf.mxu3 }
 0x23f   : > { %v1796_v57 = vpop.f32.mrf.mxu0 }
 0x240   : > { %v1631_v47 = vadd.f32 %v1594_v18, %v1445_v7  ;;  %v5866_v18 = vld [vmem:[#allocation7 + $0xf8] sm:$0xff] }
 0x241   : > { %3878 = vmatpush.bf16.msrb.mxu0 %v5866_v18 }
 0x242   : > { %2133 = vmatmul.bf16.gmra.mxu2 %v8111_v32  ;;  %2505 = vmatmul.bf16.gmra.mxu0 %v6769_v16  ;;  %v6983_v61 = vadd.f32 %v1793_v5, %v1631_v47  ;;  %v1988_v51 = vpop.f32.mrf.mxu1  ;;  %v5874_v32 = vld [vmem:[#allocation7 + $0x138] sm:$0xff]  ;;  %v8114_v16 = vld [vmem:[#allocation44_spill] sm:$0xff] }
 0x243   : > { %2319 = vmatmul.bf16.gmra.mxu3 %v8112_v12  ;;  %4077 = vmatpush.bf16.msrb.mxu1 %v5874_v32 }
 0x245   : > { %v1411_v8 = vpop.f32.mrf.mxu2 }
 0x246   : > { %v1446_v35 = vadd.f32 %v1411_v8, %v8113_v39  ;;  %v1597_v62 = vpop.f32.mrf.mxu3 }
 0x247   : > { %v1798_v27 = vpop.f32.mrf.mxu0 }
 0x248   : > { %v1632_v9 = vadd.f32 %v1597_v62, %v1446_v35 }
 0x24a   : > { %v1831_v19 = vadd.f32 %v1796_v57, %v1632_v9 }
 0x24c   : > { %v6987_v7 = vadd.f32 %v1988_v51, %v1831_v19  ;;  %v8115_v51 = vld [vmem:[#allocation45_spill] sm:$0xff] }
 0x24d   : > { %v1413_v10 = vpop.f32.mrf.mxu2 }
 0x24e   : > { %v1447_v5 = vadd.f32 %v1413_v10, %v8114_v16  ;;  %v1599_v47 = vpop.f32.mrf.mxu3 }
 0x24f   : > { %v2471_v4 = vpop.f32.mrf.mxu0 }
 0x250   : > { %v1633_v60 = vadd.f32 %v1599_v47, %v1447_v5  ;;  %v5849_v5 = vld [vmem:[#allocation7 + $0x70] sm:$0xff] }
 0x251   : > { %3417 = vmatpush.bf16.msrb.mxu2 %v5849_v5 }
 0x252   : > { %2138 = vmatmul.bf16.gmra.mxu2 %v6388_v30  ;;  %2510 = vmatmul.bf16.gmra.mxu0 %v6782_v0  ;;  %v6992_v12 = vadd.f32 %v1798_v27, %v1633_v60  ;;  %v5857_v0 = vld [vmem:[#allocation7 + $0xb0] sm:$0xff] }
 0x253   : > { %2324 = vmatmul.bf16.gmra.mxu3 %v6415_v63 }
 0x254   : > { %3693 = vmatpush.bf16.msrb.mxu3 %v5857_v0 }
 0x255   : > { %v2099_v57 = vpop.f32.mrf.mxu2 }
 0x256   : > { %v2179_v8 = vadd.f32 %v2099_v57, %v6776_v52  ;;  %v2285_v39 = vpop.f32.mrf.mxu3 }
 0x257   : > { %v2473_v35 = vpop.f32.mrf.mxu0 }
 0x258   : > { %v2365_v62 = vadd.f32 %v2285_v39, %v2179_v8 }
 0x25a   : > { %v2551_v10 = vadd.f32 %v2471_v4, %v2365_v62 }
 0x25c   : > { %v2583_v16 = vmax.f32 %v2551_v10, 0.0 }
 0x25d   : > { %v2101_v9 = vpop.f32.mrf.mxu2 }
 0x25e   : > { %v2180_v19 = vadd.f32 %v2101_v9, %v8115_v51  ;;  %v2287_v18 = vpop.f32.mrf.mxu3  ;;  %v2615_v63 = vpack.c.bf16 %v2583_v16, %v2583_v16  ;;  %v5865_v16 = vld [vmem:[#allocation7 + $0xf0] sm:$0xff] }
 0x25f   : > { %v2476_v32 = vpop.f32.mrf.mxu0  ;;  %3879 = vmatpush.bf16.msrb.mxu0 %v5865_v16 }
 0x260   : > { %v2366_v30 = vadd.f32 %v2287_v18, %v2180_v19  ;;  %v2747_v39 = vunpack.c.l.b16 %v2615_v63 }
 0x262   : > { %v2552_v27 = vadd.f32 %v2473_v35, %v2366_v30  ;;  %2143 = vmatmul.bf16.gmra.mxu2 %v6422_v2  ;;  %2515 = vmatmul.bf16.gmra.mxu0 %v6797_v40  ;;  %v5873_v30 = vld [vmem:[#allocation7 + $0x130] sm:$0xff] }
 0x263   : > { %2329 = vmatmul.bf16.gmra.mxu3 %v6449_v43  ;;  %4078 = vmatpush.bf16.msrb.mxu1 %v5873_v30  ;;  %v5848_v30 = vld [vmem:[#allocation7 + $0x68] sm:$0xff] }
 0x264   : > { %v2584_v52 = vmax.f32 %v2552_v27, 0.0  ;;  %3418 = vmatpush.bf16.msrb.mxu2 %v5848_v30 }
 0x265   : > { %v2104_v47 = vpop.f32.mrf.mxu2 }
 0x266   : > { %v2616_v4 = vpack.c.bf16 %v2584_v52, %v2584_v52  ;;  %v2181_v60 = vadd.f32 %v2104_v47, %v6791_v53  ;;  %v2290_v57 = vpop.f32.mrf.mxu3 }
 0x267   : > { %v2478_v8 = vpop.f32.mrf.mxu0 }
 0x268   : > { %v2748_v62 = vunpack.c.l.b16 %v2616_v4  ;;  %v2367_v10 = vadd.f32 %v2290_v57, %v2181_v60 }
 0x26a   : > { %v2779_v35 = vpack.c.b16 %v2748_v62, %v2747_v39  ;;  %v2553_v2 = vadd.f32 %v2476_v32, %v2367_v10 }
 0x26c   : > { %v2796_v9 = vshrl.u32 %v2779_v35, 16  ;;  %v2799_v40 = vshll.u32 %v2779_v35, 16  ;;  %v2585_v0 = vmax.f32 %v2553_v2, 0.0 }
 0x26d   : > { %v2106_v51 = vpop.f32.mrf.mxu2 }
 0x26e   : > { %v2182_v43 = vadd.f32 %v2106_v51, %v6802_v38  ;;  %v2292_v19 = vpop.f32.mrf.mxu3  ;;  %v7002_v18 = vrot.slane %v2796_v9, 7  ;;  %v2617_v32 = vpack.c.bf16 %v2585_v0, %v2585_v0  ;;  %v5856_v0 = vld [vmem:[#allocation7 + $0xa8] sm:$0xff] }
 0x26f   : > { %v2481_v5 = vpop.f32.mrf.mxu0  ;;  %3694 = vmatpush.bf16.msrb.mxu3 %v5856_v0  ;;  %v8118_v0 = vld [vmem:[#allocation47_spill] sm:$0xff] }
 0x270   : > { %v2368_v53 = vadd.f32 %v2292_v19, %v2182_v43  ;;  %v2801_v27 = vor.u32 %v2799_v40, %v7002_v18  ;;  %v2749_v39 = vunpack.c.l.b16 %v2617_v32 }
 0x272   : > { %v2554_v63 = vadd.f32 %v2478_v8, %v2368_v53  ;;  %2148 = vmatmul.bf16.gmra.mxu2 %v6456_v45  ;;  %2520 = vmatmul.bf16.gmra.mxu0 %v6812_v11  ;;  %v7009_v38 = vsel %vm6318_vm2, 0, %v2801_v27 }
 0x273   : > { %2334 = vmatmul.bf16.gmra.mxu3 %v6483_v26  ;;  %3048 = vmatmul.bf16.gmra.mxu1 %v7009_v38 }
 0x274   : > { %v2586_v52 = vmax.f32 %v2554_v63, 0.0 }
 0x275   : > { %v2109_v47 = vpop.f32.mrf.mxu2 }
 0x276   : > { %v2618_v4 = vpack.c.bf16 %v2586_v52, %v2586_v52  ;;  %v2183_v60 = vadd.f32 %v2109_v47, %v6806_v44  ;;  %v2295_v57 = vpop.f32.mrf.mxu3 }
 0x277   : > { %v2483_v8 = vpop.f32.mrf.mxu0 }
 0x278   : > { %v2750_v45 = vunpack.c.l.b16 %v2618_v4  ;;  %v2369_v62 = vadd.f32 %v2295_v57, %v2183_v60 }
 0x27a   : > { %v2780_v11 = vpack.c.b16 %v2750_v45, %v2749_v39  ;;  %v2555_v35 = vadd.f32 %v2481_v5, %v2369_v62 }
 0x27c   : > { %v2803_v10 = vshrl.u32 %v2780_v11, 16  ;;  %v2806_v26 = vshll.u32 %v2780_v11, 16  ;;  %v2587_v19 = vmax.f32 %v2555_v35, 0.0  ;;  %v5864_v35 = vld [vmem:[#allocation7 + $0xe8] sm:$0xff] }
 0x27d   : > { %v2111_v9 = vpop.f32.mrf.mxu2  ;;  %3880 = vmatpush.bf16.msrb.mxu0 %v5864_v35 }
 0x27e   : > { %v7014_v2 = vrot.slane %v2803_v10, 7  ;;  %v2184_v51 = vadd.f32 %v2111_v9, %v6817_v28  ;;  %v2297_v40 = vpop.f32.mrf.mxu3  ;;  %v2619_v28 = vpack.c.bf16 %v2587_v19, %v2587_v19  ;;  %v5872_v9 = vld [vmem:[#allocation7 + $0x128] sm:$0xff] }
 0x27f   : > { %v2486_v43 = vpop.f32.mrf.mxu0  ;;  %4079 = vmatpush.bf16.msrb.mxu1 %v5872_v9 }
 0x280   : > { %v2370_v16 = vadd.f32 %v2297_v40, %v2184_v51  ;;  %v2808_v44 = vor.u32 %v2806_v26, %v7014_v2  ;;  %v2751_v4 = vunpack.c.l.b16 %v2619_v28 }
 0x282   : > { %v2556_v53 = vadd.f32 %v2483_v8, %v2370_v16  ;;  %2153 = vmatmul.bf16.gmra.mxu2 %v6490_v33  ;;  %2525 = vmatmul.bf16.gmra.mxu0 %v6827_v13  ;;  %v7022_v5 = vsel %vm6318_vm2, 0, %v2808_v44 }
 0x283   : > { %8116 = vst [vmem:[#allocation23_spill] sm:$0xff] %v7022_v5  ;;  %2339 = vmatmul.bf16.gmra.mxu3 %v6517_v22  ;;  %3053 = vmatmul.bf16.gmra.mxu1 %v7022_v5 }
 0x284   : > { %v2588_v27 = vmax.f32 %v2556_v53, 0.0 }
 0x285   : > { %v2114_v63 = vpop.f32.mrf.mxu2 }
 0x286   : > { %v2620_v32 = vpack.c.bf16 %v2588_v27, %v2588_v27  ;;  %v2185_v52 = vadd.f32 %v2114_v63, %v6821_v37  ;;  %v2300_v47 = vpop.f32.mrf.mxu3 }
 0x287   : > { %v2488_v33 = vpop.f32.mrf.mxu0 }
 0x288   : > { %v2752_v13 = vunpack.c.l.b16 %v2620_v32  ;;  %v2371_v60 = vadd.f32 %v2300_v47, %v2185_v52  ;;  %v8119_v52 = vld [vmem:[#allocation24_spill] sm:$0xff]  ;;  %v8120_v47 = vld [vmem:[#allocation46_spill] sm:$0xff] }
 0x28a   : > { %v2781_v57 = vpack.c.b16 %v2752_v13, %v2751_v4  ;;  %v2557_v39 = vadd.f32 %v2486_v43, %v2371_v60 }
 0x28c   : > { %v2810_v8 = vshrl.u32 %v2781_v57, 16  ;;  %v2813_v62 = vshll.u32 %v2781_v57, 16  ;;  %v2589_v51 = vmax.f32 %v2557_v39, 0.0 }
 0x28d   : > { %v2116_v45 = vpop.f32.mrf.mxu2 }
 0x28e   : > { %v7027_v22 = vrot.slane %v2810_v8, 7  ;;  %v2186_v11 = vadd.f32 %v2116_v45, %v6832_v54  ;;  %v2302_v10 = vpop.f32.mrf.mxu3  ;;  %v2621_v54 = vpack.c.bf16 %v2589_v51, %v2589_v51  ;;  %v5847_v45 = vld [vmem:[#allocation7 + $0x60] sm:$0xff] }
 0x28f   : > { %v2491_v26 = vpop.f32.mrf.mxu0  ;;  %3419 = vmatpush.bf16.msrb.mxu2 %v5847_v45 }
 0x290   : > { %v2372_v37 = vadd.f32 %v2302_v10, %v2186_v11  ;;  %v2815_v40 = vor.u32 %v2813_v62, %v7027_v22  ;;  %v2753_v63 = vunpack.c.l.b16 %v2621_v54  ;;  %v5855_v62 = vld [vmem:[#allocation7 + $0xa0] sm:$0xff]  ;;  %v5862_v54 = vld [vmem:[#allocation7 + $0xd8] sm:$0xff] }
 0x291   : > { %v5863_v11 = vld [vmem:[#allocation7 + $0xe0] sm:$0xff]  ;;  %3695 = vmatpush.bf16.msrb.mxu3 %v5855_v62 }
 0x292   : > { %v2558_v19 = vadd.f32 %v2488_v33, %v2372_v37  ;;  %2158 = vmatmul.bf16.gmra.mxu2 %v6524_v24  ;;  %2530 = vmatmul.bf16.gmra.mxu0 %v6845_v41  ;;  %v7035_v43 = vsel %vm6318_vm2, 0, %v2815_v40  ;;  %v2002_v33 = vadd.f32 %v8120_v47, %v8119_v52  ;;  %v5846_v40 = vld [vmem:[#allocation7 + $0x58] sm:$0xff] }
 0x293   : > { %8117 = vst [vmem:[#allocation25_spill] sm:$0xff] %v7035_v43  ;;  %2344 = vmatmul.bf16.gmra.mxu3 %v6551_v50  ;;  %3058 = vmatmul.bf16.gmra.mxu1 %v7035_v43 }
 0x294   : > { %v2590_v16 = vmax.f32 %v2558_v19, 0.0  ;;  %3881 = vmatpush.bf16.msrb.mxu0 %v5863_v11  ;;  %v5854_v19 = vld [vmem:[#allocation7 + $0x98] sm:$0xff]  ;;  %3420 = vmatpush.bf16.msrb.mxu2 %v5846_v40  ;;  %v5871_v40 = vld [vmem:[#allocation7 + $0x120] sm:$0xff] }
 0x295   : > { %v2119_v44 = vpop.f32.mrf.mxu2  ;;  %3696 = vmatpush.bf16.msrb.mxu3 %v5854_v19  ;;  %v5843_v19 = vld [vmem:[#allocation7 + $0x40] sm:$0xff]  ;;  %4080 = vmatpush.bf16.msrb.mxu1 %v5871_v40 }
 0x296   : > { %v2622_v30 = vpack.c.bf16 %v2590_v16, %v2590_v16  ;;  %v2187_v53 = vadd.f32 %v2119_v44, %v8118_v0  ;;  %v2305_v28 = vpop.f32.mrf.mxu3  ;;  %v8122_v16 = vld [vmem:[#allocation27_spill] sm:$0xff] }
 0x297   : > { %v2493_v27 = vpop.f32.mrf.mxu0 }
 0x298   : > { %v2754_v24 = vunpack.c.l.b16 %v2622_v30  ;;  %v2373_v32 = vadd.f32 %v2305_v28, %v2187_v53  ;;  %3882 = vmatpush.bf16.msrb.mxu0 %v5862_v54  ;;  %v8123_v53 = vld [vmem:[#allocation49_spill] sm:$0xff]  ;;  %v5851_v54 = vld [vmem:[#allocation7 + $0x80] sm:$0xff] }
 0x29a   : > { %v2782_v41 = vpack.c.b16 %v2754_v24, %v2753_v63  ;;  %v2559_v13 = vadd.f32 %v2491_v26, %v2373_v32  ;;  %v5853_v63 = vld [vmem:[#allocation7 + $0x90] sm:$0xff] }
 0x29b   : > { %v5861_v24 = vld [vmem:[#allocation7 + $0xd0] sm:$0xff]  ;;  %3697 = vmatpush.bf16.msrb.mxu3 %v5853_v63 }
 0x29c   : > { %v2817_v4 = vshrl.u32 %v2782_v41, 16  ;;  %v2820_v57 = vshll.u32 %v2782_v41, 16  ;;  %v2591_v35 = vmax.f32 %v2559_v13, 0.0  ;;  %3883 = vmatpush.bf16.msrb.mxu0 %v5861_v24  ;;  %v5852_v13 = vld [vmem:[#allocation7 + $0x88] sm:$0xff] }
 0x29d   : > { %v2121_v50 = vpop.f32.mrf.mxu2 }
 0x29e   : > { %v7042_v60 = vrot.slane %v2817_v4, 7  ;;  %v2188_v8 = vadd.f32 %v2121_v50, %v2002_v33  ;;  %v2307_v39 = vpop.f32.mrf.mxu3  ;;  %v2623_v44 = vpack.c.bf16 %v2591_v35, %v2591_v35  ;;  %v5844_v4 = vld [vmem:[#allocation7 + $0x48] sm:$0xff] }
 0x29f   : > { %v2496_v10 = vpop.f32.mrf.mxu0  ;;  %v5860_v50 = vld [vmem:[#allocation7 + $0xc8] sm:$0xff]  ;;  %3698 = vmatpush.bf16.msrb.mxu3 %v5852_v13 }
 0x2a0   : > { %v2374_v9 = vadd.f32 %v2307_v39, %v2188_v8  ;;  %v2822_v51 = vor.u32 %v2820_v57, %v7042_v60  ;;  %v2755_v41 = vunpack.c.l.b16 %v2623_v44  ;;  %v8124_v57 = vld [vmem:[#allocation50_spill] sm:$0xff]  ;;  %v8125_v8 = vld [vmem:[#allocation48_spill] sm:$0xff]  ;;  %3884 = vmatpush.bf16.msrb.mxu0 %v5860_v50 }
 0x2a1   : > { %v2004_v39 = vadd.f32 %v8125_v8, %v8124_v57  ;;  %v5859_v44 = vld [vmem:[#allocation7 + $0xc0] sm:$0xff] }
 0x2a2   : > { %v2560_v37 = vadd.f32 %v2493_v27, %v2374_v9  ;;  %2163 = vmatmul.bf16.gmra.mxu2 %v6558_v34  ;;  %2535 = vmatmul.bf16.gmra.mxu0 %v6866_v42  ;;  %v7049_v26 = vsel %vm6318_vm2, 0, %v2822_v51  ;;  %v5845_v27 = vld [vmem:[#allocation7 + $0x50] sm:$0xff] }
 0x2a3   : > { %8121 = vst [vmem:[#allocation36_spill] sm:$0xff] %v7049_v26  ;;  %2349 = vmatmul.bf16.gmra.mxu3 %v8122_v16  ;;  %3063 = vmatmul.bf16.gmra.mxu1 %v7049_v26 }
 0x2a4   : > { %v2592_v30 = vmax.f32 %v2560_v37, 0.0  ;;  %3421 = vmatpush.bf16.msrb.mxu2 %v5845_v27  ;;  %3699 = vmatpush.bf16.msrb.mxu3 %v5851_v54 }
 0x2a5   : > { %v2124_v0 = vpop.f32.mrf.mxu2  ;;  %3885 = vmatpush.bf16.msrb.mxu0 %v5859_v44 }
 0x2a6   : > { %v2624_v34 = vpack.c.bf16 %v2592_v30, %v2592_v30  ;;  %v2189_v42 = vadd.f32 %v2124_v0, %v8123_v53  ;;  %v2310_v28 = vpop.f32.mrf.mxu3 }
 0x2a7   : > { %v2498_v32 = vpop.f32.mrf.mxu0 }
 0x2a8   : > { %v2756_v52 = vunpack.c.l.b16 %v2624_v34  ;;  %v2375_v47 = vadd.f32 %v2310_v28, %v2189_v42  ;;  %3422 = vmatpush.bf16.msrb.mxu2 %v5844_v4 }
 0x2aa   : > { %v2783_v33 = vpack.c.b16 %v2756_v52, %v2755_v41  ;;  %v2561_v62 = vadd.f32 %v2496_v10, %v2375_v47 }
 0x2ac   : > { %v2824_v45 = vshrl.u32 %v2783_v33, 16  ;;  %v2827_v9 = vshll.u32 %v2783_v33, 16  ;;  %v2593_v30 = vmax.f32 %v2561_v62, 0.0  ;;  %3423 = vmatpush.bf16.msrb.mxu2 %v5843_v19  ;;  %v2006_v33 = vadd.f32 %v6879_v58, %v6893_v6  ;;  %v8129_v6 = vld [vmem:[#allocation15_spill] sm:$0xff] }
 0x2ad   : > { %v2126_v11 = vpop.f32.mrf.mxu2 }
 0x2ae   : > { %v7056_v35 = vrot.slane %v2824_v45, 7  ;;  %v2190_v51 = vadd.f32 %v2126_v11, %v2004_v39  ;;  %v2312_v37 = vpop.f32.mrf.mxu3  ;;  %v2625_v42 = vpack.c.bf16 %v2593_v30, %v2593_v30 }
 0x2af   : > { %v2501_v16 = vpop.f32.mrf.mxu0 }
 0x2b0   : > { %v2376_v0 = vadd.f32 %v2312_v37, %v2190_v51  ;;  %v2829_v34 = vor.u32 %v2827_v9, %v7056_v35  ;;  %v2757_v52 = vunpack.c.l.b16 %v2625_v42  ;;  %v8127_v51 = vld [vmem:[#allocation29_spill] sm:$0xff] }
 0x2b2   : > { %v2562_v10 = vadd.f32 %v2498_v32, %v2376_v0  ;;  %2168 = vmatmul.bf16.gmra.mxu2 %v6863_v20  ;;  %2540 = vmatmul.bf16.gmra.mxu0 %v6889_v14  ;;  %v7063_v53 = vsel %vm6318_vm2, 0, %v2829_v34 }
 0x2b3   : > { %8126 = vst [vmem:[#allocation37_spill] sm:$0xff] %v7063_v53  ;;  %2354 = vmatmul.bf16.gmra.mxu3 %v6886_v46  ;;  %3068 = vmatmul.bf16.gmra.mxu1 %v7063_v53 }
 0x2b4   : > { %v2594_v28 = vmax.f32 %v2562_v10, 0.0 }
 0x2b5   : > { %v2129_v27 = vpop.f32.mrf.mxu2 }
 0x2b6   : > { %v2626_v63 = vpack.c.bf16 %v2594_v28, %v2594_v28  ;;  %v2191_v24 = vadd.f32 %v2129_v27, %v6881_v25  ;;  %v2315_v41 = vpop.f32.mrf.mxu3  ;;  %v2008_v28 = vadd.f32 %v6898_v59, %v6905_v31 }
 0x2b7   : > { %v2503_v32 = vpop.f32.mrf.mxu0 }
 0x2b8   : > { %v2758_v20 = vunpack.c.l.b16 %v2626_v63  ;;  %v2377_v47 = vadd.f32 %v2315_v41, %v2191_v24 }
 0x2ba   : > { %v2784_v14 = vpack.c.b16 %v2758_v20, %v2757_v52  ;;  %v2563_v13 = vadd.f32 %v2501_v16, %v2377_v47  ;;  %v5870_v47 = vld [vmem:[#allocation7 + $0x118] sm:$0xff] }
 0x2bb   : > { %4081 = vmatpush.bf16.msrb.mxu1 %v5870_v47 }
 0x2bc   : > { %v2831_v4 = vshrl.u32 %v2784_v14, 16  ;;  %v2834_v57 = vshll.u32 %v2784_v14, 16  ;;  %v2595_v62 = vmax.f32 %v2563_v13, 0.0 }
 0x2bd   : > { %v2131_v46 = vpop.f32.mrf.mxu2 }
 0x2be   : > { %v7070_v50 = vrot.slane %v2831_v4, 7  ;;  %v2192_v8 = vadd.f32 %v2131_v46, %v2006_v33  ;;  %v2317_v39 = vpop.f32.mrf.mxu3  ;;  %v2627_v37 = vpack.c.bf16 %v2595_v62, %v2595_v62 }
 0x2bf   : > { %v2506_v45 = vpop.f32.mrf.mxu0 }
 0x2c0   : > { %v2378_v25 = vadd.f32 %v2317_v39, %v2192_v8  ;;  %v2836_v11 = vor.u32 %v2834_v57, %v7070_v50  ;;  %v2759_v0 = vunpack.c.l.b16 %v2627_v37  ;;  %v3159_v8 = vshll.u32 %v7009_v38, 16  ;;  %v7096_v39 = vpop.f32.mrf.mxu1 }
 0x2c2   : > { %v2564_v9 = vadd.f32 %v2503_v32, %v2378_v25  ;;  %2173 = vmatmul.bf16.gmra.mxu2 %v8100_v21  ;;  %2545 = vmatmul.bf16.gmra.mxu0 %v8127_v51  ;;  %v7077_v58 = vsel %vm6318_vm2, 0, %v2836_v11 }
 0x2c3   : > { %8128 = vst [vmem:[#allocation26_spill] sm:$0xff] %v7077_v58  ;;  %2359 = vmatmul.bf16.gmra.mxu3 %v8129_v6  ;;  %3073 = vmatmul.bf16.gmra.mxu1 %v7077_v58 }
 0x2c4   : > { %v2596_v40 = vmax.f32 %v2564_v9, 0.0 }
 0x2c5   : > { %v2134_v19 = vpop.f32.mrf.mxu2 }
 0x2c6   : > { %v2628_v54 = vpack.c.bf16 %v2596_v40, %v2596_v40  ;;  %v2193_v16 = vadd.f32 %v2134_v19, %v6900_v56  ;;  %v2320_v44 = vpop.f32.mrf.mxu3  ;;  %v2955_v19 = vsel %vm6318_vm2, %v7002_v18, 0  ;;  %v3567_v18 = vrot.slane %v7009_v38, 1 }
 0x2c7   : > { %v2508_v30 = vpop.f32.mrf.mxu0 }
 0x2c8   : > { %v2760_v34 = vunpack.c.l.b16 %v2628_v54  ;;  %v2379_v10 = vadd.f32 %v2320_v44, %v2193_v16  ;;  %v3161_v54 = vrot.slane %v3159_v8, 1  ;;  %v3157_v44 = vshrl.u32 %v7009_v38, 16 }
 0x2ca   : > { %v2785_v42 = vpack.c.b16 %v2760_v34, %v2759_v0  ;;  %v2565_v63 = vadd.f32 %v2506_v45, %v2379_v10  ;;  %v2010_v0 = vadd.f32 %v6909_v3, %v6916_v1 }
 0x2cc   : > { %v2838_v27 = vshrl.u32 %v2785_v42, 16  ;;  %v2841_v32 = vshll.u32 %v2785_v42, 16  ;;  %v2597_v56 = vmax.f32 %v2565_v63, 0.0  ;;  %v3162_v42 = vor.u32 %v3161_v54, %v3157_v44  ;;  %v7107_v63 = vpop.f32.mrf.mxu1 }
 0x2cd   : > { %v2136_v24 = vpop.f32.mrf.mxu2  ;;  %v3169_v44 = vshrl.u32 %v7022_v5, 16 }
 0x2ce   : > { %v7084_v41 = vrot.slane %v2838_v27, 7  ;;  %v2194_v52 = vadd.f32 %v2136_v24, %v2008_v28  ;;  %v2322_v20 = vpop.f32.mrf.mxu3  ;;  %v2629_v31 = vpack.c.bf16 %v2597_v56, %v2597_v56 }
 0x2cf   : > { %v2511_v14 = vpop.f32.mrf.mxu0 }
 0x2d0   : > { %v2380_v33 = vadd.f32 %v2322_v20, %v2194_v52  ;;  %v2843_v4 = vor.u32 %v2841_v32, %v7084_v41  ;;  %v2761_v9 = vunpack.c.l.b16 %v2629_v31 }
 0x2d2   : > { %v2566_v13 = vadd.f32 %v2508_v30, %v2380_v33  ;;  %3424 = vmatmul.bf16.vlgmr.msrb.gmra.mxu2 %v8129_v6  ;;  %3886 = vmatmul.bf16.vlgmr.msrb.gmra.mxu0 %v7009_v38  ;;  %v7091_v59 = vsel %vm6318_vm2, 0, %v2843_v4  ;;  %v3164_v30 = vshll.u32 %v2955_v19, 16  ;;  %v3568_v33 = vrot.slane %v2955_v19, 1 }
 0x2d3   : > { %8130 = vst [vmem:[#allocation28_spill] sm:$0xff] %v7091_v59  ;;  %3700 = vmatmul.bf16.vlgmr.msrb.gmra.mxu3 %v8127_v51  ;;  %3078 = vmatmul.bf16.gmra.mxu1 %v7091_v59  ;;  %v2956_v19 = vsel %vm6318_vm2, %v7014_v2, 0  ;;  %v5869_v2 = vld [vmem:[#allocation7 + $0x110] sm:$0xff]  ;;  %v3579_v51 = vrot.slane %v7063_v53, 1 }
 0x2d4   : > { %v2598_v46 = vmax.f32 %v2566_v13, 0.0  ;;  %v3166_v20 = vrot.slane %v3164_v30, 1  ;;  %v7116_v4 = vsel %vm1197_vm4, %v3567_v18, %v3568_v33  ;;  %v3176_v30 = vshll.u32 %v2956_v19, 16  ;;  %4082 = vmatpush.bf16.msrb.mxu1 %v5869_v2 }
 0x2d5   : > { %v2139_v57 = vpop.f32.mrf.mxu2  ;;  %8131 = vst [vmem:[#allocation38_spill] sm:$0xff] %v7116_v4  ;;  %v3570_v18 = vrot.slane %v7022_v5, 1 }
 0x2d6   : > { %v2630_v45 = vpack.c.bf16 %v2598_v46, %v2598_v46  ;;  %v2195_v62 = vadd.f32 %v2139_v57, %v6911_v48  ;;  %v2325_v25 = vpop.f32.mrf.mxu3  ;;  %v7112_v1 = vsel %vm770_vm3, %v3162_v42, %v3166_v20  ;;  %v3171_v57 = vshll.u32 %v7022_v5, 16 }
 0x2d7   : > { %v2513_v11 = vpop.f32.mrf.mxu0 }
 0x2d8   : > { %v2762_v37 = vunpack.c.l.b16 %v2630_v45  ;;  %v2381_v40 = vadd.f32 %v2325_v25, %v2195_v62  ;;  %v3173_v54 = vrot.slane %v3171_v57, 1 }
 0x2da   : > { %v2786_v16 = vpack.c.b16 %v2762_v37, %v2761_v9  ;;  %v2567_v10 = vadd.f32 %v2511_v14, %v2381_v40  ;;  %v7127_v37 = vpop.f32.mrf.mxu1 }
 0x2dc   : > { %v2845_v34 = vshrl.u32 %v2786_v16, 16  ;;  %v2848_v27 = vshll.u32 %v2786_v16, 16  ;;  %v2599_v47 = vmax.f32 %v2567_v10, 0.0 }
 0x2dd   : > { %v2141_v48 = vpop.f32.mrf.mxu2 }
 0x2de   : > { %v7105_v28 = vrot.slane %v2845_v34, 7  ;;  %v2196_v24 = vadd.f32 %v2141_v48, %v2010_v0  ;;  %v2327_v32 = vpop.f32.mrf.mxu3  ;;  %v2631_v13 = vpack.c.bf16 %v2599_v47, %v2599_v47  ;;  %v2012_v0 = vadd.f32 %v6920_v23, %v6927_v36 }
 0x2df   : > { %v2516_v52 = vpop.f32.mrf.mxu0  ;;  %v3174_v48 = vor.u32 %v3173_v54, %v3169_v44  ;;  %v3178_v47 = vrot.slane %v3176_v30, 1  ;;  %v2957_v44 = vsel %vm6318_vm2, %v7027_v22, 0 }
 0x2e0   : > { %v2382_v56 = vadd.f32 %v2327_v32, %v2196_v24  ;;  %v2850_v3 = vor.u32 %v2848_v27, %v7105_v28 }
 0x2e1   : > { %v7142_v36 = vsel %vm770_vm3, %v3174_v48, %v3178_v47  ;;  %v8136_v48 = vld [vmem:[#allocation18_spill] sm:$0xff] }
 0x2e2   : > { %v2568_v14 = vadd.f32 %v2513_v11, %v2382_v56  ;;  %3429 = vmatmul.bf16.gmra.mxu2 %v7112_v1  ;;  %3891 = vmatmul.bf16.gmra.mxu0 %v7022_v5  ;;  %v7121_v38 = vsel %vm6318_vm2, 0, %v2850_v3  ;;  %v2763_v11 = vunpack.c.l.b16 %v2631_v13 }
 0x2e3   : > { %8132 = vst [vmem:[#allocation39_spill] sm:$0xff] %v7121_v38  ;;  %3705 = vmatmul.bf16.gmra.mxu3 %v7116_v4  ;;  %3083 = vmatmul.bf16.gmra.mxu1 %v7121_v38 }
 0x2e4   : > { %v2600_v31 = vmax.f32 %v2568_v14, 0.0  ;;  %v3571_v14 = vrot.slane %v2956_v19, 1 }
 0x2e5   : > { %v2144_v46 = vpop.f32.mrf.mxu2 }
 0x2e6   : > { %v2632_v8 = vpack.c.bf16 %v2600_v31, %v2600_v31  ;;  %v2197_v45 = vadd.f32 %v2144_v46, %v6922_v55  ;;  %v2330_v62 = vpop.f32.mrf.mxu3  ;;  %v7146_v13 = vsel %vm1197_vm4, %v3570_v18, %v3571_v14  ;;  %v3573_v14 = vrot.slane %v7035_v43, 1 }
 0x2e7   : > { %v2518_v25 = vpop.f32.mrf.mxu0  ;;  %8133 = vst [vmem:[#allocation12_spill] sm:$0xff] %v7146_v13 }
 0x2e8   : > { %v2764_v9 = vunpack.c.l.b16 %v2632_v8  ;;  %v2383_v40 = vadd.f32 %v2330_v62, %v2197_v45  ;;  %v3183_v45 = vshll.u32 %v7035_v43, 16 }
 0x2ea   : > { %v2787_v16 = vpack.c.b16 %v2764_v9, %v2763_v11  ;;  %v2569_v34 = vadd.f32 %v2516_v52, %v2383_v40  ;;  %v3185_v30 = vrot.slane %v3183_v45, 1 }
 0x2ec   : > { %v2852_v55 = vshrl.u32 %v2787_v16, 16  ;;  %v2855_v27 = vshll.u32 %v2787_v16, 16  ;;  %v2601_v56 = vmax.f32 %v2569_v34, 0.0  ;;  %v3188_v34 = vshll.u32 %v2957_v44, 16 }
 0x2ed   : > { %v2146_v10 = vpop.f32.mrf.mxu2 }
 0x2ee   : > { %v7135_v42 = vrot.slane %v2852_v55, 7  ;;  %v2198_v24 = vadd.f32 %v2146_v10, %v2012_v0  ;;  %v2332_v32 = vpop.f32.mrf.mxu3  ;;  %v2633_v46 = vpack.c.bf16 %v2601_v56, %v2601_v56  ;;  %v3181_v55 = vshrl.u32 %v7035_v43, 16  ;;  %v8135_v10 = vld [vmem:[#allocation30_spill] sm:$0xff] }
 0x2ef   : > { %v2521_v20 = vpop.f32.mrf.mxu0 }
 0x2f0   : > { %v2384_v33 = vadd.f32 %v2332_v32, %v2198_v24  ;;  %v7138_v3 = vpop.f32.mrf.mxu1  ;;  %v2857_v23 = vor.u32 %v2855_v27, %v7135_v42  ;;  %v2765_v40 = vunpack.c.l.b16 %v2633_v46  ;;  %v2014_v27 = vadd.f32 %v8136_v48, %v8135_v10 }
 0x2f1   : > { %v3186_v18 = vor.u32 %v3185_v30, %v3181_v55 }
 0x2f2   : > { %v2570_v52 = vadd.f32 %v2518_v25, %v2384_v33  ;;  %3434 = vmatmul.bf16.gmra.mxu2 %v7142_v36  ;;  %3896 = vmatmul.bf16.gmra.mxu0 %v7035_v43  ;;  %v7151_v31 = vsel %vm6318_vm2, 0, %v2857_v23  ;;  %v3190_v23 = vrot.slane %v3188_v34, 1 }
 0x2f3   : > { %8134 = vst [vmem:[#allocation42_spill] sm:$0xff] %v7151_v31  ;;  %3710 = vmatmul.bf16.gmra.mxu3 %v7146_v13  ;;  %3088 = vmatmul.bf16.gmra.mxu1 %v7151_v31 }
 0x2f4   : > { %v2602_v57 = vmax.f32 %v2570_v52, 0.0 }
 0x2f5   : > { %v2149_v8 = vpop.f32.mrf.mxu2 }
 0x2f6   : > { %v2634_v62 = vpack.c.bf16 %v2602_v57, %v2602_v57  ;;  %v2199_v25 = vadd.f32 %v2149_v8, %v6933_v29  ;;  %v2335_v11 = vpop.f32.mrf.mxu3  ;;  %v3574_v8 = vrot.slane %v2957_v44, 1 }
 0x2f7   : > { %v2523_v9 = vpop.f32.mrf.mxu0 }
 0x2f8   : > { %v2766_v19 = vunpack.c.l.b16 %v2634_v62  ;;  %v2385_v54 = vadd.f32 %v2335_v11, %v2199_v25  ;;  %v7157_v16 = vpop.f32.mrf.mxu1  ;;  %v7176_v25 = vsel %vm1197_vm4, %v3573_v14, %v3574_v8 }
 0x2f9   : > { %8137 = vst [vmem:[#allocation14_spill] sm:$0xff] %v7176_v25 }
 0x2fa   : > { %v2788_v0 = vpack.c.b16 %v2766_v19, %v2765_v40  ;;  %v2571_v24 = vadd.f32 %v2521_v20, %v2385_v54  ;;  %v7172_v20 = vsel %vm770_vm3, %v3186_v18, %v3190_v23  ;;  %v3193_v18 = vshrl.u32 %v7049_v26, 16 }
 0x2fc   : > { %v2859_v29 = vshrl.u32 %v2788_v0, 16  ;;  %v2862_v47 = vshll.u32 %v2788_v0, 16  ;;  %v2603_v52 = vmax.f32 %v2571_v24, 0.0 }
 0x2fd   : > { %v2151_v32 = vpop.f32.mrf.mxu2 }
 0x2fe   : > { %v7165_v2 = vrot.slane %v2859_v29, 7  ;;  %v2200_v56 = vadd.f32 %v2151_v32, %v2014_v27  ;;  %v2337_v33 = vpop.f32.mrf.mxu3  ;;  %v2635_v40 = vpack.c.bf16 %v2603_v52, %v2603_v52  ;;  %v2958_v29 = vsel %vm6318_vm2, %v7042_v60, 0  ;;  %v5868_v60 = vld [vmem:[#allocation7 + $0x108] sm:$0xff] }
 0x2ff   : > { %v2526_v22 = vpop.f32.mrf.mxu0  ;;  %4083 = vmatpush.bf16.msrb.mxu1 %v5868_v60 }
 0x300   : > { %v2386_v46 = vadd.f32 %v2337_v33, %v2200_v56  ;;  %v7168_v57 = vpop.f32.mrf.mxu1  ;;  %v2864_v45 = vor.u32 %v2862_v47, %v7165_v2  ;;  %v2767_v34 = vunpack.c.l.b16 %v2635_v40  ;;  %v3200_v47 = vshll.u32 %v2958_v29, 16  ;;  %v8139_v56 = vld [vmem:[#allocation19_spill] sm:$0xff] }
 0x301   : > { %v8140_v33 = vld [vmem:[#allocation31_spill] sm:$0xff] }
 0x302   : > { %v2572_v62 = vadd.f32 %v2523_v9, %v2386_v46  ;;  %3439 = vmatmul.bf16.gmra.mxu2 %v7172_v20  ;;  %3901 = vmatmul.bf16.gmra.mxu0 %v7049_v26  ;;  %v7181_v11 = vsel %vm6318_vm2, 0, %v2864_v45  ;;  %v3195_v9 = vshll.u32 %v7049_v26, 16  ;;  %v2016_v14 = vadd.f32 %v8140_v33, %v8139_v56  ;;  %v8143_v33 = vld [vmem:[#allocation32_spill] sm:$0xff] }
 0x303   : > { %8138 = vst [vmem:[#allocation40_spill] sm:$0xff] %v7181_v11  ;;  %3715 = vmatmul.bf16.gmra.mxu3 %v7176_v25  ;;  %3093 = vmatmul.bf16.gmra.mxu1 %v7181_v11 }
 0x304   : > { %v2604_v19 = vmax.f32 %v2572_v62, 0.0  ;;  %v3197_v24 = vrot.slane %v3195_v9, 1  ;;  %v3202_v9 = vrot.slane %v3200_v47, 1 }
 0x305   : > { %v2154_v54 = vpop.f32.mrf.mxu2 }
 0x306   : > { %v2636_v44 = vpack.c.bf16 %v2604_v19, %v2604_v19  ;;  %v2201_v30 = vadd.f32 %v2154_v54, %v6944_v49  ;;  %v2340_v0 = vpop.f32.mrf.mxu3  ;;  %v3198_v46 = vor.u32 %v3197_v24, %v3193_v18  ;;  %v3576_v19 = vrot.slane %v7049_v26, 1 }
 0x307   : > { %v2528_v55 = vpop.f32.mrf.mxu0 }
 0x308   : > { %v2768_v10 = vunpack.c.l.b16 %v2636_v44  ;;  %v2387_v48 = vadd.f32 %v2340_v0, %v2201_v30  ;;  %v7187_v27 = vpop.f32.mrf.mxu1 }
 0x30a   : > { %v2789_v32 = vpack.c.b16 %v2768_v10, %v2767_v34  ;;  %v2573_v23 = vadd.f32 %v2526_v22, %v2387_v48  ;;  %v3577_v34 = vrot.slane %v2958_v29, 1  ;;  %v7202_v22 = vsel %vm770_vm3, %v3198_v46, %v3202_v9 }
 0x30b   : > { %v3205_v9 = vshrl.u32 %v7063_v53, 16 }
 0x30c   : > { %v2866_v49 = vshrl.u32 %v2789_v32, 16  ;;  %v2869_v45 = vshll.u32 %v2789_v32, 16  ;;  %v2605_v44 = vmax.f32 %v2573_v23, 0.0  ;;  %v7206_v24 = vsel %vm1197_vm4, %v3576_v19, %v3577_v34  ;;  %v8145_v34 = vld [vmem:[#allocation20_spill] sm:$0xff] }
 0x30d   : > { %v2156_v52 = vpop.f32.mrf.mxu2  ;;  %8141 = vst [vmem:[#allocation41_spill] sm:$0xff] %v7206_v24 }
 0x30e   : > { %v7195_v8 = vrot.slane %v2866_v49, 7  ;;  %v2202_v62 = vadd.f32 %v2156_v52, %v2016_v14  ;;  %v2342_v40 = vpop.f32.mrf.mxu3  ;;  %v2637_v29 = vpack.c.bf16 %v2605_v44, %v2605_v44 }
 0x30f   : > { %v2531_v54 = vpop.f32.mrf.mxu0 }
 0x310   : > { %v2388_v30 = vadd.f32 %v2342_v40, %v2202_v62  ;;  %v7198_v0 = vpop.f32.mrf.mxu1  ;;  %v2871_v10 = vor.u32 %v2869_v45, %v7195_v8  ;;  %v2769_v52 = vunpack.c.l.b16 %v2637_v29  ;;  %v2959_v40 = vsel %vm6318_vm2, %v7056_v35, 0 }
 0x311   : > { %v3212_v44 = vshll.u32 %v2959_v40, 16  ;;  %v3580_v6 = vrot.slane %v2959_v40, 1 }
 0x312   : > { %v2574_v48 = vadd.f32 %v2528_v55, %v2388_v30  ;;  %3444 = vmatmul.bf16.gmra.mxu2 %v7202_v22  ;;  %3906 = vmatmul.bf16.gmra.mxu0 %v7063_v53  ;;  %v7211_v32 = vsel %vm6318_vm2, 0, %v2871_v10  ;;  %v3207_v55 = vshll.u32 %v7063_v53, 16  ;;  %v8144_v30 = vld [vmem:[#allocation33_spill] sm:$0xff] }
 0x313   : > { %8142 = vst [vmem:[#allocation16_spill] sm:$0xff] %v7211_v32  ;;  %3720 = vmatmul.bf16.gmra.mxu3 %v7206_v24  ;;  %3098 = vmatmul.bf16.gmra.mxu1 %v7211_v32  ;;  %v2018_v10 = vadd.f32 %v8145_v34, %v8144_v30  ;;  %v3582_v24 = vrot.slane %v7077_v58, 1 }
 0x314   : > { %v2606_v18 = vmax.f32 %v2574_v48, 0.0  ;;  %v3209_v19 = vrot.slane %v3207_v55, 1  ;;  %v3214_v55 = vrot.slane %v3212_v44, 1 }
 0x315   : > { %v2159_v47 = vpop.f32.mrf.mxu2 }
 0x316   : > { %v2638_v56 = vpack.c.bf16 %v2606_v18, %v2606_v18  ;;  %v2203_v14 = vadd.f32 %v2159_v47, %v8143_v33  ;;  %v2345_v49 = vpop.f32.mrf.mxu3  ;;  %v3210_v29 = vor.u32 %v3209_v19, %v3205_v9  ;;  %v7236_v19 = vsel %vm1197_vm4, %v3579_v51, %v3580_v6 }
 0x317   : > { %v2533_v23 = vpop.f32.mrf.mxu0  ;;  %8146 = vst [vmem:[#allocation17_spill] sm:$0xff] %v7236_v19 }
 0x318   : > { %v2770_v46 = vunpack.c.l.b16 %v2638_v56  ;;  %v2389_v45 = vadd.f32 %v2345_v49, %v2203_v14  ;;  %v7217_v62 = vpop.f32.mrf.mxu1 }
 0x31a   : > { %v2790_v60 = vpack.c.b16 %v2770_v46, %v2769_v52  ;;  %v2575_v18 = vadd.f32 %v2531_v54, %v2389_v45  ;;  %v7232_v54 = vsel %vm770_vm3, %v3210_v29, %v3214_v55 }
 0x31c   : > { %v2873_v48 = vshrl.u32 %v2790_v60, 16  ;;  %v2876_v33 = vshll.u32 %v2790_v60, 16  ;;  %v2607_v52 = vmax.f32 %v2575_v18, 0.0 }
 0x31d   : > { %v2161_v47 = vpop.f32.mrf.mxu2 }
 0x31e   : > { %v7225_v56 = vrot.slane %v2873_v48, 7  ;;  %v2204_v14 = vadd.f32 %v2161_v47, %v2018_v10  ;;  %v2347_v49 = vpop.f32.mrf.mxu3  ;;  %v2639_v40 = vpack.c.bf16 %v2607_v52, %v2607_v52  ;;  %v8148_v10 = vld [vmem:[#allocation22_spill] sm:$0xff]  ;;  %v3217_v52 = vshrl.u32 %v7077_v58, 16 }
 0x31f   : > { %v2536_v35 = vpop.f32.mrf.mxu0 }
 0x320   : > { %v2390_v46 = vadd.f32 %v2347_v49, %v2204_v14  ;;  %v7228_v21 = vpop.f32.mrf.mxu1  ;;  %v2878_v30 = vor.u32 %v2876_v33, %v7225_v56  ;;  %v2771_v18 = vunpack.c.l.b16 %v2639_v40  ;;  %v2960_v14 = vsel %vm6318_vm2, %v7070_v50, 0  ;;  %v5867_v50 = vld [vmem:[#allocation7 + $0x100] sm:$0xff] }
 0x321   : > { %v3583_v43 = vrot.slane %v2960_v14, 1  ;;  %4084 = vmatpush.bf16.msrb.mxu1 %v5867_v50 }
 0x322   : > { %v2576_v45 = vadd.f32 %v2533_v23, %v2390_v46  ;;  %3449 = vmatmul.bf16.gmra.mxu2 %v7232_v54  ;;  %3911 = vmatmul.bf16.gmra.mxu0 %v7077_v58  ;;  %v7241_v60 = vsel %vm6318_vm2, 0, %v2878_v30  ;;  %v3219_v23 = vshll.u32 %v7077_v58, 16  ;;  %v3224_v46 = vshll.u32 %v2960_v14, 16  ;;  %v8149_v30 = vld [vmem:[#allocation34_spill] sm:$0xff] }
 0x323   : > { %8147 = vst [vmem:[#allocation43_spill] sm:$0xff] %v7241_v60  ;;  %3725 = vmatmul.bf16.gmra.mxu3 %v7236_v19  ;;  %3103 = vmatmul.bf16.gmra.mxu1 %v7241_v60 }
 0x324   : > { %v2608_v9 = vmax.f32 %v2576_v45, 0.0  ;;  %v3221_v49 = vrot.slane %v3219_v23, 1  ;;  %v8150_v45 = vld [vmem:[#allocation21_spill] sm:$0xff] }
 0x325   : > { %v2164_v44 = vpop.f32.mrf.mxu2 }
 0x326   : > { %v2640_v34 = vpack.c.bf16 %v2608_v9, %v2608_v9  ;;  %v2205_v48 = vadd.f32 %v2164_v44, %v8148_v10  ;;  %v2350_v51 = vpop.f32.mrf.mxu3  ;;  %v2020_v9 = vadd.f32 %v8150_v45, %v8149_v30  ;;  %v3222_v40 = vor.u32 %v3221_v49, %v3217_v52 }
 0x327   : > { %v2538_v6 = vpop.f32.mrf.mxu0 }
 0x328   : > { %v2772_v47 = vunpack.c.l.b16 %v2640_v34  ;;  %v2391_v29 = vadd.f32 %v2350_v51, %v2205_v48  ;;  %v7247_v33 = vpop.f32.mrf.mxu1 }
 0x32a   : > { %v2791_v55 = vpack.c.b16 %v2772_v47, %v2771_v18  ;;  %v2577_v10 = vadd.f32 %v2536_v35, %v2391_v29  ;;  %v3226_v18 = vrot.slane %v3224_v46, 1 }
 0x32c   : > { %v2880_v44 = vshrl.u32 %v2791_v55, 16  ;;  %v2883_v48 = vshll.u32 %v2791_v55, 16  ;;  %v2609_v47 = vmax.f32 %v2577_v10, 0.0  ;;  %v7262_v35 = vsel %vm770_vm3, %v3222_v40, %v3226_v18  ;;  %v8153_v18 = vld [vmem:[#allocation35_spill] sm:$0xff] }
 0x32d   : > { %v2166_v19 = vpop.f32.mrf.mxu2  ;;  %v2961_v10 = vsel %vm6318_vm2, %v7084_v41, 0  ;;  %v3585_v41 = vrot.slane %v7091_v59, 1 }
 0x32e   : > { %v7255_v34 = vrot.slane %v2880_v44, 7  ;;  %v2206_v51 = vadd.f32 %v2166_v19, %v2020_v9  ;;  %v2352_v53 = vpop.f32.mrf.mxu3  ;;  %v7266_v19 = vsel %vm1197_vm4, %v3582_v24, %v3583_v43  ;;  %v2641_v14 = vpack.c.bf16 %v2609_v47, %v2609_v47 }
 0x32f   : > { %v2541_v23 = vpop.f32.mrf.mxu0  ;;  %8151 = vst [vmem:[#allocation44_spill] sm:$0xff] %v7266_v19  ;;  %v3236_v50 = vshll.u32 %v2961_v10, 16  ;;  %v2022_v47 = vadd.f32 %v8153_v18, %v6983_v61 }
 0x330   : > { %v2392_v26 = vadd.f32 %v2352_v53, %v2206_v51  ;;  %v7258_v25 = vpop.f32.mrf.mxu1  ;;  %v2885_v30 = vor.u32 %v2883_v48, %v7255_v34  ;;  %v2773_v46 = vunpack.c.l.b16 %v2641_v14  ;;  %v3229_v51 = vshrl.u32 %v7091_v59, 16  ;;  %v5890_v14 = vld [vmem:[#allocation7 + $0x1b8] sm:$0xff] }
 0x331   : > { %4455 = vmatpush.bf16.msra.mxu3 %v5890_v14 }
 0x332   : > { %v2578_v29 = vadd.f32 %v2538_v6, %v2392_v26  ;;  %3454 = vmatmul.bf16.gmra.mxu2 %v7262_v35  ;;  %3916 = vmatmul.bf16.gmra.mxu0 %v7091_v59  ;;  %v7271_v53 = vsel %vm6318_vm2, 0, %v2885_v30  ;;  %v3231_v26 = vshll.u32 %v7091_v59, 16 }
 0x333   : > { %8152 = vst [vmem:[#allocation45_spill] sm:$0xff] %v7271_v53  ;;  %3730 = vmatmul.bf16.gmra.mxu3 %v7266_v19  ;;  %3108 = vmatmul.bf16.gmra.mxu1 %v7271_v53 }
 0x334   : > { %v2610_v49 = vmax.f32 %v2578_v29, 0.0  ;;  %v3233_v40 = vrot.slane %v3231_v26, 1  ;;  %v5882_v29 = vld [vmem:[#allocation7 + $0x178] sm:$0xff] }
 0x335   : > { %v2169_v55 = vpop.f32.mrf.mxu2  ;;  %4269 = vmatpush.bf16.msra.mxu2 %v5882_v29 }
 0x336   : > { %v2642_v6 = vpack.c.bf16 %v2610_v49, %v2610_v49  ;;  %v2207_v52 = vadd.f32 %v2169_v55, %v6976_v17  ;;  %v2355_v43 = vpop.f32.mrf.mxu3  ;;  %v3234_v55 = vor.u32 %v3233_v40, %v3229_v51  ;;  %v5898_v51 = vld [vmem:[#allocation7 + $0x1f8] sm:$0xff] }
 0x337   : > { %v2543_v24 = vpop.f32.mrf.mxu0  ;;  %4641 = vmatpush.bf16.msra.mxu0 %v5898_v51  ;;  %v7316_v51 = vld [vmem:[%s7953_s4] ss:$0 sm:$0xff] }
 0x338   : > { %v2774_v45 = vunpack.c.l.b16 %v2642_v6  ;;  %v2393_v9 = vadd.f32 %v2355_v43, %v2207_v52  ;;  %v7277_v44 = vpop.f32.mrf.mxu1 }
 0x33a   : > { %v2792_v48 = vpack.c.b16 %v2774_v45, %v2773_v46  ;;  %v2579_v30 = vadd.f32 %v2541_v23, %v2393_v9  ;;  %v3238_v46 = vrot.slane %v3236_v50, 1  ;;  %v3586_v23 = vrot.slane %v2961_v10, 1  ;;  %v5906_v10 = vld [vmem:[#allocation7 + $0x238] sm:$0xff] }
 0x33b   : > { %4827 = vmatpush.bf16.msra.mxu1 %v5906_v10  ;;  %v2024_v10 = vadd.f32 %v7096_v39, %v6992_v12 }
 0x33c   : > { %v2887_v17 = vshrl.u32 %v2792_v48, 16  ;;  %v2890_v52 = vshll.u32 %v2792_v48, 16  ;;  %v2611_v45 = vmax.f32 %v2579_v30, 0.0  ;;  %v7292_v40 = vsel %vm770_vm3, %v3234_v55, %v3238_v46 }
 0x33d   : > { %v2171_v49 = vpop.f32.mrf.mxu2  ;;  %v7296_v18 = vsel %vm1197_vm4, %v3585_v41, %v3586_v23  ;;  %v2962_v46 = vsel %vm6318_vm2, %v7105_v28, 0 }
 0x33e   : > { %v7285_v6 = vrot.slane %v2887_v17, 7  ;;  %v2208_v43 = vadd.f32 %v2171_v49, %v2022_v47  ;;  %v2357_v19 = vpop.f32.mrf.mxu3  ;;  %8154 = vst [vmem:[#allocation47_spill] sm:$0xff] %v7296_v18  ;;  %v2643_v50 = vpack.c.bf16 %v2611_v45, %v2611_v45  ;;  %v279_v49 = vld [vmem:[%s6307_s28] sm:$0xff]   ;;  %v3589_v12 = vrot.slane %v2962_v46, 1 }
 0x33f   : > { %v2546_v26 = vpop.f32.mrf.mxu0 }
 0x340   : > { %v2394_v58 = vadd.f32 %v2357_v19, %v2208_v43  ;;  %v7288_v61 = vpop.f32.mrf.mxu1  ;;  %v2892_v9 = vor.u32 %v2890_v52, %v7285_v6  ;;  %v2775_v55 = vunpack.c.l.b16 %v2643_v50 }
 0x342   : > { %v2580_v48 = vadd.f32 %v2543_v24, %v2394_v58  ;;  %3459 = vmatmul.bf16.gmra.mxu2 %v7292_v40  ;;  %3921 = vmatmul.bf16.gmra.mxu0 %v7121_v38  ;;  %v7301_v19 = vsel %vm6318_vm2, 0, %v2892_v9  ;;  %v3243_v24 = vshll.u32 %v7121_v38, 16  ;;  %v2647_v9 = vunpack.c.l.bf16 %v279_v49 }
 0x343   : > { %8155 = vst [vmem:[#allocation24_spill] sm:$0xff] %v7301_v19  ;;  %3735 = vmatmul.bf16.gmra.mxu3 %v7296_v18  ;;  %3113 = vmatmul.bf16.gmra.mxu1 %v7301_v19 }
 0x344   : > { %v2612_v47 = vmax.f32 %v2580_v48, 0.0  ;;  %v3245_v45 = vrot.slane %v3243_v24, 1  ;;  %v3248_v48 = vshll.u32 %v2962_v46, 16 }
 0x345   : > { %v2174_v58 = vpop.f32.mrf.mxu2 }
 0x346   : > { %v2644_v17 = vpack.c.bf16 %v2612_v47, %v2612_v47  ;;  %v2209_v30 = vadd.f32 %v2174_v58, %v6987_v7  ;;  %v2360_v29 = vpop.f32.mrf.mxu3  ;;  %v3241_v7 = vshrl.u32 %v7121_v38, 16  ;;  %v3250_v59 = vrot.slane %v3248_v48, 1 }
 0x347   : > { %v2548_v14 = vpop.f32.mrf.mxu0 }
 0x348   : > { %v2776_v52 = vunpack.c.l.b16 %v2644_v17  ;;  %v2395_v43 = vadd.f32 %v2360_v29, %v2209_v30  ;;  %v7308_v41 = vpop.f32.mrf.mxu1  ;;  %v3246_v17 = vor.u32 %v3245_v45, %v3241_v7  ;;  %v3255_v7 = vshll.u32 %v7151_v31, 16 }
 0x34a   : > { %v2793_v23 = vpack.c.b16 %v2776_v52, %v2775_v55  ;;  %v2581_v47 = vadd.f32 %v2546_v26, %v2395_v43  ;;  %v3588_v55 = vrot.slane %v7121_v38, 1  ;;  %v2683_v52 = vadd.f32 %v7316_v51, %v2647_v9 }
 0x34b   : > { %v7329_v26 = vsel %vm770_vm3, %v3246_v17, %v3250_v59  ;;  %v2648_v9 = vunpack.c.h.bf16 %v279_v49 }
 0x34c   : > { %v2894_v50 = vshrl.u32 %v2793_v23, 16  ;;  %v2897_v28 = vshll.u32 %v2793_v23, 16  ;;  %v2613_v13 = vmax.f32 %v2581_v47, 0.0  ;;  %v7333_v45 = vsel %vm1197_vm4, %v3588_v55, %v3589_v12 }
 0x34d   : > { %v2176_v58 = vpop.f32.mrf.mxu2  ;;  %8156 = vst [vmem:[#allocation46_spill] sm:$0xff] %v7333_v45  ;;  %v3124_v59 = vadd.f32 %v7107_v63, %v2683_v52  ;;  %v2684_v47 = vadd.f32 %v7316_v51, %v2648_v9  ;;  %v2963_v63 = vsel %vm6318_vm2, %v7135_v42, 0  ;;  %v3257_v55 = vrot.slane %v3255_v7, 1  ;;  %v5889_v52 = vld [vmem:[#allocation7 + $0x1b0] sm:$0xff] }
 0x34e   : > { %v7321_v30 = vrot.slane %v2894_v50, 7  ;;  %v2210_v24 = vadd.f32 %v2176_v58, %v2024_v10  ;;  %v2362_v29 = vpop.f32.mrf.mxu3  ;;  %v3260_v9 = vshll.u32 %v2963_v63, 16  ;;  %4456 = vmatpush.bf16.msra.mxu3 %v5889_v52  ;;  %v5897_v52 = vld [vmem:[#allocation7 + $0x1f0] sm:$0xff] }
 0x34f   : > { %v3887_v18 = vpop.f32.mrf.mxu0  ;;  %4642 = vmatpush.bf16.msra.mxu0 %v5897_v52 }
 0x350   : > { %v2396_v5 = vadd.f32 %v2362_v29, %v2210_v24  ;;  %v7325_v4 = vpop.f32.mrf.mxu1  ;;  %v2899_v39 = vor.u32 %v2897_v28, %v7321_v30  ;;  %v281_v29 = vld [vmem:[%s6307_s28 + $0x8] sm:$0xff]  }
 0x352   : > { %v2582_v43 = vadd.f32 %v2548_v14, %v2396_v5  ;;  %3464 = vmatmul.bf16.gmra.mxu2 %v7329_v26  ;;  %3926 = vmatmul.bf16.gmra.mxu0 %v7151_v31  ;;  %v7338_v23 = vsel %vm6318_vm2, 0, %v2899_v39  ;;  %v2645_v5 = vpack.c.bf16 %v2613_v13, %v2613_v13  ;;  %v5881_v13 = vld [vmem:[#allocation7 + $0x170] sm:$0xff] }
 0x353   : > { %8157 = vst [vmem:[#allocation27_spill] sm:$0xff] %v7338_v23  ;;  %3740 = vmatmul.bf16.gmra.mxu3 %v7333_v45  ;;  %3118 = vmatmul.bf16.gmra.mxu1 %v7338_v23 }
 0x354   : > { %v2614_v14 = vmax.f32 %v2582_v43, 0.0  ;;  %v2777_v17 = vunpack.c.l.b16 %v2645_v5  ;;  %4270 = vmatpush.bf16.msra.mxu2 %v5881_v13  ;;  %v3253_v43 = vshrl.u32 %v7151_v31, 16  ;;  %v2649_v5 = vunpack.c.l.bf16 %v281_v29 }
 0x355   : > { %v3425_v46 = vpop.f32.mrf.mxu2 }
 0x356   : > { %v2646_v48 = vpack.c.bf16 %v2614_v14, %v2614_v14  ;;  %v3505_v10 = vadd.f32 %v3425_v46, %v3124_v59  ;;  %v3701_v50 = vpop.f32.mrf.mxu3  ;;  %v3125_v59 = vadd.f32 %v7127_v37, %v2684_v47  ;;  %v3258_v46 = vor.u32 %v3257_v55, %v3253_v43  ;;  %v5905_v55 = vld [vmem:[#allocation7 + $0x230] sm:$0xff] }
 0x357   : > { %v3889_v58 = vpop.f32.mrf.mxu0  ;;  %v2650_v43 = vunpack.c.h.bf16 %v281_v29  ;;  %4828 = vmatpush.bf16.msra.mxu1 %v5905_v55 }
 0x358   : > { %v2778_v49 = vunpack.c.l.b16 %v2646_v48  ;;  %v3781_v28 = vadd.f32 %v3701_v50, %v3505_v10  ;;  %v7345_v24 = vpop.f32.mrf.mxu1  ;;  %v3591_v10 = vrot.slane %v7151_v31, 1  ;;  %v3262_v50 = vrot.slane %v3260_v9, 1 }
 0x35a   : > { %v7351_v12 = vpack.c.b16 %v2778_v49, %v2777_v17  ;;  %v7353_v39 = vadd.f32 %v3887_v18, %v3781_v28  ;;  %v2685_v17 = vadd.f32 %v7316_v51, %v2649_v5  ;;  %v3592_v28 = vrot.slane %v2963_v63, 1 }
 0x35b   : > { %v7362_v13 = vsel %vm770_vm3, %v3258_v46, %v3262_v50  ;;  %v3265_v50 = vshrl.u32 %v7181_v11, 16 }
 0x35c   : > { %v7366_v37 = vsel %vm1197_vm4, %v3591_v10, %v3592_v28  ;;  %v3126_v63 = vadd.f32 %v7138_v3, %v2685_v17  ;;  %v283_v10 = vld [vmem:[%s6307_s28 + $0x10] sm:$0xff]  }
 0x35d   : > { %v3427_v14 = vpop.f32.mrf.mxu2  ;;  %8158 = vst [vmem:[#allocation49_spill] sm:$0xff] %v7366_v37  ;;  %v2651_v28 = vunpack.c.l.bf16 %v283_v10 }
 0x35e   : > { %v3506_v48 = vadd.f32 %v3427_v14, %v3125_v59  ;;  %v3703_v42 = vpop.f32.mrf.mxu3  ;;  %v3267_v59 = vshll.u32 %v7181_v11, 16 }
 0x35f   : > { %v3892_v7 = vpop.f32.mrf.mxu0 }
 0x360   : > { %v3782_v49 = vadd.f32 %v3703_v42, %v3506_v48  ;;  %v7359_v18 = vpop.f32.mrf.mxu1  ;;  %v3269_v3 = vrot.slane %v3267_v59, 1 }
 0x362   : > { %3469 = vmatmul.bf16.gmra.mxu2 %v7362_v13  ;;  %3931 = vmatmul.bf16.gmra.mxu0 %v7181_v11  ;;  %v7369_v47 = vadd.f32 %v3889_v58, %v3782_v49  ;;  %v2686_v58 = vadd.f32 %v7316_v51, %v2650_v43  ;;  %v3270_v55 = vor.u32 %v3269_v3, %v3265_v50 }
 0x363   : > { %3745 = vmatmul.bf16.gmra.mxu3 %v7366_v37  ;;  %4085 = vmatmul.bf16.vlgmr.msrb.gmra.mxu1 %v7112_v1  ;;  %v2964_v1 = vsel %vm6318_vm2, %v7165_v2, 0  ;;  %v2687_v2 = vadd.f32 %v7316_v51, %v2651_v28 }
 0x364   : > { %v3272_v17 = vshll.u32 %v2964_v1, 16  ;;  %v3127_v49 = vadd.f32 %v7157_v16, %v2686_v58 }
 0x365   : > { %v3430_v9 = vpop.f32.mrf.mxu2  ;;  %v3128_v3 = vadd.f32 %v7168_v57, %v2687_v2  ;;  %v5888_v57 = vld [vmem:[#allocation7 + $0x1a8] sm:$0xff]  ;;  %v3277_v2 = vshrl.u32 %v7211_v32, 16 }
 0x366   : > { %v3507_v5 = vadd.f32 %v3430_v9, %v3126_v63  ;;  %v3706_v14 = vpop.f32.mrf.mxu3  ;;  %v3594_v9 = vrot.slane %v7181_v11, 1  ;;  %4457 = vmatpush.bf16.msra.mxu3 %v5888_v57  ;;  %v5896_v57 = vld [vmem:[#allocation7 + $0x1e8] sm:$0xff] }
 0x367   : > { %v3894_v46 = vpop.f32.mrf.mxu0  ;;  %4643 = vmatpush.bf16.msra.mxu0 %v5896_v57 }
 0x368   : > { %v3783_v48 = vadd.f32 %v3706_v14, %v3507_v5  ;;  %v7376_v42 = vpop.f32.mrf.mxu1  ;;  %v3274_v14 = vrot.slane %v3272_v17, 1  ;;  %v3279_v17 = vshll.u32 %v7211_v32, 16 }
 0x36a   : > { %v7382_v29 = vadd.f32 %v3892_v7, %v3783_v48  ;;  %v3595_v7 = vrot.slane %v2964_v1, 1  ;;  %v7391_v48 = vsel %vm770_vm3, %v3270_v55, %v3274_v14  ;;  %v2652_v1 = vunpack.c.h.bf16 %v283_v10 }
 0x36b   : > { %v3281_v14 = vrot.slane %v3279_v17, 1 }
 0x36c   : > { %v7395_v16 = vsel %vm1197_vm4, %v3594_v9, %v3595_v7  ;;  %v2688_v55 = vadd.f32 %v7316_v51, %v2652_v1  ;;  %v285_v9 = vld [vmem:[%s6307_s28 + $0x18] sm:$0xff]  }
 0x36d   : > { %v3432_v52 = vpop.f32.mrf.mxu2  ;;  %8159 = vst [vmem:[#allocation50_spill] sm:$0xff] %v7395_v16  ;;  %v2653_v1 = vunpack.c.l.bf16 %v285_v9 }
 0x36e   : > { %v3508_v63 = vadd.f32 %v3432_v52, %v3127_v49  ;;  %v3708_v43 = vpop.f32.mrf.mxu3 }
 0x36f   : > { %v3897_v5 = vpop.f32.mrf.mxu0  ;;  %v2689_v17 = vadd.f32 %v7316_v51, %v2653_v1 }
 0x370   : > { %v3784_v37 = vadd.f32 %v3708_v43, %v3508_v63  ;;  %v7388_v59 = vpop.f32.mrf.mxu1 }
 0x372   : > { %3474 = vmatmul.bf16.gmra.mxu2 %v7391_v48  ;;  %3936 = vmatmul.bf16.gmra.mxu0 %v7211_v32  ;;  %v7398_v58 = vadd.f32 %v3894_v46, %v3784_v37  ;;  %v2965_v37 = vsel %vm6318_vm2, %v7195_v8, 0  ;;  %v5880_v46 = vld [vmem:[#allocation7 + $0x168] sm:$0xff]  ;;  %v3597_v8 = vrot.slane %v7211_v32, 1 }
 0x373   : > { %3750 = vmatmul.bf16.gmra.mxu3 %v7395_v16  ;;  %4090 = vmatmul.bf16.gmra.mxu1 %v7142_v36  ;;  %v3284_v7 = vshll.u32 %v2965_v37, 16 }
 0x374   : > { %4271 = vmatpush.bf16.msra.mxu2 %v5880_v46 }
 0x375   : > { %v3435_v50 = vpop.f32.mrf.mxu2  ;;  %v3286_v31 = vrot.slane %v3284_v7, 1 }
 0x376   : > { %v3509_v49 = vadd.f32 %v3435_v50, %v3128_v3  ;;  %v3711_v28 = vpop.f32.mrf.mxu3  ;;  %v3129_v3 = vadd.f32 %v7187_v27, %v2688_v55 }
 0x377   : > { %v3899_v52 = vpop.f32.mrf.mxu0 }
 0x378   : > { %v3785_v63 = vadd.f32 %v3711_v28, %v3509_v49  ;;  %v7405_v43 = vpop.f32.mrf.mxu1  ;;  %v3282_v49 = vor.u32 %v3281_v14, %v3277_v2  ;;  %v3291_v2 = vshll.u32 %v7241_v60, 16 }
 0x37a   : > { %v7411_v10 = vadd.f32 %v3897_v5, %v3785_v63  ;;  %v3598_v63 = vrot.slane %v2965_v37, 1  ;;  %v7420_v45 = vsel %vm770_vm3, %v3282_v49, %v3286_v31  ;;  %v3130_v37 = vadd.f32 %v7198_v0, %v2689_v17 }
 0x37b   : > { %v2654_v31 = vunpack.c.h.bf16 %v285_v9  ;;  %v3293_v0 = vrot.slane %v3291_v2, 1  ;;  %v3289_v17 = vshrl.u32 %v7241_v60, 16 }
 0x37c   : > { %v7424_v27 = vsel %vm1197_vm4, %v3597_v8, %v3598_v63  ;;  %v287_v8 = vld [vmem:[%s6307_s28 + $0x20] sm:$0xff]  }
 0x37d   : > { %v3437_v50 = vpop.f32.mrf.mxu2  ;;  %8160 = vst [vmem:[#allocation48_spill] sm:$0xff] %v7424_v27  ;;  %v2655_v57 = vunpack.c.l.bf16 %v287_v8 }
 0x37e   : > { %v3510_v28 = vadd.f32 %v3437_v50, %v3129_v3  ;;  %v3713_v16 = vpop.f32.mrf.mxu3 }
 0x37f   : > { %v3902_v11 = vpop.f32.mrf.mxu0 }
 0x380   : > { %v3786_v46 = vadd.f32 %v3713_v16, %v3510_v28  ;;  %v7417_v5 = vpop.f32.mrf.mxu1  ;;  %v5904_v16 = vld [vmem:[#allocation7 + $0x228] sm:$0xff]  ;;  %v2966_v28 = vsel %vm6318_vm2, %v7225_v56, 0  ;;  %v2691_v56 = vadd.f32 %v7316_v51, %v2655_v57 }
 0x381   : > { %4829 = vmatpush.bf16.msra.mxu1 %v5904_v16 }
 0x382   : > { %3479 = vmatmul.bf16.gmra.mxu2 %v7420_v45  ;;  %3941 = vmatmul.bf16.gmra.mxu0 %v7241_v60  ;;  %v7427_v55 = vadd.f32 %v3899_v52, %v3786_v46  ;;  %v2690_v52 = vadd.f32 %v7316_v51, %v2654_v31  ;;  %v3296_v46 = vshll.u32 %v2966_v28, 16 }
 0x383   : > { %3755 = vmatmul.bf16.gmra.mxu3 %v7424_v27  ;;  %4095 = vmatmul.bf16.gmra.mxu1 %v7172_v20 }
 0x384   : > { %v3131_v63 = vadd.f32 %v7217_v62, %v2690_v52  ;;  %v3298_v27 = vrot.slane %v3296_v46, 1 }
 0x385   : > { %v3440_v14 = vpop.f32.mrf.mxu2 }
 0x386   : > { %v3511_v7 = vadd.f32 %v3440_v14, %v3130_v37  ;;  %v3716_v3 = vpop.f32.mrf.mxu3  ;;  %v3294_v37 = vor.u32 %v3293_v0, %v3289_v17  ;;  %v3132_v0 = vadd.f32 %v7228_v21, %v2691_v56  ;;  %v5887_v21 = vld [vmem:[#allocation7 + $0x1a0] sm:$0xff]  ;;  %v3301_v56 = vshrl.u32 %v7271_v53, 16 }
 0x387   : > { %v3904_v1 = vpop.f32.mrf.mxu0  ;;  %4458 = vmatpush.bf16.msra.mxu3 %v5887_v21 }
 0x388   : > { %v3787_v50 = vadd.f32 %v3716_v3, %v3511_v7  ;;  %v7434_v49 = vpop.f32.mrf.mxu1  ;;  %v3600_v7 = vrot.slane %v7241_v60, 1 }
 0x38a   : > { %v7440_v9 = vadd.f32 %v3902_v11, %v3787_v50  ;;  %v3601_v11 = vrot.slane %v2966_v28, 1  ;;  %v7449_v50 = vsel %vm770_vm3, %v3294_v37, %v3298_v27  ;;  %v2656_v28 = vunpack.c.h.bf16 %v287_v8 }
 0x38b   : > { %v3303_v27 = vshll.u32 %v7271_v53, 16 }
 0x38c   : > { %v7453_v62 = vsel %vm1197_vm4, %v3600_v7, %v3601_v11 }
 0x38d   : > { %v3442_v16 = vpop.f32.mrf.mxu2  ;;  %8161 = vst [vmem:[#allocation30_spill] sm:$0xff] %v7453_v62  ;;  %v3305_v7 = vrot.slane %v3303_v27, 1 }
 0x38e   : > { %v3512_v31 = vadd.f32 %v3442_v16, %v3131_v63  ;;  %v3718_v14 = vpop.f32.mrf.mxu3  ;;  %v2692_v16 = vadd.f32 %v7316_v51, %v2656_v28 }
 0x38f   : > { %v3907_v3 = vpop.f32.mrf.mxu0 }
 0x390   : > { %v3788_v32 = vadd.f32 %v3718_v14, %v3512_v31  ;;  %v7446_v2 = vpop.f32.mrf.mxu1  ;;  %v289_v14 = vld [vmem:[%s6307_s28 + $0x28] sm:$0xff]  }
 0x391   : > { %v2657_v28 = vunpack.c.l.bf16 %v289_v14 }
 0x392   : > { %3484 = vmatmul.bf16.gmra.mxu2 %v7449_v50  ;;  %3946 = vmatmul.bf16.gmra.mxu0 %v7271_v53  ;;  %v7456_v52 = vadd.f32 %v3904_v1, %v3788_v32  ;;  %v2967_v32 = vsel %vm6318_vm2, %v7255_v34, 0  ;;  %v5879_v1 = vld [vmem:[#allocation7 + $0x160] sm:$0xff]  ;;  %v3603_v34 = vrot.slane %v7271_v53, 1 }
 0x393   : > { %3760 = vmatmul.bf16.gmra.mxu3 %v7453_v62  ;;  %4100 = vmatmul.bf16.gmra.mxu1 %v7202_v22  ;;  %v3308_v11 = vshll.u32 %v2967_v32, 16  ;;  %v2693_v27 = vadd.f32 %v7316_v51, %v2657_v28  ;;  %v3315_v28 = vshll.u32 %v7301_v19, 16 }
 0x394   : > { %4272 = vmatpush.bf16.msra.mxu2 %v5879_v1 }
 0x395   : > { %v3445_v17 = vpop.f32.mrf.mxu2  ;;  %v3310_v38 = vrot.slane %v3308_v11, 1  ;;  %v5903_v11 = vld [vmem:[#allocation7 + $0x220] sm:$0xff] }
 0x396   : > { %v3513_v46 = vadd.f32 %v3445_v17, %v3132_v0  ;;  %v3721_v63 = vpop.f32.mrf.mxu3  ;;  %v3133_v0 = vadd.f32 %v7247_v33, %v2692_v16  ;;  %4830 = vmatpush.bf16.msra.mxu1 %v5903_v11 }
 0x397   : > { %v3909_v57 = vpop.f32.mrf.mxu0 }
 0x398   : > { %v3789_v37 = vadd.f32 %v3721_v63, %v3513_v46  ;;  %v7463_v31 = vpop.f32.mrf.mxu1  ;;  %v3306_v46 = vor.u32 %v3305_v7, %v3301_v56  ;;  %v5886_v7 = vld [vmem:[#allocation7 + $0x198] sm:$0xff]  ;;  %v2658_v56 = vunpack.c.h.bf16 %v289_v14  ;;  %v5877_v14 = vld [vmem:[#allocation7 + $0x150] sm:$0xff] }
 0x399   : > { %4459 = vmatpush.bf16.msra.mxu3 %v5886_v7  ;;  %v5876_v7 = vld [vmem:[#allocation7 + $0x148] sm:$0xff] }
 0x39a   : > { %v7469_v8 = vadd.f32 %v3907_v3, %v3789_v37  ;;  %v3604_v37 = vrot.slane %v2967_v32, 1  ;;  %v7478_v21 = vsel %vm770_vm3, %v3306_v46, %v3310_v38  ;;  %v3134_v32 = vadd.f32 %v7258_v25, %v2693_v27  ;;  %v5894_v38 = vld [vmem:[#allocation7 + $0x1d8] sm:$0xff]  ;;  %v5893_v27 = vld [vmem:[#allocation7 + $0x1d0] sm:$0xff] }
 0x39b   : > { %8163 = vst [vmem:[#allocation19_spill] sm:$0xff] %v7478_v21  ;;  %v2968_v25 = vsel %vm6318_vm2, %v7285_v6, 0  ;;  %v5892_v6 = vld [vmem:[#allocation7 + $0x1c8] sm:$0xff] }
 0x39c   : > { %8162 = vst [vmem:[#allocation18_spill] sm:$0xff] %v7469_v8  ;;  %v5895_v8 = vld [vmem:[#allocation7 + $0x1e0] sm:$0xff]  ;;  %v7482_v33 = vsel %vm1197_vm4, %v3603_v34, %v3604_v37  ;;  %v291_v37 = vld [vmem:[%s6307_s28 + $0x30] sm:$0xff]  }
 0x39d   : > { %v3447_v17 = vpop.f32.mrf.mxu2  ;;  %8164 = vst [vmem:[#allocation31_spill] sm:$0xff] %v7482_v33  ;;  %4644 = vmatpush.bf16.msra.mxu0 %v5895_v8  ;;  %v5885_v8 = vld [vmem:[#allocation7 + $0x190] sm:$0xff] }
 0x39e   : > { %v3514_v63 = vadd.f32 %v3447_v17, %v3133_v0  ;;  %v3723_v62 = vpop.f32.mrf.mxu3  ;;  %4460 = vmatpush.bf16.msra.mxu3 %v5885_v8 }
 0x39f   : > { %v3912_v60 = vpop.f32.mrf.mxu0 }
 0x3a0   : > { %v3790_v1 = vadd.f32 %v3723_v62, %v3514_v63  ;;  %v7475_v3 = vpop.f32.mrf.mxu1  ;;  %v5878_v62 = vld [vmem:[#allocation7 + $0x158] sm:$0xff]  ;;  %v2694_v63 = vadd.f32 %v7316_v51, %v2658_v56  ;;  %v3313_v56 = vshrl.u32 %v7301_v19, 16 }
 0x3a1   : > { %4273 = vmatpush.bf16.msra.mxu2 %v5878_v62  ;;  %4645 = vmatpush.bf16.msra.mxu0 %v5894_v38  ;;  %v3317_v62 = vrot.slane %v3315_v28, 1  ;;  %v3606_v28 = vrot.slane %v7301_v19, 1 }
 0x3a2   : > { %3489 = vmatmul.bf16.gmra.mxu2 %v7478_v21  ;;  %3951 = vmatmul.bf16.gmra.mxu0 %v7301_v19  ;;  %v7485_v16 = vadd.f32 %v3909_v57, %v3790_v1  ;;  %v3607_v21 = vrot.slane %v2968_v25, 1 }
 0x3a3   : > { %3765 = vmatmul.bf16.gmra.mxu3 %v7482_v33  ;;  %4105 = vmatmul.bf16.gmra.mxu1 %v7232_v54  ;;  %v3318_v33 = vor.u32 %v3317_v62, %v3313_v56  ;;  %v5891_v62 = vld [vmem:[#allocation7 + $0x1c0] sm:$0xff] }
 0x3a4   : > { %8165 = vst [vmem:[#allocation32_spill] sm:$0xff] %v7485_v16 }
 0x3a5   : > { %v3450_v0 = vpop.f32.mrf.mxu2  ;;  %4274 = vmatpush.bf16.msra.mxu2 %v5877_v14  ;;  %4646 = vmatpush.bf16.msra.mxu0 %v5893_v27 }
 0x3a6   : > { %v3515_v57 = vadd.f32 %v3450_v0, %v3134_v32  ;;  %v3726_v17 = vpop.f32.mrf.mxu3  ;;  %v5884_v32 = vld [vmem:[#allocation7 + $0x188] sm:$0xff]  ;;  %v3320_v0 = vshll.u32 %v2968_v25, 16 }
 0x3a7   : > { %v3914_v46 = vpop.f32.mrf.mxu0  ;;  %4461 = vmatpush.bf16.msra.mxu3 %v5884_v32 }
 0x3a8   : > { %v3791_v34 = vadd.f32 %v3726_v17, %v3515_v57  ;;  %v7492_v1 = vpop.f32.mrf.mxu1  ;;  %v3135_v57 = vadd.f32 %v7277_v44, %v2694_v63  ;;  %v2659_v17 = vunpack.c.l.bf16 %v291_v37  ;;  %v3322_v8 = vrot.slane %v3320_v0, 1  ;;  %v5875_v44 = vld [vmem:[#allocation7 + $0x140] sm:$0xff] }
 0x3a9   : > { %4275 = vmatpush.bf16.msra.mxu2 %v5876_v7  ;;  %4647 = vmatpush.bf16.msra.mxu0 %v5892_v6  ;;  %v5883_v63 = vld [vmem:[#allocation7 + $0x180] sm:$0xff]  ;;  %v7511_v7 = vsel %vm1197_vm4, %v3606_v28, %v3607_v21  ;;  %v3327_v21 = vshll.u32 %v7338_v23, 16 }
 0x3aa   : > { %v7498_v11 = vadd.f32 %v3912_v60, %v3791_v34  ;;  %v2695_v60 = vadd.f32 %v7316_v51, %v2659_v17  ;;  %v7507_v27 = vsel %vm770_vm3, %v3318_v33, %v3322_v8  ;;  %8167 = vst [vmem:[#allocation20_spill] sm:$0xff] %v7511_v7  ;;  %v2901_v33 = vshrl.u32 %v7351_v12, 16 }
 0x3ab   : > { %4462 = vmatpush.bf16.msra.mxu3 %v5883_v63 }
 0x3ac   : > { %8166 = vst [vmem:[#allocation33_spill] sm:$0xff] %v7498_v11  ;;  %v7528_v28 = vrot.slane %v2901_v33, 7 }
 0x3ad   : > { %v3452_v38 = vpop.f32.mrf.mxu2  ;;  %4276 = vmatpush.bf16.msra.mxu2 %v5875_v44  ;;  %4648 = vmatpush.bf16.msra.mxu0 %v5891_v62 }
 0x3ae   : > { %v3516_v53 = vadd.f32 %v3452_v38, %v3135_v57  ;;  %v3728_v16 = vpop.f32.mrf.mxu3  ;;  %v3329_v38 = vrot.slane %v3327_v21, 1  ;;  %v3609_v21 = vrot.slane %v7338_v23, 1 }
 0x3af   : > { %v3917_v14 = vpop.f32.mrf.mxu0 }
 0x3b0   : > { %v3792_v34 = vadd.f32 %v3728_v16, %v3516_v53  ;;  %v7504_v11 = vpop.f32.mrf.mxu1  ;;  %v3136_v53 = vadd.f32 %v7288_v61, %v2695_v60  ;;  %v2660_v16 = vunpack.c.h.bf16 %v291_v37  ;;  %v2969_v61 = vsel %vm6318_vm2, %v7321_v30, 0  ;;  %v293_v37 = vld [vmem:[%s6307_s28 + $0x38] sm:$0xff]  }
 0x3b1   : > { %v2904_v60 = vshll.u32 %v7351_v12, 16  ;;  %v3332_v44 = vshll.u32 %v2969_v61, 16  ;;  %v2661_v62 = vunpack.c.l.bf16 %v293_v37 }
 0x3b2   : > { %3494 = vmatmul.bf16.gmra.mxu2 %v7507_v27  ;;  %3956 = vmatmul.bf16.gmra.mxu0 %v7338_v23  ;;  %v7514_v32 = vadd.f32 %v3914_v46, %v3792_v34  ;;  %v2696_v57 = vadd.f32 %v7316_v51, %v2660_v16  ;;  %v3325_v34 = vshrl.u32 %v7338_v23, 16 }
 0x3b3   : > { %3770 = vmatmul.bf16.gmra.mxu3 %v7511_v7  ;;  %4110 = vmatmul.bf16.gmra.mxu1 %v7262_v35  ;;  %v3610_v7 = vrot.slane %v2969_v61, 1  ;;  %v5902_v61 = vld [vmem:[#allocation7 + $0x218] sm:$0xff] }
 0x3b4   : > { %v3137_v63 = vadd.f32 %v7308_v41, %v2696_v57  ;;  %v3330_v16 = vor.u32 %v3329_v38, %v3325_v34  ;;  %v2662_v34 = vunpack.c.h.bf16 %v293_v37  ;;  %4831 = vmatpush.bf16.msra.mxu1 %v5902_v61 }
 0x3b5   : > { %v3455_v25 = vpop.f32.mrf.mxu2  ;;  %v7549_v57 = vsel %vm1197_vm4, %v3609_v21, %v3610_v7 }
 0x3b6   : > { %v3517_v56 = vadd.f32 %v3455_v25, %v3136_v53  ;;  %v3731_v0 = vpop.f32.mrf.mxu3  ;;  %v2906_v25 = vor.u32 %v2904_v60, %v7528_v28  ;;  %8168 = vst [vmem:[#allocation22_spill] sm:$0xff] %v7549_v57  ;;  %v2698_v7 = vadd.f32 %v7316_v51, %v2662_v34  ;;  %v8169_v34 = vld [vmem:[#allocation38_spill] sm:$0xff] }
 0x3b7   : > { %v3919_v46 = vpop.f32.mrf.mxu0 }
 0x3b8   : > { %v3793_v17 = vadd.f32 %v3731_v0, %v3517_v56  ;;  %v7522_v6 = vpop.f32.mrf.mxu1  ;;  %v3334_v0 = vrot.slane %v3332_v44, 1  ;;  %v7545_v41 = vsel %vm6318_vm2, 0, %v2906_v25 }
 0x3ba   : > { %v7530_v8 = vadd.f32 %v3917_v14, %v3793_v17  ;;  %v2697_v14 = vadd.f32 %v7316_v51, %v2661_v62  ;;  %v7541_v19 = vsel %vm770_vm3, %v3330_v16, %v3334_v0 }
 0x3bc   : > { %v3138_v60 = vadd.f32 %v7325_v4, %v2697_v14 }
 0x3bd   : > { %v3457_v53 = vpop.f32.mrf.mxu2 }
 0x3be   : > { %v3518_v56 = vadd.f32 %v3457_v53, %v3137_v63  ;;  %v3733_v30 = vpop.f32.mrf.mxu3 }
 0x3bf   : > { %v3922_v33 = vpop.f32.mrf.mxu0 }
 0x3c0   : > { %v3794_v17 = vadd.f32 %v3733_v30, %v3518_v56  ;;  %v7538_v12 = vpop.f32.mrf.mxu1  ;;  %v3139_v30 = vadd.f32 %v7345_v24, %v2698_v7 }
 0x3c2   : > { %3499 = vmatmul.bf16.gmra.mxu2 %v7541_v19  ;;  %3961 = vmatmul.bf16.gmra.mxu0 %v7545_v41  ;;  %v7552_v38 = vadd.f32 %v3919_v46, %v3794_v17  ;;  %v295_v46 = vld [vmem:[%s6307_s28 + $0x40] sm:$0xff]  }
 0x3c3   : > { %3775 = vmatmul.bf16.gmra.mxu3 %v7549_v57  ;;  %4115 = vmatmul.bf16.gmra.mxu1 %v7292_v40  ;;  %v2663_v21 = vunpack.c.l.bf16 %v295_v46 }
 0x3c5   : > { %v3460_v44 = vpop.f32.mrf.mxu2  ;;  %v2699_v14 = vadd.f32 %v7316_v51, %v2663_v21 }
 0x3c6   : > { %v3519_v63 = vadd.f32 %v3460_v44, %v3138_v60  ;;  %v3736_v62 = vpop.f32.mrf.mxu3 }
 0x3c7   : > { %v3924_v53 = vpop.f32.mrf.mxu0  ;;  %v3140_v24 = vadd.f32 %v7359_v18, %v2699_v14 }
 0x3c8   : > { %v3795_v16 = vadd.f32 %v3736_v62, %v3519_v63  ;;  %v7558_v25 = vpop.f32.mrf.mxu1  ;;  %v2664_v63 = vunpack.c.h.bf16 %v295_v46 }
 0x3ca   : > { %v7561_v56 = vadd.f32 %v3922_v33, %v3795_v16  ;;  %v8170_v33 = vld [vmem:[#allocation23_spill] sm:$0xff]  ;;  %v2700_v21 = vadd.f32 %v7316_v51, %v2664_v63  ;;  %v8171_v63 = vld [vmem:[#allocation12_spill] sm:$0xff] }
 0x3cd   : > { %v3462_v0 = vpop.f32.mrf.mxu2 }
 0x3ce   : > { %v3520_v17 = vadd.f32 %v3462_v0, %v3139_v30  ;;  %v3738_v4 = vpop.f32.mrf.mxu3 }
 0x3cf   : > { %v3927_v37 = vpop.f32.mrf.mxu0 }
 0x3d0   : > { %v3796_v61 = vadd.f32 %v3738_v4, %v3520_v17  ;;  %v7565_v60 = vpop.f32.mrf.mxu1  ;;  %v297_v4 = vld [vmem:[%s6307_s28 + $0x48] sm:$0xff]  }
 0x3d2   : > { %4277 = vmatmul.bf16.vlgmr.msra.gmra.mxu2 %v8169_v34  ;;  %4649 = vmatmul.bf16.vlgmr.msra.gmra.mxu0 %v7142_v36  ;;  %v7569_v44 = vadd.f32 %v3924_v53, %v3796_v61  ;;  %v3141_v53 = vadd.f32 %v7376_v42, %v2700_v21  ;;  %v2665_v61 = vunpack.c.l.bf16 %v297_v4  ;;  %v8172_v42 = vld [vmem:[#allocation25_spill] sm:$0xff]  ;;  %v2666_v21 = vunpack.c.h.bf16 %v297_v4 }
 0x3d3   : > { %4463 = vmatmul.bf16.vlgmr.msra.gmra.mxu3 %v8170_v33  ;;  %4120 = vmatmul.bf16.gmra.mxu1 %v7329_v26 }
 0x3d4   : > { %v2701_v46 = vadd.f32 %v7316_v51, %v2665_v61  ;;  %v2702_v61 = vadd.f32 %v7316_v51, %v2666_v21 }
 0x3d5   : > { %v3465_v62 = vpop.f32.mrf.mxu2 }
 0x3d6   : > { %v3521_v7 = vadd.f32 %v3465_v62, %v3140_v24  ;;  %v3741_v16 = vpop.f32.mrf.mxu3 }
 0x3d7   : > { %v3929_v30 = vpop.f32.mrf.mxu0 }
 0x3d8   : > { %v3797_v0 = vadd.f32 %v3741_v16, %v3521_v7  ;;  %v7575_v17 = vpop.f32.mrf.mxu1  ;;  %v5901_v7 = vld [vmem:[#allocation7 + $0x210] sm:$0xff]  ;;  %v3142_v16 = vadd.f32 %v7388_v59, %v2701_v46 }
 0x3d9   : > { %4832 = vmatpush.bf16.msra.mxu1 %v5901_v7 }
 0x3da   : > { %v7578_v36 = vadd.f32 %v3927_v37, %v3797_v0 }
 0x3dd   : > { %v3467_v34 = vpop.f32.mrf.mxu2 }
 0x3de   : > { %v3522_v33 = vadd.f32 %v3467_v34, %v3141_v53  ;;  %v3743_v57 = vpop.f32.mrf.mxu3 }
 0x3df   : > { %v3932_v18 = vpop.f32.mrf.mxu0 }
 0x3e0   : > { %v3798_v14 = vadd.f32 %v3743_v57, %v3522_v33  ;;  %v4086_v24 = vpop.f32.mrf.mxu1 }
 0x3e1   : > { %v7583_v62 = vadd.f32 %v4086_v24, %v7353_v39  ;;  %v3143_v24 = vadd.f32 %v7405_v43, %v2702_v61  ;;  %v8174_v43 = vld [vmem:[#allocation36_spill] sm:$0xff] }
 0x3e2   : > { %4282 = vmatmul.bf16.gmra.mxu2 %v8171_v63  ;;  %4654 = vmatmul.bf16.gmra.mxu0 %v7172_v20  ;;  %v7587_v37 = vadd.f32 %v3929_v30, %v3798_v14  ;;  %v299_v20 = vld [vmem:[%s6307_s28 + $0x50] sm:$0xff]  }
 0x3e3   : > { %4468 = vmatmul.bf16.gmra.mxu3 %v8172_v42  ;;  %4125 = vmatmul.bf16.gmra.mxu1 %v7362_v13  ;;  %v2667_v42 = vunpack.c.l.bf16 %v299_v20 }
 0x3e5   : > { %v3470_v57 = vpop.f32.mrf.mxu2 }
 0x3e6   : > { %v3523_v0 = vadd.f32 %v3470_v57, %v3142_v16  ;;  %v3746_v39 = vpop.f32.mrf.mxu3  ;;  %v2703_v16 = vadd.f32 %v7316_v51, %v2667_v42 }
 0x3e7   : > { %v3934_v53 = vpop.f32.mrf.mxu0 }
 0x3e8   : > { %v3799_v34 = vadd.f32 %v3746_v39, %v3523_v0  ;;  %v4088_v33 = vpop.f32.mrf.mxu1  ;;  %v8173_v0 = vld [vmem:[#allocation14_spill] sm:$0xff]  ;;  %v2668_v39 = vunpack.c.h.bf16 %v299_v20 }
 0x3e9   : > { %v7595_v30 = vadd.f32 %v4088_v33, %v7369_v47 }
 0x3ea   : > { %v7597_v14 = vadd.f32 %v3932_v18, %v3799_v34  ;;  %v3144_v18 = vadd.f32 %v7417_v5, %v2703_v16 }
 0x3ed   : > { %v3472_v59 = vpop.f32.mrf.mxu2 }
 0x3ee   : > { %v3524_v4 = vadd.f32 %v3472_v59, %v3143_v24  ;;  %v3748_v46 = vpop.f32.mrf.mxu3  ;;  %v301_v59 = vld [vmem:[%s6307_s28 + $0x58] sm:$0xff]  }
 0x3ef   : > { %v3937_v7 = vpop.f32.mrf.mxu0 }
 0x3f0   : > { %v3800_v57 = vadd.f32 %v3748_v46, %v3524_v4  ;;  %v4091_v23 = vpop.f32.mrf.mxu1  ;;  %v2669_v46 = vunpack.c.l.bf16 %v301_v59 }
 0x3f1   : > { %v7602_v21 = vadd.f32 %v4091_v23, %v7382_v29  ;;  %v2704_v23 = vadd.f32 %v7316_v51, %v2668_v39 }
 0x3f2   : > { %4287 = vmatmul.bf16.gmra.mxu2 %v8173_v0  ;;  %4659 = vmatmul.bf16.gmra.mxu0 %v7202_v22  ;;  %v7606_v47 = vadd.f32 %v3934_v53, %v3800_v57 }
 0x3f3   : > { %4473 = vmatmul.bf16.gmra.mxu3 %v8174_v43  ;;  %4130 = vmatmul.bf16.gmra.mxu1 %v7391_v48  ;;  %v3145_v4 = vadd.f32 %v7434_v49, %v2704_v23  ;;  %v2705_v43 = vadd.f32 %v7316_v51, %v2669_v46  ;;  %v8176_v49 = vld [vmem:[#allocation37_spill] sm:$0xff]  ;;  %v2670_v23 = vunpack.c.h.bf16 %v301_v59 }
 0x3f5   : > { %v3475_v61 = vpop.f32.mrf.mxu2  ;;  %v2706_v46 = vadd.f32 %v7316_v51, %v2670_v23 }
 0x3f6   : > { %v3525_v34 = vadd.f32 %v3475_v61, %v3144_v18  ;;  %v3751_v33 = vpop.f32.mrf.mxu3 }
 0x3f7   : > { %v3939_v24 = vpop.f32.mrf.mxu0 }
 0x3f8   : > { %v3801_v29 = vadd.f32 %v3751_v33, %v3525_v34  ;;  %v4093_v42 = vpop.f32.mrf.mxu1  ;;  %v8175_v34 = vld [vmem:[#allocation41_spill] sm:$0xff]  ;;  %v3146_v33 = vadd.f32 %v7446_v2, %v2705_v43 }
 0x3f9   : > { %v7614_v22 = vadd.f32 %v4093_v42, %v7398_v58 }
 0x3fa   : > { %v7616_v53 = vadd.f32 %v3937_v7, %v3801_v29  ;;  %v5900_v7 = vld [vmem:[#allocation7 + $0x208] sm:$0xff] }
 0x3fb   : > { %4833 = vmatpush.bf16.msra.mxu1 %v5900_v7 }
 0x3fd   : > { %v3477_v57 = vpop.f32.mrf.mxu2 }
 0x3fe   : > { %v3526_v5 = vadd.f32 %v3477_v57, %v3145_v4  ;;  %v3753_v20 = vpop.f32.mrf.mxu3 }
 0x3ff   : > { %v3942_v16 = vpop.f32.mrf.mxu0 }
 0x400   : > { %v3802_v18 = vadd.f32 %v3753_v20, %v3526_v5  ;;  %v4096_v61 = vpop.f32.mrf.mxu1 }
 0x401   : > { %v7621_v39 = vadd.f32 %v4096_v61, %v7411_v10 }
 0x402   : > { %4292 = vmatmul.bf16.gmra.mxu2 %v8175_v34  ;;  %4664 = vmatmul.bf16.gmra.mxu0 %v7232_v54  ;;  %v7625_v58 = vadd.f32 %v3939_v24, %v3802_v18  ;;  %v303_v54 = vld [vmem:[%s6307_s28 + $0x60] sm:$0xff]   ;;  %v3147_v18 = vadd.f32 %v7463_v31, %v2706_v46  ;;  %v8178_v31 = vld [vmem:[#allocation26_spill] sm:$0xff] }
 0x403   : > { %4478 = vmatmul.bf16.gmra.mxu3 %v8176_v49  ;;  %4135 = vmatmul.bf16.gmra.mxu1 %v7420_v45  ;;  %v2671_v61 = vunpack.c.l.bf16 %v303_v54 }
 0x405   : > { %v3480_v29 = vpop.f32.mrf.mxu2  ;;  %v2707_v7 = vadd.f32 %v7316_v51, %v2671_v61 }
 0x406   : > { %v3527_v42 = vadd.f32 %v3480_v29, %v3146_v33  ;;  %v3756_v10 = vpop.f32.mrf.mxu3 }
 0x407   : > { %v3944_v4 = vpop.f32.mrf.mxu0 }
 0x408   : > { %v3803_v57 = vadd.f32 %v3756_v10, %v3527_v42  ;;  %v4098_v5 = vpop.f32.mrf.mxu1  ;;  %v8177_v42 = vld [vmem:[#allocation17_spill] sm:$0xff]  ;;  %v2672_v10 = vunpack.c.h.bf16 %v303_v54 }
 0x409   : > { %v7633_v24 = vadd.f32 %v4098_v5, %v7427_v55 }
 0x40a   : > { %v7635_v20 = vadd.f32 %v3942_v16, %v3803_v57  ;;  %v3148_v16 = vadd.f32 %v7475_v3, %v2707_v7 }
 0x40d   : > { %v3482_v2 = vpop.f32.mrf.mxu2 }
 0x40e   : > { %v3528_v59 = vadd.f32 %v3482_v2, %v3147_v18  ;;  %v3758_v43 = vpop.f32.mrf.mxu3 }
 0x40f   : > { %v3947_v49 = vpop.f32.mrf.mxu0 }
 0x410   : > { %v3804_v33 = vadd.f32 %v3758_v43, %v3528_v59  ;;  %v4101_v29 = vpop.f32.mrf.mxu1  ;;  %v305_v59 = vld [vmem:[%s6307_s28 + $0x68] sm:$0xff]  }
 0x411   : > { %v7640_v23 = vadd.f32 %v4101_v29, %v7440_v9  ;;  %v2708_v9 = vadd.f32 %v7316_v51, %v2672_v10  ;;  %v8180_v10 = vld [vmem:[#allocation18_spill] sm:$0xff] }
 0x412   : > { %4297 = vmatmul.bf16.gmra.mxu2 %v8177_v42  ;;  %4669 = vmatmul.bf16.gmra.mxu0 %v7262_v35  ;;  %v7644_v55 = vadd.f32 %v3944_v4, %v3804_v33  ;;  %v2673_v33 = vunpack.c.l.bf16 %v305_v59 }
 0x413   : > { %4483 = vmatmul.bf16.gmra.mxu3 %v8178_v31  ;;  %4140 = vmatmul.bf16.gmra.mxu1 %v7449_v50  ;;  %v3149_v43 = vadd.f32 %v7492_v1, %v2708_v9  ;;  %v8184_v1 = vld [vmem:[#allocation28_spill] sm:$0xff] }
 0x414   : > { %v2709_v31 = vadd.f32 %v7316_v51, %v2673_v33  ;;  %v5899_v9 = vld [vmem:[#allocation7 + $0x200] sm:$0xff]  ;;  %v2674_v51 = vunpack.c.h.bf16 %v305_v59 }
 0x415   : > { %v3485_v46 = vpop.f32.mrf.mxu2  ;;  %4834 = vmatpush.bf16.msra.mxu1 %v5899_v9 }
 0x416   : > { %v3529_v57 = vadd.f32 %v3485_v46, %v3148_v16  ;;  %v3761_v5 = vpop.f32.mrf.mxu3 }
 0x417   : > { %v3949_v18 = vpop.f32.mrf.mxu0 }
 0x418   : > { %v3805_v61 = vadd.f32 %v3761_v5, %v3529_v57  ;;  %v4103_v2 = vpop.f32.mrf.mxu1  ;;  %v8182_v5 = vld [vmem:[#allocation44_spill] sm:$0xff] }
 0x419   : > { %v7652_v35 = vadd.f32 %v4103_v2, %v7456_v52 }
 0x41a   : > { %v7654_v4 = vadd.f32 %v3947_v49, %v3805_v61  ;;  %v8185_v49 = vld [vmem:[#allocation19_spill] sm:$0xff]  ;;  %v3150_v61 = vadd.f32 %v7504_v11, %v2709_v31 }
 0x41c   : > { %8179 = vst [vmem:[#allocation34_spill] sm:$0xff] %v7654_v4  ;;  %v8187_v4 = vld [vmem:[#allocation33_spill] sm:$0xff] }
 0x41d   : > { %v3487_v29 = vpop.f32.mrf.mxu2 }
 0x41e   : > { %v3530_v3 = vadd.f32 %v3487_v29, %v3149_v43  ;;  %v3763_v54 = vpop.f32.mrf.mxu3 }
 0x41f   : > { %v3952_v7 = vpop.f32.mrf.mxu0 }
 0x420   : > { %v3806_v16 = vadd.f32 %v3763_v54, %v3530_v3  ;;  %v4106_v46 = vpop.f32.mrf.mxu1 }
 0x421   : > { %v7659_v57 = vadd.f32 %v4106_v46, %v8180_v10  ;;  %v8186_v46 = vld [vmem:[#allocation32_spill] sm:$0xff] }
 0x422   : > { %4302 = vmatmul.bf16.gmra.mxu2 %v8182_v5  ;;  %4674 = vmatmul.bf16.gmra.mxu0 %v7292_v40  ;;  %v7663_v52 = vadd.f32 %v3949_v18, %v3806_v16  ;;  %v5998_v40 = vld [vmem:[%s7953_s4] ss:$0 sm:$0xff]  ;;  %v307_v16 = vld [vmem:[%s6307_s28 + $0x70] sm:$0xff]  }
 0x423   : > { %8181 = vst [vmem:[#allocation21_spill] sm:$0xff] %v7659_v57  ;;  %4488 = vmatmul.bf16.gmra.mxu3 %v8184_v1  ;;  %4145 = vmatmul.bf16.gmra.mxu1 %v8185_v49  ;;  %v2710_v3 = vadd.f32 %v5998_v40, %v2674_v51  ;;  %v2675_v59 = vunpack.c.l.bf16 %v307_v16 }
 0x424   : > { %8183 = vst [vmem:[#allocation35_spill] sm:$0xff] %v7663_v52 }
 0x425   : > { %v3490_v2 = vpop.f32.mrf.mxu2  ;;  %v3151_v11 = vadd.f32 %v7522_v6, %v2710_v3  ;;  %v2711_v57 = vadd.f32 %v5998_v40, %v2675_v59  ;;  %v2676_v3 = vunpack.c.h.bf16 %v307_v16 }
 0x426   : > { %v3531_v43 = vadd.f32 %v3490_v2, %v3150_v61  ;;  %v3766_v33 = vpop.f32.mrf.mxu3 }
 0x427   : > { %v3954_v29 = vpop.f32.mrf.mxu0  ;;  %v3152_v6 = vadd.f32 %v7538_v12, %v2711_v57  ;;  %v2712_v59 = vadd.f32 %v5998_v40, %v2676_v3 }
 0x428   : > { %v3807_v18 = vadd.f32 %v3766_v33, %v3531_v43  ;;  %v4108_v54 = vpop.f32.mrf.mxu1  ;;  %v8188_v43 = vld [vmem:[#allocation47_spill] sm:$0xff] }
 0x429   : > { %v7673_v10 = vadd.f32 %v4108_v54, %v8186_v46  ;;  %v8189_v33 = vld [vmem:[#allocation39_spill] sm:$0xff] }
 0x42a   : > { %v7675_v1 = vadd.f32 %v3952_v7, %v3807_v18 }
 0x42d   : > { %v3492_v31 = vpop.f32.mrf.mxu2 }
 0x42e   : > { %v3532_v9 = vadd.f32 %v3492_v31, %v3151_v11  ;;  %v3768_v61 = vpop.f32.mrf.mxu3  ;;  %v309_v31 = vld [vmem:[%s6307_s28 + $0x78] sm:$0xff]   ;;  %s6103_s28 = sshra.s32 %s4996_s10, 4  ;;  %s6104_s28 = int_to_ptr.hbm [resolvable:$true] %s6103_s28 }
 0x42f   : > { %v3957_v2 = vpop.f32.mrf.mxu0  ;;  %s6105_s24 = scalar_lea.hbm %s6104_s28, 256  ;;  %p6110_p11 = scmp.lt.s32.totalorder %s6104_s28, %s7954_s5 }
 0x430   : > { %v3808_v52 = vadd.f32 %v3768_v61, %v3532_v9  ;;  %v4111_v5 = vpop.f32.mrf.mxu1  ;;  %p6106_p1 = scmp.ne.s32.totalorder %s6104_s28, %s6105_s24  ;;  %p6111_p2 = scmp.lt.s32.totalorder %s6109_s9, %s6105_s24 }
 0x431   : > { %v7679_v51 = vadd.f32 %v4111_v5, %v8187_v4 }
 0x432   : > { %4307 = vmatmul.bf16.gmra.mxu2 %v8188_v43  ;;  %4679 = vmatmul.bf16.gmra.mxu0 %v7329_v26  ;;  %v7683_v7 = vadd.f32 %v3954_v29, %v3808_v52  ;;  %v3153_v52 = vadd.f32 %v7558_v25, %v2712_v59  ;;  %v2677_v29 = vunpack.c.l.bf16 %v309_v31  ;;  %p6107_p4 = pnand %p6106_p1, %p6270_p3  ;;  %p6112_p9 = por %p6111_p2, %p6110_p11 }
 0x433   : > { %4493 = vmatmul.bf16.gmra.mxu3 %v8189_v33  ;;  %4150 = vmatmul.bf16.gmra.mxu1 %v7507_v27 }
 0x434   : > { %v2713_v16 = vadd.f32 %v5998_v40, %v2677_v29  ;;  %p6108_p8 = pneg %p6107_p4 }
 0x435   : > { %v3495_v18 = vpop.f32.mrf.mxu2 }
 0x436   : > { %v3533_v54 = vadd.f32 %v3495_v18, %v3152_v6  ;;  %v3771_v46 = vpop.f32.mrf.mxu3  ;;  %v3154_v25 = vadd.f32 %v7565_v60, %v2713_v16  ;;  %v4000_v16 = vshrl.u32 %v7545_v41, 16  ;;  %p6113_p10 = pnand %p6112_p9, %p6108_p8 }
 0x437   : > { %v3959_v11 = vpop.f32.mrf.mxu0 }
 0x438   : > { %v3809_v4 = vadd.f32 %v3771_v46, %v3533_v54  ;;  %v4113_v5 = vpop.f32.mrf.mxu1  ;;  %v8190_v54 = vld [vmem:[#allocation46_spill] sm:$0xff]  ;;  %v2678_v46 = vunpack.c.h.bf16 %v309_v31 }
 0x439   : > { %v7690_v9 = vadd.f32 %v4113_v5, %v7514_v32 }
 0x43a   : > { %v7692_v26 = vadd.f32 %v3957_v2, %v3809_v4  ;;  %v8191_v2 = vld [vmem:[#allocation42_spill] sm:$0xff]  ;;  %v2714_v29 = vadd.f32 %v5998_v40, %v2678_v46 }
 0x43c   : > { %v3155_v31 = vadd.f32 %v7575_v17, %v2714_v29 }
 0x43d   : > { %v3497_v61 = vpop.f32.mrf.mxu2 }
 0x43e   : > { %v3534_v33 = vadd.f32 %v3497_v61, %v3153_v52  ;;  %v3773_v12 = vpop.f32.mrf.mxu3  ;;  %v4002_v52 = vshll.u32 %v7545_v41, 16 }
 0x43f   : > { %v3962_v57 = vpop.f32.mrf.mxu0 }
 0x440   : > { %v3810_v6 = vadd.f32 %v3773_v12, %v3534_v33  ;;  %v4116_v18 = vpop.f32.mrf.mxu1  ;;  %v4004_v12 = vrot.slane %v4002_v52, 1 }
 0x441   : > { %v7696_v3 = vadd.f32 %v4116_v18, %v7530_v8 }
 0x442   : > { %4312 = vmatmul.bf16.gmra.mxu2 %v8190_v54  ;;  %4684 = vmatmul.bf16.gmra.mxu0 %v7362_v13  ;;  %v7700_v32 = vadd.f32 %v3959_v11, %v3810_v6  ;;  %v7712_v11 = vsel %vm6318_vm2, %v7528_v28, 0  ;;  %v8192_v28 = vld [vmem:[#allocation49_spill] sm:$0xff] }
 0x443   : > { %4498 = vmatmul.bf16.gmra.mxu3 %v8191_v2  ;;  %4155 = vmatmul.bf16.gmra.mxu1 %v7541_v19  ;;  %v4007_v6 = vshll.u32 %v7712_v11, 16 }
 0x445   : > { %v3500_v59 = vpop.f32.mrf.mxu2 }
 0x446   : > { %v3535_v4 = vadd.f32 %v3500_v59, %v3154_v25  ;;  %v3776_v5 = vpop.f32.mrf.mxu3  ;;  %v4005_v25 = vor.u32 %v4004_v12, %v4000_v16 }
 0x447   : > { %v3964_v8 = vpop.f32.mrf.mxu0 }
 0x448   : > { %v3811_v61 = vadd.f32 %v3776_v5, %v3535_v4  ;;  %v4118_v33 = vpop.f32.mrf.mxu1  ;;  %v4009_v4 = vrot.slane %v4007_v6, 1  ;;  %v8193_v5 = vld [vmem:[#allocation40_spill] sm:$0xff] }
 0x449   : > { %v7707_v13 = vadd.f32 %v4118_v33, %v7552_v38 }
 0x44a   : > { %v7714_v60 = vadd.f32 %v3962_v57, %v3811_v61  ;;  %v7725_v17 = vsel %vm770_vm3, %v4005_v25, %v4009_v4 }
 0x44d   : > { %v3502_v40 = vpop.f32.mrf.mxu2 }
 0x44e   : > { %v3536_v18 = vadd.f32 %v3502_v40, %v3155_v31  ;;  %v3778_v2 = vpop.f32.mrf.mxu3 }
 0x44f   : > { %v4650_v38 = vpop.f32.mrf.mxu0 }
 0x450   : > { %v3812_v46 = vadd.f32 %v3778_v2, %v3536_v18  ;;  %v4121_v59 = vpop.f32.mrf.mxu1 }
 0x451   : > { %v7720_v15 = vadd.f32 %v4121_v59, %v7561_v56 }
 0x452   : > { %4317 = vmatmul.bf16.gmra.mxu2 %v8192_v28  ;;  %4689 = vmatmul.bf16.gmra.mxu0 %v7391_v48  ;;  %v7727_v57 = vadd.f32 %v3964_v8, %v3812_v46 }
 0x453   : > { %4503 = vmatmul.bf16.gmra.mxu3 %v8193_v5  ;;  %4160 = vmatmul.bf16.gmra.mxu1 %v7725_v17 }
 0x455   : > { %v4278_v52 = vpop.f32.mrf.mxu2 }
 0x456   : > { %v4358_v29 = vadd.f32 %v4278_v52, %v7583_v62  ;;  %v4464_v61 = vpop.f32.mrf.mxu3  ;;  %v8194_v62 = vld [vmem:[#allocation50_spill] sm:$0xff] }
 0x457   : > { %v4652_v33 = vpop.f32.mrf.mxu0 }
 0x458   : > { %v4544_v56 = vadd.f32 %v4464_v61, %v4358_v29  ;;  %v4123_v12 = vpop.f32.mrf.mxu1 }
 0x459   : > { %v7733_v31 = vadd.f32 %v4123_v12, %v7569_v44  ;;  %v8195_v44 = vld [vmem:[#allocation16_spill] sm:$0xff] }
 0x45a   : > { %v7735_v48 = vadd.f32 %v4650_v38, %v4544_v56 }
 0x45d   : > { %v4280_v16 = vpop.f32.mrf.mxu2 }
 0x45e   : > { %v4359_v8 = vadd.f32 %v4280_v16, %v7595_v30  ;;  %v4466_v6 = vpop.f32.mrf.mxu3  ;;  %v8196_v16 = vld [vmem:[#allocation48_spill] sm:$0xff] }
 0x45f   : > { %v4655_v40 = vpop.f32.mrf.mxu0 }
 0x460   : > { %v4545_v18 = vadd.f32 %v4466_v6, %v4359_v8  ;;  %v4126_v2 = vpop.f32.mrf.mxu1 }
 0x461   : > { %v7739_v25 = vadd.f32 %v4126_v2, %v7578_v36 }
 0x462   : > { %4322 = vmatmul.bf16.gmra.mxu2 %v8194_v62  ;;  %4694 = vmatmul.bf16.gmra.mxu0 %v7420_v45  ;;  %v7743_v46 = vadd.f32 %v4652_v33, %v4545_v18 }
 0x463   : > { %4508 = vmatmul.bf16.gmra.mxu3 %v8195_v44  ;;  %4835 = vmatmul.bf16.vlgmr.msra.gmra.mxu1 %v8171_v63 }
 0x465   : > { %v4283_v38 = vpop.f32.mrf.mxu2 }
 0x466   : > { %v4360_v30 = vadd.f32 %v4283_v38, %v7602_v21  ;;  %v4469_v59 = vpop.f32.mrf.mxu3 }
 0x467   : > { %v4657_v52 = vpop.f32.mrf.mxu0 }
 0x468   : > { %v4546_v4 = vadd.f32 %v4469_v59, %v4360_v30  ;;  %v4128_v5 = vpop.f32.mrf.mxu1 }
 0x469   : > { %v7749_v36 = vadd.f32 %v4128_v5, %v7587_v37  ;;  %v8197_v37 = vld [vmem:[#allocation43_spill] sm:$0xff] }
 0x46a   : > { %v7751_v29 = vadd.f32 %v4655_v40, %v4546_v4 }
 0x46d   : > { %v4285_v61 = vpop.f32.mrf.mxu2 }
 0x46e   : > { %v4361_v45 = vadd.f32 %v4285_v61, %v7614_v22  ;;  %v4471_v33 = vpop.f32.mrf.mxu3 }
 0x46f   : > { %v4660_v8 = vpop.f32.mrf.mxu0 }
 0x470   : > { %v4547_v56 = vadd.f32 %v4471_v33, %v4361_v45  ;;  %v4131_v12 = vpop.f32.mrf.mxu1 }
 0x471   : > { %v7755_v63 = vadd.f32 %v4131_v12, %v7597_v14 }
 0x472   : > { %4327 = vmatmul.bf16.gmra.mxu2 %v8196_v16  ;;  %4699 = vmatmul.bf16.gmra.mxu0 %v7449_v50  ;;  %v7759_v21 = vadd.f32 %v4657_v52, %v4547_v56  ;;  %v8198_v52 = vld [vmem:[#allocation30_spill] sm:$0xff] }
 0x473   : > { %4513 = vmatmul.bf16.gmra.mxu3 %v8197_v37  ;;  %4840 = vmatmul.bf16.gmra.mxu1 %v8173_v0 }
 0x475   : > { %v4288_v6 = vpop.f32.mrf.mxu2 }
 0x476   : > { %v4362_v22 = vadd.f32 %v4288_v6, %v7621_v39  ;;  %v4474_v40 = vpop.f32.mrf.mxu3 }
 0x477   : > { %v4662_v38 = vpop.f32.mrf.mxu0 }
 0x478   : > { %v4548_v18 = vadd.f32 %v4474_v40, %v4362_v22  ;;  %v4133_v2 = vpop.f32.mrf.mxu1 }
 0x479   : > { %v7765_v14 = vadd.f32 %v4133_v2, %v7606_v47  ;;  %v8199_v47 = vld [vmem:[#allocation45_spill] sm:$0xff] }
 0x47a   : > { %v7767_v44 = vadd.f32 %v4660_v8, %v4548_v18 }
 0x47d   : > { %v4290_v50 = vpop.f32.mrf.mxu2 }
 0x47e   : > { %v4363_v30 = vadd.f32 %v4290_v50, %v7633_v24  ;;  %v4476_v59 = vpop.f32.mrf.mxu3 }
 0x47f   : > { %v4665_v33 = vpop.f32.mrf.mxu0 }
 0x480   : > { %v4549_v4 = vadd.f32 %v4476_v59, %v4363_v30  ;;  %v4136_v5 = vpop.f32.mrf.mxu1  ;;  %v8202_v30 = vld [vmem:[#allocation34_spill] sm:$0xff] }
 0x481   : > { %v7771_v0 = vadd.f32 %v4136_v5, %v7616_v53 }
 0x482   : > { %4332 = vmatmul.bf16.gmra.mxu2 %v8198_v52  ;;  %4704 = vmatmul.bf16.gmra.mxu0 %v8185_v49  ;;  %v7775_v39 = vadd.f32 %v4662_v38, %v4549_v4  ;;  %v8204_v4 = vld [vmem:[#allocation27_spill] sm:$0xff] }
 0x483   : > { %4518 = vmatmul.bf16.gmra.mxu3 %v8199_v47  ;;  %4845 = vmatmul.bf16.gmra.mxu1 %v8175_v34  ;;  %v8206_v47 = vld [vmem:[#allocation35_spill] sm:$0xff] }
 0x485   : > { %v4293_v61 = vpop.f32.mrf.mxu2 }
 0x486   : > { %v4364_v45 = vadd.f32 %v4293_v61, %v7640_v23  ;;  %v4479_v24 = vpop.f32.mrf.mxu3  ;;  %v8200_v23 = vld [vmem:[#allocation31_spill] sm:$0xff] }
 0x487   : > { %v4667_v18 = vpop.f32.mrf.mxu0 }
 0x488   : > { %v4550_v56 = vadd.f32 %v4479_v24, %v4364_v45  ;;  %v4138_v12 = vpop.f32.mrf.mxu1  ;;  %v8207_v45 = vld [vmem:[#allocation22_spill] sm:$0xff] }
 0x489   : > { %v7781_v53 = vadd.f32 %v4138_v12, %v7625_v58  ;;  %v8201_v58 = vld [vmem:[#allocation24_spill] sm:$0xff] }
 0x48a   : > { %v7783_v8 = vadd.f32 %v4665_v33, %v4550_v56  ;;  %v4200_v33 = vrot.slane %v7545_v41, 1  ;;  %v4201_v56 = vrot.slane %v7712_v11, 1 }
 0x48d   : > { %v4295_v37 = vpop.f32.mrf.mxu2 }
 0x48e   : > { %v4365_v49 = vadd.f32 %v4295_v37, %v7652_v35  ;;  %v4481_v6 = vpop.f32.mrf.mxu3  ;;  %v7824_v37 = vsel %vm1197_vm4, %v4200_v33, %v4201_v56 }
 0x490   : > { %v4551_v22 = vadd.f32 %v4481_v6, %v4365_v49  ;;  %v4141_v40 = vpop.f32.mrf.mxu1 }
 0x491   : > { %v7787_v34 = vadd.f32 %v4141_v40, %v7635_v20  ;;  %v8203_v20 = vld [vmem:[#allocation20_spill] sm:$0xff]  ;;  %v4670_v40 = vpop.f32.mrf.mxu0 }
 0x492   : > { %4337 = vmatmul.bf16.gmra.mxu2 %v8200_v23  ;;  %4709 = vmatmul.bf16.gmra.mxu0 %v7507_v27  ;;  %v7791_v2 = vadd.f32 %v4667_v18, %v4551_v22  ;;  %v8205_v27 = vld [vmem:[#allocation44_spill] sm:$0xff] }
 0x493   : > { %4523 = vmatmul.bf16.gmra.mxu3 %v8201_v58  ;;  %4850 = vmatmul.bf16.gmra.mxu1 %v8177_v42 }
 0x498   : > { %v4143_v38 = vpop.f32.mrf.mxu1 }
 0x499   : > { %v7796_v35 = vadd.f32 %v4143_v38, %v7644_v55 }
 0x4a0   : > { %v4146_v50 = vpop.f32.mrf.mxu1 }
 0x4a1   : > { %v7799_v59 = vadd.f32 %v4146_v50, %v8202_v30 }
 0x4a2   : > { %4342 = vmatmul.bf16.gmra.mxu2 %v8203_v20  ;;  %4714 = vmatmul.bf16.gmra.mxu0 %v7541_v19 }
 0x4a3   : > { %4528 = vmatmul.bf16.gmra.mxu3 %v8204_v4  ;;  %4855 = vmatmul.bf16.gmra.mxu1 %v8205_v27 }
 0x4a8   : > { %v4148_v5 = vpop.f32.mrf.mxu1 }
 0x4a9   : > { %v7806_v61 = vadd.f32 %v4148_v5, %v8206_v47 }
 0x4b0   : > { %v4151_v42 = vpop.f32.mrf.mxu1 }
 0x4b1   : > { %v7809_v55 = vadd.f32 %v4151_v42, %v7675_v1 }
 0x4b2   : > { %4347 = vmatmul.bf16.gmra.mxu2 %v8207_v45  ;;  %4719 = vmatmul.bf16.gmra.mxu0 %v7725_v17  ;;  %v8208_v17 = vld [vmem:[#allocation15_spill] sm:$0xff] }
 0x4b3   : > { %4533 = vmatmul.bf16.gmra.mxu3 %v7545_v41  ;;  %4860 = vmatmul.bf16.gmra.mxu1 %v8188_v43  ;;  %v8209_v43 = vld [vmem:[#allocation13_spill] sm:$0xff] }
 0x4b8   : > { %v4153_v19 = vpop.f32.mrf.mxu1 }
 0x4b9   : > { %v7816_v24 = vadd.f32 %v4153_v19, %v7683_v7 }
 0x4c0   : > { %v4156_v12 = vpop.f32.mrf.mxu1 }
 0x4c1   : > { %v7821_v1 = vadd.f32 %v4156_v12, %v7692_v26 }
 0x4c2   : > { %4352 = vmatmul.bf16.gmra.mxu2 %v7824_v37  ;;  %4724 = vmatmul.bf16.gmra.mxu0 %v8208_v17  ;;  %v8210_v17 = vld [vmem:[#allocation21_spill] sm:$0xff] }
 0x4c3   : > { %4865 = vmatmul.bf16.gmra.mxu1 %v8190_v54  ;;  %4538 = vmatmul.bf16.gmra.mxu3 %v8209_v43 }
 0x4c8   : > { %v4158_v7 = vpop.f32.mrf.mxu1 }
 0x4c9   : > { %v7831_v41 = vadd.f32 %v4158_v7, %v7700_v32  ;;  %v4298_v32 = vpop.f32.mrf.mxu2 }
 0x4ca   : > { %v4366_v43 = vadd.f32 %v4298_v32, %v8210_v17 }
 0x4d0   : > { %v4161_v11 = vpop.f32.mrf.mxu1 }
 0x4d1   : > { %v7834_v49 = vadd.f32 %v4161_v11, %v7714_v60  ;;  %v4300_v18 = vpop.f32.mrf.mxu2 }
 0x4d3   : > { %4870 = vmatmul.bf16.gmra.mxu1 %v8192_v28 }
 0x4d8   : > { %v4163_v26 = vpop.f32.mrf.mxu1 }
 0x4d9   : > { %v7838_v6 = vadd.f32 %v4163_v26, %v7727_v57  ;;  %v4484_v57 = vpop.f32.mrf.mxu3  ;;  %v4303_v4 = vpop.f32.mrf.mxu2 }
 0x4da   : > { %v4552_v26 = vadd.f32 %v4484_v57, %v4366_v43  ;;  %v4368_v32 = vadd.f32 %v4303_v4, %v7679_v51 }
 0x4e0   : > { %v4836_v22 = vpop.f32.mrf.mxu1 }
 0x4e1   : > { %v4916_v54 = vadd.f32 %v4836_v22, %v7735_v48  ;;  %v4486_v38 = vpop.f32.mrf.mxu3 }
 0x4e3   : > { %4948 = vst [vmem:[%s7842_s27] sm:$0xff] %v4916_v54  ;;  %4875 = vmatmul.bf16.gmra.mxu1 %v8194_v62  ;;  %v4672_v62 = vpop.f32.mrf.mxu0  ;;  %v4367_v54 = vadd.f32 %v4300_v18, %v7673_v10 }
 0x4e8   : > { %v4838_v60 = vpop.f32.mrf.mxu1 }
 0x4e9   : > { %v4917_v28 = vadd.f32 %v4838_v60, %v7743_v46  ;;  %v4489_v46 = vpop.f32.mrf.mxu3  ;;  %v4738_v60 = vadd.f32 %v4670_v40, %v4552_v26 }
 0x4eb   : > { %4949 = vst [vmem:[%s7842_s27 + $0x8] sm:$0xff] %v4917_v28  ;;  %v4675_v47 = vpop.f32.mrf.mxu0 }
 0x4f0   : > { %v4841_v58 = vpop.f32.mrf.mxu1 }
 0x4f1   : > { %v4918_v48 = vadd.f32 %v4841_v58, %v7751_v29  ;;  %v4305_v29 = vpop.f32.mrf.mxu2  ;;  %v4491_v19 = vpop.f32.mrf.mxu3 }
 0x4f2   : > { %v4369_v40 = vadd.f32 %v4305_v29, %v7690_v9 }
 0x4f3   : > { %4950 = vst [vmem:[%s7842_s27 + $0x10] sm:$0xff] %v4918_v48  ;;  %4880 = vmatmul.bf16.gmra.mxu1 %v8196_v16  ;;  %v4677_v33 = vpop.f32.mrf.mxu0  ;;  %v4553_v48 = vadd.f32 %v4486_v38, %v4367_v54 }
 0x4f8   : > { %v4843_v50 = vpop.f32.mrf.mxu1 }
 0x4f9   : > { %v4919_v30 = vadd.f32 %v4843_v50, %v7759_v21  ;;  %v4308_v21 = vpop.f32.mrf.mxu2  ;;  %v4739_v50 = vadd.f32 %v4672_v62, %v4553_v48 }
 0x4fa   : > { %v4370_v62 = vadd.f32 %v4308_v21, %v7696_v3 }
 0x4fb   : > { %4951 = vst [vmem:[%s7842_s27 + $0x18] sm:$0xff] %v4919_v30 }
 0x500   : > { %v4846_v27 = vpop.f32.mrf.mxu1 }
 0x501   : > { %v4920_v5 = vadd.f32 %v4846_v27, %v7767_v44  ;;  %v4494_v44 = vpop.f32.mrf.mxu3  ;;  %v4310_v7 = vpop.f32.mrf.mxu2  ;;  %v4554_v27 = vadd.f32 %v4489_v46, %v4368_v32  ;;  %v8211_v32 = vld [vmem:[#allocation29_spill] sm:$0xff] }
 0x502   : > { %v4556_v17 = vadd.f32 %v4494_v44, %v4370_v62  ;;  %v4371_v9 = vadd.f32 %v4310_v7, %v7707_v13 }
 0x503   : > { %4952 = vst [vmem:[%s7842_s27 + $0x20] sm:$0xff] %v4920_v5  ;;  %4885 = vmatmul.bf16.gmra.mxu1 %v8198_v52  ;;  %v4680_v52 = vpop.f32.mrf.mxu0  ;;  %v4740_v18 = vadd.f32 %v4675_v47, %v4554_v27 }
 0x504   : > { %v4742_v29 = vadd.f32 %v4680_v52, %v4556_v17 }
 0x508   : > { %v4848_v42 = vpop.f32.mrf.mxu1 }
 0x509   : > { %v4921_v16 = vadd.f32 %v4848_v42, %v7775_v39  ;;  %v4496_v22 = vpop.f32.mrf.mxu3 }
 0x50b   : > { %4953 = vst [vmem:[%s7842_s27 + $0x28] sm:$0xff] %v4921_v16  ;;  %v4682_v28 = vpop.f32.mrf.mxu0 }
 0x510   : > { %v4851_v56 = vpop.f32.mrf.mxu1 }
 0x511   : > { %v4922_v12 = vadd.f32 %v4851_v56, %v7783_v8  ;;  %v4555_v56 = vadd.f32 %v4491_v19, %v4369_v40 }
 0x513   : > { %4954 = vst [vmem:[%s7842_s27 + $0x30] sm:$0xff] %v4922_v12  ;;  %4890 = vmatmul.bf16.gmra.mxu1 %v8200_v23  ;;  %v4313_v23 = vpop.f32.mrf.mxu2  ;;  %v4685_v5 = vpop.f32.mrf.mxu0  ;;  %v4741_v4 = vadd.f32 %v4677_v33, %v4555_v56 }
 0x514   : > { %v4372_v3 = vadd.f32 %v4313_v23, %v7720_v15 }
 0x518   : > { %v4853_v11 = vpop.f32.mrf.mxu1 }
 0x519   : > { %v4923_v39 = vadd.f32 %v4853_v11, %v7791_v2  ;;  %v4499_v2 = vpop.f32.mrf.mxu3 }
 0x51a   : > { %v4558_v13 = vadd.f32 %v4499_v2, %v4372_v3 }
 0x51b   : > { %4955 = vst [vmem:[%s7842_s27 + $0x38] sm:$0xff] %v4923_v39  ;;  %v4315_v10 = vpop.f32.mrf.mxu2  ;;  %v4687_v51 = vpop.f32.mrf.mxu0 }
 0x51c   : > { %v4373_v52 = vadd.f32 %v4315_v10, %v7733_v31  ;;  %v4744_v7 = vadd.f32 %v4685_v5, %v4558_v13 }
 0x520   : > { %v4856_v8 = vpop.f32.mrf.mxu1 }
 0x521   : > { %v4924_v58 = vadd.f32 %v4856_v8, %v4738_v60  ;;  %v4501_v16 = vpop.f32.mrf.mxu3 }
 0x522   : > { %v4559_v48 = vadd.f32 %v4501_v16, %v4373_v52 }
 0x523   : > { %4956 = vst [vmem:[%s7842_s27 + $0x40] sm:$0xff] %v4924_v58  ;;  %4895 = vmatmul.bf16.gmra.mxu1 %v8203_v20  ;;  %v4318_v20 = vpop.f32.mrf.mxu2  ;;  %v4690_v47 = vpop.f32.mrf.mxu0 }
 0x524   : > { %v4745_v23 = vadd.f32 %v4687_v51, %v4559_v48 }
 0x528   : > { %v4858_v57 = vpop.f32.mrf.mxu1 }
 0x529   : > { %v4925_v30 = vadd.f32 %v4858_v57, %v4739_v50  ;;  %v4504_v43 = vpop.f32.mrf.mxu3 }
 0x52b   : > { %4957 = vst [vmem:[%s7842_s27 + $0x48] sm:$0xff] %v4925_v30  ;;  %v4320_v19 = vpop.f32.mrf.mxu2  ;;  %v4692_v44 = vpop.f32.mrf.mxu0 }
 0x52c   : > { %v4375_v5 = vadd.f32 %v4320_v19, %v7749_v36 }
 0x530   : > { %v4861_v42 = vpop.f32.mrf.mxu1 }
 0x531   : > { %v4926_v38 = vadd.f32 %v4861_v42, %v4740_v18  ;;  %v4506_v26 = vpop.f32.mrf.mxu3 }
 0x532   : > { %v4561_v42 = vadd.f32 %v4506_v26, %v4375_v5 }
 0x533   : > { %4958 = vst [vmem:[%s7842_s27 + $0x50] sm:$0xff] %v4926_v38  ;;  %4900 = vmatmul.bf16.gmra.mxu1 %v8207_v45  ;;  %v4557_v45 = vadd.f32 %v4496_v22, %v4371_v9  ;;  %v4323_v60 = vpop.f32.mrf.mxu2 }
 0x534   : > { %v4376_v16 = vadd.f32 %v4323_v60, %v7755_v63  ;;  %v4747_v56 = vadd.f32 %v4692_v44, %v4561_v42 }
 0x535   : > { %v4743_v33 = vadd.f32 %v4682_v28, %v4557_v45  ;;  %v4374_v28 = vadd.f32 %v4318_v20, %v7739_v25 }
 0x537   : > { %v4560_v30 = vadd.f32 %v4504_v43, %v4374_v28 }
 0x538   : > { %v4863_v46 = vpop.f32.mrf.mxu1 }
 0x539   : > { %v4927_v12 = vadd.f32 %v4863_v46, %v4741_v4  ;;  %v4509_v8 = vpop.f32.mrf.mxu3  ;;  %v4746_v10 = vadd.f32 %v4690_v47, %v4560_v30 }
 0x53a   : > { %v4562_v4 = vadd.f32 %v4509_v8, %v4376_v16 }
 0x53b   : > { %4959 = vst [vmem:[%s7842_s27 + $0x58] sm:$0xff] %v4927_v12  ;;  %v4325_v15 = vpop.f32.mrf.mxu2 }
 0x53c   : > { %v4377_v36 = vadd.f32 %v4325_v15, %v7765_v14 }
 0x540   : > { %v4866_v11 = vpop.f32.mrf.mxu1 }
 0x541   : > { %v4928_v39 = vadd.f32 %v4866_v11, %v4742_v29  ;;  %v4511_v57 = vpop.f32.mrf.mxu3 }
 0x542   : > { %v4563_v29 = vadd.f32 %v4511_v57, %v4377_v36 }
 0x543   : > { %4960 = vst [vmem:[%s7842_s27 + $0x60] sm:$0xff] %v4928_v39  ;;  %4905 = vmatmul.bf16.gmra.mxu1 %v7824_v37  ;;  %v4695_v37 = vpop.f32.mrf.mxu0  ;;  %v4328_v27 = vpop.f32.mrf.mxu2 }
 0x544   : > { %v4748_v12 = vadd.f32 %v4695_v37, %v4562_v4  ;;  %v4378_v63 = vadd.f32 %v4328_v27, %v7771_v0 }
 0x548   : > { %v4868_v21 = vpop.f32.mrf.mxu1 }
 0x549   : > { %v4929_v54 = vadd.f32 %v4868_v21, %v4743_v33  ;;  %v4514_v38 = vpop.f32.mrf.mxu3 }
 0x54a   : > { %v4564_v26 = vadd.f32 %v4514_v38, %v4378_v63 }
 0x54b   : > { %4961 = vst [vmem:[%s7842_s27 + $0x68] sm:$0xff] %v4929_v54  ;;  %v4697_v31 = vpop.f32.mrf.mxu0  ;;  %v4330_v51 = vpop.f32.mrf.mxu2 }
 0x54c   : > { %v4749_v19 = vadd.f32 %v4697_v31, %v4563_v29  ;;  %v4379_v14 = vadd.f32 %v4330_v51, %v7781_v53 }
 0x550   : > { %v4871_v22 = vpop.f32.mrf.mxu1 }
 0x551   : > { %v4930_v58 = vadd.f32 %v4871_v22, %v4744_v7  ;;  %v4516_v46 = vpop.f32.mrf.mxu3 }
 0x552   : > { %v4565_v13 = vadd.f32 %v4516_v46, %v4379_v14 }
 0x553   : > { %4962 = vst [vmem:[%s7842_s27 + $0x70] sm:$0xff] %v4930_v58  ;;  %4910 = vmatmul.bf16.gmra.mxu1 %v8211_v32  ;;  %v4700_v25 = vpop.f32.mrf.mxu0  ;;  %v4333_v47 = vpop.f32.mrf.mxu2 }
 0x554   : > { %v4750_v21 = vadd.f32 %v4700_v25, %v4564_v26  ;;  %v4380_v7 = vadd.f32 %v4333_v47, %v7787_v34 }
 0x558   : > { %v4873_v50 = vpop.f32.mrf.mxu1 }
 0x559   : > { %v4931_v2 = vadd.f32 %v4873_v50, %v4745_v23  ;;  %v4519_v11 = vpop.f32.mrf.mxu3 }
 0x55a   : > { %v4566_v48 = vadd.f32 %v4519_v11, %v4380_v7 }
 0x55b   : > { %4963 = vst [vmem:[%s7842_s27 + $0x78] sm:$0xff] %v4931_v2  ;;  %v4702_v43 = vpop.f32.mrf.mxu0  ;;  %v4335_v33 = vpop.f32.mrf.mxu2 }
 0x55c   : > { %v4751_v8 = vadd.f32 %v4702_v43, %v4565_v13  ;;  %v4381_v32 = vadd.f32 %v4335_v33, %v7796_v35 }
 0x560   : > { %v4876_v40 = vpop.f32.mrf.mxu1 }
 0x561   : > { %v4932_v18 = vadd.f32 %v4876_v40, %v4746_v10  ;;  %v4521_v60 = vpop.f32.mrf.mxu3 }
 0x562   : > { %v4567_v2 = vadd.f32 %v4521_v60, %v4381_v32 }
 0x563   : > { %4964 = vst [vmem:[%s7842_s27 + $0x80] sm:$0xff] %v4932_v18  ;;  %v4705_v3 = vpop.f32.mrf.mxu0  ;;  %v4338_v0 = vpop.f32.mrf.mxu2 }
 0x564   : > { %v4752_v15 = vadd.f32 %v4705_v3, %v4566_v48  ;;  %v4382_v34 = vadd.f32 %v4338_v0, %v7799_v59 }
 0x568   : > { %v4878_v20 = vpop.f32.mrf.mxu1 }
 0x569   : > { %v4933_v62 = vadd.f32 %v4878_v20, %v4747_v56  ;;  %v4524_v37 = vpop.f32.mrf.mxu3 }
 0x56a   : > { %v4568_v40 = vadd.f32 %v4524_v37, %v4382_v34 }
 0x56b   : > { %4965 = vst [vmem:[%s7842_s27 + $0x88] sm:$0xff] %v4933_v62  ;;  %v4707_v52 = vpop.f32.mrf.mxu0  ;;  %v4340_v28 = vpop.f32.mrf.mxu2 }
 0x56c   : > { %v4753_v30 = vadd.f32 %v4707_v52, %v4567_v2  ;;  %v4383_v35 = vadd.f32 %v4340_v28, %v7806_v61 }
 0x570   : > { %v4881_v17 = vpop.f32.mrf.mxu1 }
 0x571   : > { %v4934_v9 = vadd.f32 %v4881_v17, %v4748_v12  ;;  %v4526_v57 = vpop.f32.mrf.mxu3 }
 0x572   : > { %v4569_v25 = vadd.f32 %v4526_v57, %v4383_v35 }
 0x573   : > { %4966 = vst [vmem:[%s7842_s27 + $0x90] sm:$0xff] %v4934_v9  ;;  %v4710_v53 = vpop.f32.mrf.mxu0  ;;  %v4343_v10 = vpop.f32.mrf.mxu2 }
 0x574   : > { %v4754_v18 = vadd.f32 %v4710_v53, %v4568_v40  ;;  %v4384_v59 = vadd.f32 %v4343_v10, %v7809_v55 }
 0x578   : > { %v4883_v39 = vpop.f32.mrf.mxu1 }
 0x579   : > { %v4935_v45 = vadd.f32 %v4883_v39, %v4749_v19  ;;  %v4529_v42 = vpop.f32.mrf.mxu3 }
 0x57a   : > { %v4570_v36 = vadd.f32 %v4529_v42, %v4384_v59 }
 0x57b   : > { %4967 = vst [vmem:[%s7842_s27 + $0x98] sm:$0xff] %v4935_v45  ;;  %v4712_v27 = vpop.f32.mrf.mxu0  ;;  %v4345_v51 = vpop.f32.mrf.mxu2 }
 0x57c   : > { %v4755_v20 = vadd.f32 %v4712_v27, %v4569_v25  ;;  %v4385_v17 = vadd.f32 %v4345_v51, %v7816_v24 }
 0x580   : > { %v4886_v44 = vpop.f32.mrf.mxu1 }
 0x581   : > { %v4936_v54 = vadd.f32 %v4886_v44, %v4750_v21  ;;  %v4531_v46 = vpop.f32.mrf.mxu3 }
 0x582   : > { %v4571_v29 = vadd.f32 %v4531_v46, %v4385_v17 }
 0x583   : > { %4968 = vst [vmem:[%s7842_s27 + $0xa0] sm:$0xff] %v4936_v54  ;;  %v4715_v56 = vpop.f32.mrf.mxu0  ;;  %v4348_v61 = vpop.f32.mrf.mxu2 }
 0x584   : > { %v4756_v43 = vadd.f32 %v4715_v56, %v4570_v36  ;;  %v4386_v55 = vadd.f32 %v4348_v61, %v7821_v1 }
 0x588   : > { %v4888_v22 = vpop.f32.mrf.mxu1 }
 0x589   : > { %v4937_v58 = vadd.f32 %v4888_v22, %v4751_v8  ;;  %v4534_v63 = vpop.f32.mrf.mxu3 }
 0x58a   : > { %v4572_v3 = vadd.f32 %v4534_v63, %v4386_v55 }
 0x58b   : > { %4969 = vst [vmem:[%s7842_s27 + $0xa8] sm:$0xff] %v4937_v58  ;;  %v4717_v12 = vpop.f32.mrf.mxu0  ;;  %v4350_v39 = vpop.f32.mrf.mxu2 }
 0x58c   : > { %v4757_v11 = vadd.f32 %v4717_v12, %v4571_v29  ;;  %v4387_v24 = vadd.f32 %v4350_v39, %v7831_v41 }
 0x590   : > { %v4891_v23 = vpop.f32.mrf.mxu1 }
 0x591   : > { %v4938_v50 = vadd.f32 %v4891_v23, %v4752_v15  ;;  %v4536_v33 = vpop.f32.mrf.mxu3 }
 0x592   : > { %v4573_v13 = vadd.f32 %v4536_v33, %v4387_v24 }
 0x593   : > { %4970 = vst [vmem:[%s7842_s27 + $0xb0] sm:$0xff] %v4938_v50  ;;  %v4720_v19 = vpop.f32.mrf.mxu0  ;;  %v4353_v60 = vpop.f32.mrf.mxu2 }
 0x594   : > { %v4758_v14 = vadd.f32 %v4720_v19, %v4572_v3  ;;  %v4388_v1 = vadd.f32 %v4353_v60, %v7834_v49 }
 0x598   : > { %v4893_v31 = vpop.f32.mrf.mxu1 }
 0x599   : > { %v4939_v5 = vadd.f32 %v4893_v31, %v4753_v30  ;;  %v4539_v52 = vpop.f32.mrf.mxu3 }
 0x59a   : > { %v4574_v58 = vadd.f32 %v4539_v52, %v4388_v1 }
 0x59b   : > { %4971 = vst [vmem:[%s7842_s27 + $0xb8] sm:$0xff] %v4939_v5  ;;  %v4722_v54 = vpop.f32.mrf.mxu0  ;;  %v4355_v41 = vpop.f32.mrf.mxu2 }
 0x59c   : > { %v4759_v0 = vadd.f32 %v4722_v54, %v4573_v13  ;;  %v4389_v37 = vadd.f32 %v4355_v41, %v7838_v6 }
 0x5a0   : > { %v4896_v38 = vpop.f32.mrf.mxu1 }
 0x5a1   : > { %v4940_v16 = vadd.f32 %v4896_v38, %v4754_v18  ;;  %v4541_v32 = vpop.f32.mrf.mxu3 }
 0x5a2   : > { %v4575_v49 = vadd.f32 %v4541_v32, %v4389_v37 }
 0x5a3   : > { %4972 = vst [vmem:[%s7842_s27 + $0xc0] sm:$0xff] %v4940_v16  ;;  %v4725_v22 = vpop.f32.mrf.mxu0 }
 0x5a4   : > { %v4760_v48 = vadd.f32 %v4725_v22, %v4574_v58 }
 0x5a8   : > { %v4898_v62 = vpop.f32.mrf.mxu1 }
 0x5a9   : > { %v4941_v4 = vadd.f32 %v4898_v62, %v4755_v20 }
 0x5ab   : > { %4973 = vst [vmem:[%s7842_s27 + $0xc8] sm:$0xff] %v4941_v4  ;;  %v4727_v28 = vpop.f32.mrf.mxu0 }
 0x5ac   : > { %v4761_v23 = vadd.f32 %v4727_v28, %v4575_v49 }
 0x5b0   : > { %v4901_v9 = vpop.f32.mrf.mxu1 }
 0x5b1   : > { %v4942_v47 = vadd.f32 %v4901_v9, %v4756_v43 }
 0x5b3   : > { %4974 = vst [vmem:[%s7842_s27 + $0xd0] sm:$0xff] %v4942_v47 }
 0x5b8   : > { %v4903_v45 = vpop.f32.mrf.mxu1 }
 0x5b9   : > { %v4943_v26 = vadd.f32 %v4903_v45, %v4757_v11 }
 0x5bb   : > { %4975 = vst [vmem:[%s7842_s27 + $0xd8] sm:$0xff] %v4943_v26 }
 0x5c0   : > { %v4906_v21 = vpop.f32.mrf.mxu1 }
 0x5c1   : > { %v4944_v44 = vadd.f32 %v4906_v21, %v4758_v14 }
 0x5c3   : > { %4976 = vst [vmem:[%s7842_s27 + $0xe0] sm:$0xff] %v4944_v44 }
 0x5c8   : > { %v4908_v7 = vpop.f32.mrf.mxu1 }
 0x5c9   : > { %v4945_v8 = vadd.f32 %v4908_v7, %v4759_v0 }
 0x5cb   : > { %4977 = vst [vmem:[%s7842_s27 + $0xe8] sm:$0xff] %v4945_v8 }
 0x5d0   : > { %v4911_v53 = vpop.f32.mrf.mxu1 }
 0x5d1   : > { %v4946_v15 = vadd.f32 %v4911_v53, %v4760_v48 }
 0x5d3   : > { %4978 = vst [vmem:[%s7842_s27 + $0xf0] sm:$0xff] %v4946_v15 }
 0x5d8   : > { %v4913_v50 = vpop.f32.mrf.mxu1 }
 0x5d9   : > { %v4947_v6 = vadd.f32 %v4913_v50, %v4761_v23 }
 0x5db   : > { %4979 = vst [vmem:[%s7842_s27 + $0xf8] sm:$0xff] %v4947_v6 }
 0x5dc   : > { %6116 = shalt.err (!%p6113_p10)
}
 0x5dd   : > { %s6166_s8 = smov 128   ;;  %s6167_s15 = smov 8  }
 0x5de   : > { %5934 = dma.vmem_to_hbm [thread:$0]  (%p6270_p3), %s4994_s16, 4096, %s4996_s10, %s4981_s22, %s6166_s8, %s6166_s8, %s6167_s15  }
 0x5df PF: > { %s5010_s27 = sand.u32 1, %s6147_s18   ;;  %p8212_p12 = scmp.ge.s32.totalorder %s6159_s21, 2 }
 0x5e0   : > { %s5011_s30 = scalar_lea.sflag [#allocation4], %s5010_s27 }
 0x5e1   : > { %p5948_p13 = pnand %p8212_p12, %p6233_p6 }
 0x5e3   : > { %p5949_p0 = pneg %p5948_p13 }
 0x5e5   : > { %6142 = dma.done.wait (%p5949_p0), %s5011_s30, 4096  }
 0x5e6   : > { %6144 = vsyncadd (%p5949_p0), %s5011_s30, 4294963200  ;;  %p19_p5 = scmp.ge.s32.totalorder %s6260_s14, 4   ;;  %s8213_s18 = smov %s6151_s19 }
 0x5e7   : > { %s8214_s19 = smov %s6155_s20  ;;  %s8215_s20 = smov %s6276_s23 }
 0x5e8   : > { %s8216_s21 = smov %s6260_s14  ;;  %21 = sbr.rel (!%p19_p5) target bundleno = 6 (0x6), region = 109 }
 0x5ed   :  { %5017 = vsyncpa [#allocation3], 1 }
 0x5ee   :  { %5019 = vsyncpa [#allocation3 + $0x1], 1 }
 0x5ef   :  { %5020 = vsyncpa [#allocation6], 1 }
 0x5f0   :  { %5021 = vsyncpa [#allocation4], 1 }
 0x5f1   :  { %5023 = vsyncpa [#allocation4 + $0x1], 1 }

</bundles_post_ra>
